<compile_context>
chip_gen: v5e
topology: v5e:2x2
jax: 0.10.0
libtpu: 0.0.40
codegen_flags: <defaults>
</compile_context>

<pallas_src>
import math

import jax
import jax.numpy as jnp
from jax.experimental import pallas as pl
from jax.experimental.pallas import tpu as pltpu

MXU_DTYPE = jnp.bfloat16   # MXU-native operand dtype; accumulation is f32.


# ----------------------------- Pallas kernel -------------------------------
def _lstm_mlp_kernel(x_ref,                          # (T, Bb, F)  f32
                     w_ih0_ref, w_hh0_ref, b0_ref,   # (F,4H) bf16, (H,4H) bf16, (1,4H) f32
                     w_l1_ref, b1_ref,               # (2H,4H) bf16, (1,4H) f32
                     fc1_w_ref, fc1_b_ref,           # (H,32), (1,32) f32 (bn1 & bn(32) folded)
                     fc2_w_ref, fc2_b_ref,           # (32,16), (1,16) f32 (bn(16) folded)
                     fc3_w_ref, fc3_b_ref,           # (1,16), (1,1) f32
                     out_ref):                       # (Bb, 1) f32
    T, B, _ = x_ref.shape
    H = w_hh0_ref.shape[0]

    # Layer-0 input projection: independent of the recurrence, so compute it up
    # front. These T dots have no h/c dependence and pipeline on the MXU instead
    # of serializing inside the cell-update chain.
    w_ih0 = w_ih0_ref[...]
    b0 = b0_ref[...]
    g0_in = [jnp.dot(x_ref[t].astype(MXU_DTYPE), w_ih0,
                     preferred_element_type=jnp.float32) + b0
             for t in range(T)]

    def gate_act(gates, c):
        # PyTorch gate order: i, f, g, o — gate math kept in f32 (v5e has no bf16 VPU/EUP)
        i = jax.nn.sigmoid(gates[:, 0 * H:1 * H])
        f = jax.nn.sigmoid(gates[:, 1 * H:2 * H])
        g = jnp.tanh(gates[:, 2 * H:3 * H])
        o = jax.nn.sigmoid(gates[:, 3 * H:4 * H])
        c_new = f * c + i * g
        h_new = o * jnp.tanh(c_new)
        return h_new, c_new

    zeros = jnp.zeros((B, H), jnp.float32)
    h0, c0, h1, c1 = zeros, zeros, zeros, zeros
    # T is static & small: fully unrolled so MXU pops / EUP transcendentals /
    # VALU gate math of adjacent steps can interleave.
    for t in range(T):
        # layer 0: single (B,H)@(H,4H) recurrent dot per step
        g0 = g0_in[t] + jnp.dot(h0.astype(MXU_DTYPE), w_hh0_ref[...],
                                preferred_element_type=jnp.float32)
        h0, c0 = gate_act(g0, c0)
        # layer 1: input + recurrent matmuls fused -> one (B,2H)@(2H,4H) dot.
        # (inter-layer LSTM dropout is identity in eval mode)
        hcat = jnp.concatenate([h0, h1], axis=-1).astype(MXU_DTYPE)
        g1 = (jnp.dot(hcat, w_l1_ref[...], preferred_element_type=jnp.float32)
              + b1_ref[...])
        h1, c1 = gate_act(g1, c1)

    # Head on the last hidden state; BatchNorms folded into the Linears (eval),
    # Dropout = identity.
    z = jnp.dot(h1, fc1_w_ref[...], preferred_element_type=jnp.float32) + fc1_b_ref[...]
    z = jnp.maximum(z, 0.0)
    z = jnp.dot(z, fc2_w_ref[...], preferred_element_type=jnp.float32) + fc2_b_ref[...]
    z = jnp.maximum(z, 0.0)
    # fc3 (16 -> 1): VPU reduction instead of an N=1 (1/128-lane-utilized) MXU matmul.
    out = jnp.sum(z * fc3_w_ref[...], axis=-1, keepdims=True) + fc3_b_ref[...]
    out_ref[...] = out.astype(out_ref.dtype)


# ----------------------------- wrapper (glue) -------------------------------
def _const_index_map(ndim):
    return lambda i: (0,) * ndim


def price_lstm_forward(x, packed, *, block_b=None):
    """x: (B, T, F) float32, batch_first like the PyTorch module."""
    B, T, F = x.shape
    if block_b is None:
        block_b = B            # single program at toy sizes; at serving batch sizes pick a
                               # multiple of 8 (< B) to shard the batch across TensorCores.
    assert B % block_b == 0
    x_t = jnp.transpose(x, (1, 0, 2)).astype(jnp.float32)   # (T, B, F): time-major

    weights = (packed['w_ih0'], packed['w_hh0'], packed['b0'],
               packed['w_l1'], packed['b1'],
               packed['fc1_w'], packed['fc1_b'],
               packed['fc2_w'], packed['fc2_b'],
               packed['fc3_w'], packed['fc3_b'])

    return pl.pallas_call(
        _lstm_mlp_kernel,
        out_shape=jax.ShapeDtypeStruct((B, 1), jnp.float32),
        grid=(B // block_b,),
        in_specs=[pl.BlockSpec((T, block_b, F), lambda i: (0, i, 0))]
                 + [pl.BlockSpec(w.shape, _const_index_map(w.ndim)) for w in weights],
        out_specs=pl.BlockSpec((block_b, 1), lambda i: (i, 0)),
        compiler_params=pltpu.CompilerParams(
            dimension_semantics=("parallel",),            # batch axis (v7x: 2 TCs/chip)
            vmem_limit_bytes=32 * 1024 * 1024),           # explicit budget (v7x phys VMEM = 64 MiB)
    )(x_t, *weights)


# ----------------------- deterministic parameter init -----------------------
def _xavier_uniform(key, shape):
    fan_out, fan_in = shape[0], shape[1]
    bound = math.sqrt(6.0 / (fan_in + fan_out))
    return jax.random.uniform(key, shape, jnp.float32, -bound, bound)


def init_params(key, input_size, hidden=64):
    """PyTorch-equivalent init: xavier_uniform for >=2-D weights, N(0, 0.01) for
    1-D weights (BatchNorm gammas), zeros for biases; BN running stats at defaults."""
    H = hidden
    ks = jax.random.split(key, 10)
    return dict(
        w_ih0=_xavier_uniform(ks[0], (4 * H, input_size)),
        w_hh0=_xavier_uniform(ks[1], (4 * H, H)),
        b_ih0=jnp.zeros((4 * H,), jnp.float32),
        b_hh0=jnp.zeros((4 * H,), jnp.float32),
        w_ih1=_xavier_uniform(ks[2], (4 * H, H)),
        w_hh1=_xavier_uniform(ks[3], (4 * H, H)),
        b_ih1=jnp.zeros((4 * H,), jnp.float32),
        b_hh1=jnp.zeros((4 * H,), jnp.float32),
        bn1_gamma=0.01 * jax.random.normal(ks[4], (H,), jnp.float32),
        bn1_beta=jnp.zeros((H,), jnp.float32),
        bn1_mean=jnp.zeros((H,), jnp.float32),
        bn1_var=jnp.ones((H,), jnp.float32),
        fc1_w=_xavier_uniform(ks[5], (32, H)),
        fc1_b=jnp.zeros((32,), jnp.float32),
        bnA_gamma=0.01 * jax.random.normal(ks[6], (32,), jnp.float32),
        bnA_beta=jnp.zeros((32,), jnp.float32),
        bnA_mean=jnp.zeros((32,), jnp.float32),
        bnA_var=jnp.ones((32,), jnp.float32),
        fc2_w=_xavier_uniform(ks[7], (16, 32)),
        fc2_b=jnp.zeros((16,), jnp.float32),
        bnB_gamma=0.01 * jax.random.normal(ks[8], (16,), jnp.float32),
        bnB_beta=jnp.zeros((16,), jnp.float32),
        bnB_mean=jnp.zeros((16,), jnp.float32),
        bnB_var=jnp.ones((16,), jnp.float32),
        fc3_w=_xavier_uniform(ks[9], (1, 16)),
        fc3_b=jnp.zeros((1,), jnp.float32),
    )


def pack_params(p, eps=1e-5):
    """Kernel-ready params: weights transposed to (in, out), LSTM layer-1 weights
    stacked for the fused dot, recurrence weights pre-cast to bf16, eval-mode
    BatchNorms folded into the adjacent Linears."""
    # NOTE: when importing real PyTorch weights, verify biases are summed (b_ih+b_hh)
    # and the Linear->BatchNorm->ReLU ordering before folding, as done here.
    def bn_affine(g, b, m, v):
        s = g / jnp.sqrt(v + eps)
        return s, b - m * s

    s1, t1 = bn_affine(p['bn1_gamma'], p['bn1_beta'], p['bn1_mean'], p['bn1_var'])
    sA, tA = bn_affine(p['bnA_gamma'], p['bnA_beta'], p['bnA_mean'], p['bnA_var'])
    sB, tB = bn_affine(p['bnB_gamma'], p['bnB_beta'], p['bnB_mean'], p['bnB_var'])

    w1 = p['fc1_w'].T                                    # (H, 32)
    fc1_w = (s1[:, None] * w1) * sA[None, :]             # bn1 (pre) and bn(32) (post) folded
    fc1_b = (t1 @ w1 + p['fc1_b']) * sA + tA
    w2 = p['fc2_w'].T                                    # (32, 16)
    fc2_w = w2 * sB[None, :]                             # bn(16) folded
    fc2_b = p['fc2_b'] * sB + tB

    return dict(
        w_ih0=p['w_ih0'].T.astype(MXU_DTYPE),                              # (F, 4H)
        w_hh0=p['w_hh0'].T.astype(MXU_DTYPE),                              # (H, 4H)
        b0=(p['b_ih0'] + p['b_hh0'])[None, :].astype(jnp.float32),         # (1, 4H)
        w_l1=jnp.concatenate([p['w_ih1'].T, p['w_hh1'].T], 0).astype(MXU_DTYPE),  # (2H, 4H)
        b1=(p['b_ih1'] + p['b_hh1'])[None, :].astype(jnp.float32),         # (1, 4H)
        fc1_w=fc1_w.astype(jnp.float32), fc1_b=fc1_b[None, :].astype(jnp.float32),
        fc2_w=fc2_w.astype(jnp.float32), fc2_b=fc2_b[None, :].astype(jnp.float32),
        fc3_w=p['fc3_w'].astype(jnp.float32),                              # (1, 16) row
        fc3_b=p['fc3_b'][None, :].astype(jnp.float32),                     # (1, 1)
    )


# ----------------------------- pure-JAX reference ---------------------------
def reference_forward(x, p, eps=1e-5, matmul_dtype=jnp.float32):
    """Eval-mode forward mirroring the PyTorch module on the *unfolded* params.
    matmul_dtype lets the reference apply the same MXU-operand rounding as the kernel."""
    B, T, _ = x.shape
    H = p['w_hh0'].shape[1]

    def mm(a, w_t):
        return jnp.dot(a.astype(matmul_dtype), w_t.astype(matmul_dtype),
                       preferred_element_type=jnp.float32)

    def cell(x_t, h, c, w_ih, w_hh, b_ih, b_hh):
        gates = mm(x_t, w_ih.T) + mm(h, w_hh.T) + b_ih + b_hh
        i = jax.nn.sigmoid(gates[:, :H]); f = jax.nn.sigmoid(gates[:, H:2 * H])
        g = jnp.tanh(gates[:, 2 * H:3 * H]); o = jax.nn.sigmoid(gates[:, 3 * H:])
        c = f * c + i * g
        return o * jnp.tanh(c), c

    def bn(v, g, b, m, var):
        return (v - m) / jnp.sqrt(var + eps) * g + b

    h0 = c0 = h1 = c1 = jnp.zeros((B, H), jnp.float32)
    for t in range(T):
        h0, c0 = cell(x[:, t, :], h0, c0, p['w_ih0'], p['w_hh0'], p['b_ih0'], p['b_hh0'])
        h1, c1 = cell(h0, h1, c1, p['w_ih1'], p['w_hh1'], p['b_ih1'], p['b_hh1'])

    z = bn(h1, p['bn1_gamma'], p['bn1_beta'], p['bn1_mean'], p['bn1_var'])
    z = z @ p['fc1_w'].T + p['fc1_b']
    z = jnp.maximum(bn(z, p['bnA_gamma'], p['bnA_beta'], p['bnA_mean'], p['bnA_var']), 0.0)
    z = z @ p['fc2_w'].T + p['fc2_b']
    z = jnp.maximum(bn(z, p['bnB_gamma'], p['bnB_beta'], p['bnB_mean'], p['bnB_var']), 0.0)
    return z @ p['fc3_w'].T + p['fc3_b']


if __name__ == "__main__":
    key = jax.random.PRNGKey(0)
    kx, kp = jax.random.split(key)
    B, T, F, H = 4, 8, 16, 64          # batch, seq, input_size, hidden_size
    x = jax.random.normal(kx, (B, T, F), jnp.float32)
    params = init_params(kp, F, H)
    packed = pack_params(params)

    out = price_lstm_forward(x, packed)
    jax.block_until_ready(out)
    assert out.shape == (B, 1)

    # Reference applies the same bf16 MXU-operand rounding so the comparison is
    # apples-to-apples up to f32 accumulation order / transcendental impl.
    ref = reference_forward(x, params, matmul_dtype=MXU_DTYPE)
    if not jnp.allclose(out, ref, atol=1e-5, rtol=1e-2):
        err = float(jnp.max(jnp.abs(out - ref)))
        raise AssertionError(f"Pallas kernel mismatch vs JAX reference (max_abs_err={err:.3e})")
    # TODO(synk): training-mode BatchNorm (batch statistics) and stochastic Dropout
    # are not reproduced; this implements eval/inference-mode forward semantics.
    print("KERNEL_OK")
</pallas_src>

<mosaic_0001>
module attributes {stable_mosaic.version = 11 : i64} {
  func.func @_lstm_mlp_kernel(%arg0: i32, %arg1: memref<8x4x16xf32, #tpu.memory_space<vmem>>, %arg2: memref<16x256xbf16, #tpu.memory_space<vmem>>, %arg3: memref<64x256xbf16, #tpu.memory_space<vmem>>, %arg4: memref<1x256xf32, #tpu.memory_space<vmem>>, %arg5: memref<128x256xbf16, #tpu.memory_space<vmem>>, %arg6: memref<1x256xf32, #tpu.memory_space<vmem>>, %arg7: memref<64x32xf32, #tpu.memory_space<vmem>>, %arg8: memref<1x32xf32, #tpu.memory_space<vmem>>, %arg9: memref<32x16xf32, #tpu.memory_space<vmem>>, %arg10: memref<1x16xf32, #tpu.memory_space<vmem>>, %arg11: memref<1x16xf32, #tpu.memory_space<vmem>>, %arg12: memref<1x1xf32, #tpu.memory_space<vmem>>, %arg13: memref<4x1xf32, #tpu.memory_space<vmem>>) attributes {dimension_semantics = [#tpu.dimension_semantics<parallel>], iteration_bounds = array<i64: 1>, scalar_prefetch = 0 : i64, scratch_operands = 0 : i64, tpu.core_type = #tpu.core_type<tc>, window_params = [{transform_indices = @transform_0, window_bounds = array<i64: 8, 4, 16>}, {pipeline_mode = #tpu.pipeline_mode<synchronous>, transform_indices = @transform_1, window_bounds = array<i64: 16, 256>}, {pipeline_mode = #tpu.pipeline_mode<synchronous>, transform_indices = @transform_2, window_bounds = array<i64: 64, 256>}, {pipeline_mode = #tpu.pipeline_mode<synchronous>, transform_indices = @transform_3, window_bounds = array<i64: 1, 256>}, {pipeline_mode = #tpu.pipeline_mode<synchronous>, transform_indices = @transform_4, window_bounds = array<i64: 128, 256>}, {pipeline_mode = #tpu.pipeline_mode<synchronous>, transform_indices = @transform_5, window_bounds = array<i64: 1, 256>}, {pipeline_mode = #tpu.pipeline_mode<synchronous>, transform_indices = @transform_6, window_bounds = array<i64: 64, 32>}, {pipeline_mode = #tpu.pipeline_mode<synchronous>, transform_indices = @transform_7, window_bounds = array<i64: 1, 32>}, {pipeline_mode = #tpu.pipeline_mode<synchronous>, transform_indices = @transform_8, window_bounds = array<i64: 32, 16>}, {pipeline_mode = #tpu.pipeline_mode<synchronous>, transform_indices = @transform_9, window_bounds = array<i64: 1, 16>}, {pipeline_mode = #tpu.pipeline_mode<synchronous>, transform_indices = @transform_10, window_bounds = array<i64: 1, 16>}, {pipeline_mode = #tpu.pipeline_mode<synchronous>, transform_indices = @transform_11, window_bounds = array<i64: 1, 1>}, {transform_indices = @transform_12, window_bounds = array<i64: 4, 1>}]} {
    %c0 = arith.constant 0 : index
    %c0_0 = arith.constant 0 : index
    %0 = vector.load %arg2[%c0, %c0_0] : memref<16x256xbf16, #tpu.memory_space<vmem>>, vector<16x256xbf16>
    %c0_1 = arith.constant 0 : index
    %c0_2 = arith.constant 0 : index
    %1 = vector.load %arg4[%c0_1, %c0_2] : memref<1x256xf32, #tpu.memory_space<vmem>>, vector<1x256xf32>
    %c0_3 = arith.constant 0 : index
    %c0_4 = arith.constant 0 : index
    %c0_5 = arith.constant 0 : index
    %2 = vector.load %arg1[%c0_3, %c0_4, %c0_5] : memref<8x4x16xf32, #tpu.memory_space<vmem>>, vector<1x4x16xf32>
    %3 = vector.shape_cast %2 : vector<1x4x16xf32> to vector<4x16xf32>
    %4 = arith.truncf %3 : vector<4x16xf32> to vector<4x16xbf16>
    %cst = arith.constant dense<0.000000e+00> : vector<4x256xf32>
    %5 = tpu.matmul %4, %0, %cst {dimension_numbers = #tpu.dot_dimension_numbers<[1], [0], [0], [1], [0, 0, 1, 1], [], []>} : vector<4x16xbf16>, vector<16x256xbf16>, vector<4x256xf32> -> vector<4x256xf32>
    %6 = vector.broadcast %1 : vector<1x256xf32> to vector<4x256xf32>
    %7 = arith.addf %5, %6 : vector<4x256xf32>
    %c1 = arith.constant 1 : index
    %c0_6 = arith.constant 0 : index
    %c0_7 = arith.constant 0 : index
    %8 = vector.load %arg1[%c1, %c0_6, %c0_7] : memref<8x4x16xf32, #tpu.memory_space<vmem>>, vector<1x4x16xf32>
    %9 = vector.shape_cast %8 : vector<1x4x16xf32> to vector<4x16xf32>
    %10 = arith.truncf %9 : vector<4x16xf32> to vector<4x16xbf16>
    %cst_8 = arith.constant dense<0.000000e+00> : vector<4x256xf32>
    %11 = tpu.matmul %10, %0, %cst_8 {dimension_numbers = #tpu.dot_dimension_numbers<[1], [0], [0], [1], [0, 0, 1, 1], [], []>} : vector<4x16xbf16>, vector<16x256xbf16>, vector<4x256xf32> -> vector<4x256xf32>
    %12 = vector.broadcast %1 : vector<1x256xf32> to vector<4x256xf32>
    %13 = arith.addf %11, %12 : vector<4x256xf32>
    %c2 = arith.constant 2 : index
    %c0_9 = arith.constant 0 : index
    %c0_10 = arith.constant 0 : index
    %14 = vector.load %arg1[%c2, %c0_9, %c0_10] : memref<8x4x16xf32, #tpu.memory_space<vmem>>, vector<1x4x16xf32>
    %15 = vector.shape_cast %14 : vector<1x4x16xf32> to vector<4x16xf32>
    %16 = arith.truncf %15 : vector<4x16xf32> to vector<4x16xbf16>
    %cst_11 = arith.constant dense<0.000000e+00> : vector<4x256xf32>
    %17 = tpu.matmul %16, %0, %cst_11 {dimension_numbers = #tpu.dot_dimension_numbers<[1], [0], [0], [1], [0, 0, 1, 1], [], []>} : vector<4x16xbf16>, vector<16x256xbf16>, vector<4x256xf32> -> vector<4x256xf32>
    %18 = vector.broadcast %1 : vector<1x256xf32> to vector<4x256xf32>
    %19 = arith.addf %17, %18 : vector<4x256xf32>
    %c3 = arith.constant 3 : index
    %c0_12 = arith.constant 0 : index
    %c0_13 = arith.constant 0 : index
    %20 = vector.load %arg1[%c3, %c0_12, %c0_13] : memref<8x4x16xf32, #tpu.memory_space<vmem>>, vector<1x4x16xf32>
    %21 = vector.shape_cast %20 : vector<1x4x16xf32> to vector<4x16xf32>
    %22 = arith.truncf %21 : vector<4x16xf32> to vector<4x16xbf16>
    %cst_14 = arith.constant dense<0.000000e+00> : vector<4x256xf32>
    %23 = tpu.matmul %22, %0, %cst_14 {dimension_numbers = #tpu.dot_dimension_numbers<[1], [0], [0], [1], [0, 0, 1, 1], [], []>} : vector<4x16xbf16>, vector<16x256xbf16>, vector<4x256xf32> -> vector<4x256xf32>
    %24 = vector.broadcast %1 : vector<1x256xf32> to vector<4x256xf32>
    %25 = arith.addf %23, %24 : vector<4x256xf32>
    %c4 = arith.constant 4 : index
    %c0_15 = arith.constant 0 : index
    %c0_16 = arith.constant 0 : index
    %26 = vector.load %arg1[%c4, %c0_15, %c0_16] : memref<8x4x16xf32, #tpu.memory_space<vmem>>, vector<1x4x16xf32>
    %27 = vector.shape_cast %26 : vector<1x4x16xf32> to vector<4x16xf32>
    %28 = arith.truncf %27 : vector<4x16xf32> to vector<4x16xbf16>
    %cst_17 = arith.constant dense<0.000000e+00> : vector<4x256xf32>
    %29 = tpu.matmul %28, %0, %cst_17 {dimension_numbers = #tpu.dot_dimension_numbers<[1], [0], [0], [1], [0, 0, 1, 1], [], []>} : vector<4x16xbf16>, vector<16x256xbf16>, vector<4x256xf32> -> vector<4x256xf32>
    %30 = vector.broadcast %1 : vector<1x256xf32> to vector<4x256xf32>
    %31 = arith.addf %29, %30 : vector<4x256xf32>
    %c5 = arith.constant 5 : index
    %c0_18 = arith.constant 0 : index
    %c0_19 = arith.constant 0 : index
    %32 = vector.load %arg1[%c5, %c0_18, %c0_19] : memref<8x4x16xf32, #tpu.memory_space<vmem>>, vector<1x4x16xf32>
    %33 = vector.shape_cast %32 : vector<1x4x16xf32> to vector<4x16xf32>
    %34 = arith.truncf %33 : vector<4x16xf32> to vector<4x16xbf16>
    %cst_20 = arith.constant dense<0.000000e+00> : vector<4x256xf32>
    %35 = tpu.matmul %34, %0, %cst_20 {dimension_numbers = #tpu.dot_dimension_numbers<[1], [0], [0], [1], [0, 0, 1, 1], [], []>} : vector<4x16xbf16>, vector<16x256xbf16>, vector<4x256xf32> -> vector<4x256xf32>
    %36 = vector.broadcast %1 : vector<1x256xf32> to vector<4x256xf32>
    %37 = arith.addf %35, %36 : vector<4x256xf32>
    %c6 = arith.constant 6 : index
    %c0_21 = arith.constant 0 : index
    %c0_22 = arith.constant 0 : index
    %38 = vector.load %arg1[%c6, %c0_21, %c0_22] : memref<8x4x16xf32, #tpu.memory_space<vmem>>, vector<1x4x16xf32>
    %39 = vector.shape_cast %38 : vector<1x4x16xf32> to vector<4x16xf32>
    %40 = arith.truncf %39 : vector<4x16xf32> to vector<4x16xbf16>
    %cst_23 = arith.constant dense<0.000000e+00> : vector<4x256xf32>
    %41 = tpu.matmul %40, %0, %cst_23 {dimension_numbers = #tpu.dot_dimension_numbers<[1], [0], [0], [1], [0, 0, 1, 1], [], []>} : vector<4x16xbf16>, vector<16x256xbf16>, vector<4x256xf32> -> vector<4x256xf32>
    %42 = vector.broadcast %1 : vector<1x256xf32> to vector<4x256xf32>
    %43 = arith.addf %41, %42 : vector<4x256xf32>
    %c7 = arith.constant 7 : index
    %c0_24 = arith.constant 0 : index
    %c0_25 = arith.constant 0 : index
    %44 = vector.load %arg1[%c7, %c0_24, %c0_25] : memref<8x4x16xf32, #tpu.memory_space<vmem>>, vector<1x4x16xf32>
    %45 = vector.shape_cast %44 : vector<1x4x16xf32> to vector<4x16xf32>
    %46 = arith.truncf %45 : vector<4x16xf32> to vector<4x16xbf16>
    %cst_26 = arith.constant dense<0.000000e+00> : vector<4x256xf32>
    %47 = tpu.matmul %46, %0, %cst_26 {dimension_numbers = #tpu.dot_dimension_numbers<[1], [0], [0], [1], [0, 0, 1, 1], [], []>} : vector<4x16xbf16>, vector<16x256xbf16>, vector<4x256xf32> -> vector<4x256xf32>
    %48 = vector.broadcast %1 : vector<1x256xf32> to vector<4x256xf32>
    %49 = arith.addf %47, %48 : vector<4x256xf32>
    %cst_27 = arith.constant 0.000000e+00 : f32
    %50 = vector.broadcast %cst_27 : f32 to vector<4x64xf32>
    %51 = arith.truncf %50 : vector<4x64xf32> to vector<4x64xbf16>
    %c0_28 = arith.constant 0 : index
    %c0_29 = arith.constant 0 : index
    %52 = vector.load %arg3[%c0_28, %c0_29] : memref<64x256xbf16, #tpu.memory_space<vmem>>, vector<64x256xbf16>
    %cst_30 = arith.constant dense<0.000000e+00> : vector<4x256xf32>
    %53 = tpu.matmul %51, %52, %cst_30 {dimension_numbers = #tpu.dot_dimension_numbers<[1], [0], [0], [1], [0, 0, 1, 1], [], []>} : vector<4x64xbf16>, vector<64x256xbf16>, vector<4x256xf32> -> vector<4x256xf32>
    %54 = arith.addf %7, %53 : vector<4x256xf32>
    %55 = vector.extract_strided_slice %54 {offsets = [0, 0], sizes = [4, 64], strides = [1, 1]} : vector<4x256xf32> to vector<4x64xf32>
    %56 = arith.negf %55 : vector<4x64xf32>
    %57 = math.exp %56 : vector<4x64xf32>
    %cst_31 = arith.constant 1.000000e+00 : f32
    %58 = vector.broadcast %cst_31 : f32 to vector<4x64xf32>
    %59 = arith.addf %58, %57 : vector<4x64xf32>
    %60 = arith.divf %58, %59 : vector<4x64xf32>
    %61 = vector.extract_strided_slice %54 {offsets = [0, 64], sizes = [4, 64], strides = [1, 1]} : vector<4x256xf32> to vector<4x64xf32>
    %62 = arith.negf %61 : vector<4x64xf32>
    %63 = math.exp %62 : vector<4x64xf32>
    %cst_32 = arith.constant 1.000000e+00 : f32
    %64 = vector.broadcast %cst_32 : f32 to vector<4x64xf32>
    %65 = arith.addf %64, %63 : vector<4x64xf32>
    %66 = arith.divf %64, %65 : vector<4x64xf32>
    %67 = vector.extract_strided_slice %54 {offsets = [0, 128], sizes = [4, 64], strides = [1, 1]} : vector<4x256xf32> to vector<4x64xf32>
    %68 = math.tanh %67 : vector<4x64xf32>
    %69 = vector.extract_strided_slice %54 {offsets = [0, 192], sizes = [4, 64], strides = [1, 1]} : vector<4x256xf32> to vector<4x64xf32>
    %70 = arith.negf %69 : vector<4x64xf32>
    %71 = math.exp %70 : vector<4x64xf32>
    %cst_33 = arith.constant 1.000000e+00 : f32
    %72 = vector.broadcast %cst_33 : f32 to vector<4x64xf32>
    %73 = arith.addf %72, %71 : vector<4x64xf32>
    %74 = arith.divf %72, %73 : vector<4x64xf32>
    %75 = arith.mulf %66, %50 : vector<4x64xf32>
    %76 = arith.mulf %60, %68 : vector<4x64xf32>
    %77 = arith.addf %75, %76 : vector<4x64xf32>
    %78 = math.tanh %77 : vector<4x64xf32>
    %79 = arith.mulf %74, %78 : vector<4x64xf32>
    %80 = tpu.concatenate %79, %50 in 1 : vector<4x64xf32>, vector<4x64xf32> -> vector<4x128xf32>
    %81 = arith.truncf %80 : vector<4x128xf32> to vector<4x128xbf16>
    %c0_34 = arith.constant 0 : index
    %c0_35 = arith.constant 0 : index
    %82 = vector.load %arg5[%c0_34, %c0_35] : memref<128x256xbf16, #tpu.memory_space<vmem>>, vector<128x256xbf16>
    %cst_36 = arith.constant dense<0.000000e+00> : vector<4x256xf32>
    %83 = tpu.matmul %81, %82, %cst_36 {dimension_numbers = #tpu.dot_dimension_numbers<[1], [0], [0], [1], [0, 0, 1, 1], [], []>} : vector<4x128xbf16>, vector<128x256xbf16>, vector<4x256xf32> -> vector<4x256xf32>
    %c0_37 = arith.constant 0 : index
    %c0_38 = arith.constant 0 : index
    %84 = vector.load %arg6[%c0_37, %c0_38] : memref<1x256xf32, #tpu.memory_space<vmem>>, vector<1x256xf32>
    %85 = vector.broadcast %84 : vector<1x256xf32> to vector<4x256xf32>
    %86 = arith.addf %83, %85 : vector<4x256xf32>
    %87 = vector.extract_strided_slice %86 {offsets = [0, 0], sizes = [4, 64], strides = [1, 1]} : vector<4x256xf32> to vector<4x64xf32>
    %88 = arith.negf %87 : vector<4x64xf32>
    %89 = math.exp %88 : vector<4x64xf32>
    %cst_39 = arith.constant 1.000000e+00 : f32
    %90 = vector.broadcast %cst_39 : f32 to vector<4x64xf32>
    %91 = arith.addf %90, %89 : vector<4x64xf32>
    %92 = arith.divf %90, %91 : vector<4x64xf32>
    %93 = vector.extract_strided_slice %86 {offsets = [0, 64], sizes = [4, 64], strides = [1, 1]} : vector<4x256xf32> to vector<4x64xf32>
    %94 = arith.negf %93 : vector<4x64xf32>
    %95 = math.exp %94 : vector<4x64xf32>
    %cst_40 = arith.constant 1.000000e+00 : f32
    %96 = vector.broadcast %cst_40 : f32 to vector<4x64xf32>
    %97 = arith.addf %96, %95 : vector<4x64xf32>
    %98 = arith.divf %96, %97 : vector<4x64xf32>
    %99 = vector.extract_strided_slice %86 {offsets = [0, 128], sizes = [4, 64], strides = [1, 1]} : vector<4x256xf32> to vector<4x64xf32>
    %100 = math.tanh %99 : vector<4x64xf32>
    %101 = vector.extract_strided_slice %86 {offsets = [0, 192], sizes = [4, 64], strides = [1, 1]} : vector<4x256xf32> to vector<4x64xf32>
    %102 = arith.negf %101 : vector<4x64xf32>
    %103 = math.exp %102 : vector<4x64xf32>
    %cst_41 = arith.constant 1.000000e+00 : f32
    %104 = vector.broadcast %cst_41 : f32 to vector<4x64xf32>
    %105 = arith.addf %104, %103 : vector<4x64xf32>
    %106 = arith.divf %104, %105 : vector<4x64xf32>
    %107 = arith.mulf %98, %50 : vector<4x64xf32>
    %108 = arith.mulf %92, %100 : vector<4x64xf32>
    %109 = arith.addf %107, %108 : vector<4x64xf32>
    %110 = math.tanh %109 : vector<4x64xf32>
    %111 = arith.mulf %106, %110 : vector<4x64xf32>
    %112 = arith.truncf %79 : vector<4x64xf32> to vector<4x64xbf16>
    %c0_42 = arith.constant 0 : index
    %c0_43 = arith.constant 0 : index
    %113 = vector.load %arg3[%c0_42, %c0_43] : memref<64x256xbf16, #tpu.memory_space<vmem>>, vector<64x256xbf16>
    %cst_44 = arith.constant dense<0.000000e+00> : vector<4x256xf32>
    %114 = tpu.matmul %112, %113, %cst_44 {dimension_numbers = #tpu.dot_dimension_numbers<[1], [0], [0], [1], [0, 0, 1, 1], [], []>} : vector<4x64xbf16>, vector<64x256xbf16>, vector<4x256xf32> -> vector<4x256xf32>
    %115 = arith.addf %13, %114 : vector<4x256xf32>
    %116 = vector.extract_strided_slice %115 {offsets = [0, 0], sizes = [4, 64], strides = [1, 1]} : vector<4x256xf32> to vector<4x64xf32>
    %117 = arith.negf %116 : vector<4x64xf32>
    %118 = math.exp %117 : vector<4x64xf32>
    %cst_45 = arith.constant 1.000000e+00 : f32
    %119 = vector.broadcast %cst_45 : f32 to vector<4x64xf32>
    %120 = arith.addf %119, %118 : vector<4x64xf32>
    %121 = arith.divf %119, %120 : vector<4x64xf32>
    %122 = vector.extract_strided_slice %115 {offsets = [0, 64], sizes = [4, 64], strides = [1, 1]} : vector<4x256xf32> to vector<4x64xf32>
    %123 = arith.negf %122 : vector<4x64xf32>
    %124 = math.exp %123 : vector<4x64xf32>
    %cst_46 = arith.constant 1.000000e+00 : f32
    %125 = vector.broadcast %cst_46 : f32 to vector<4x64xf32>
    %126 = arith.addf %125, %124 : vector<4x64xf32>
    %127 = arith.divf %125, %126 : vector<4x64xf32>
    %128 = vector.extract_strided_slice %115 {offsets = [0, 128], sizes = [4, 64], strides = [1, 1]} : vector<4x256xf32> to vector<4x64xf32>
    %129 = math.tanh %128 : vector<4x64xf32>
    %130 = vector.extract_strided_slice %115 {offsets = [0, 192], sizes = [4, 64], strides = [1, 1]} : vector<4x256xf32> to vector<4x64xf32>
    %131 = arith.negf %130 : vector<4x64xf32>
    %132 = math.exp %131 : vector<4x64xf32>
    %cst_47 = arith.constant 1.000000e+00 : f32
    %133 = vector.broadcast %cst_47 : f32 to vector<4x64xf32>
    %134 = arith.addf %133, %132 : vector<4x64xf32>
    %135 = arith.divf %133, %134 : vector<4x64xf32>
    %136 = arith.mulf %127, %77 : vector<4x64xf32>
    %137 = arith.mulf %121, %129 : vector<4x64xf32>
    %138 = arith.addf %136, %137 : vector<4x64xf32>
    %139 = math.tanh %138 : vector<4x64xf32>
    %140 = arith.mulf %135, %139 : vector<4x64xf32>
    %141 = tpu.concatenate %140, %111 in 1 : vector<4x64xf32>, vector<4x64xf32> -> vector<4x128xf32>
    %142 = arith.truncf %141 : vector<4x128xf32> to vector<4x128xbf16>
    %c0_48 = arith.constant 0 : index
    %c0_49 = arith.constant 0 : index
    %143 = vector.load %arg5[%c0_48, %c0_49] : memref<128x256xbf16, #tpu.memory_space<vmem>>, vector<128x256xbf16>
    %cst_50 = arith.constant dense<0.000000e+00> : vector<4x256xf32>
    %144 = tpu.matmul %142, %143, %cst_50 {dimension_numbers = #tpu.dot_dimension_numbers<[1], [0], [0], [1], [0, 0, 1, 1], [], []>} : vector<4x128xbf16>, vector<128x256xbf16>, vector<4x256xf32> -> vector<4x256xf32>
    %c0_51 = arith.constant 0 : index
    %c0_52 = arith.constant 0 : index
    %145 = vector.load %arg6[%c0_51, %c0_52] : memref<1x256xf32, #tpu.memory_space<vmem>>, vector<1x256xf32>
    %146 = vector.broadcast %145 : vector<1x256xf32> to vector<4x256xf32>
    %147 = arith.addf %144, %146 : vector<4x256xf32>
    %148 = vector.extract_strided_slice %147 {offsets = [0, 0], sizes = [4, 64], strides = [1, 1]} : vector<4x256xf32> to vector<4x64xf32>
    %149 = arith.negf %148 : vector<4x64xf32>
    %150 = math.exp %149 : vector<4x64xf32>
    %cst_53 = arith.constant 1.000000e+00 : f32
    %151 = vector.broadcast %cst_53 : f32 to vector<4x64xf32>
    %152 = arith.addf %151, %150 : vector<4x64xf32>
    %153 = arith.divf %151, %152 : vector<4x64xf32>
    %154 = vector.extract_strided_slice %147 {offsets = [0, 64], sizes = [4, 64], strides = [1, 1]} : vector<4x256xf32> to vector<4x64xf32>
    %155 = arith.negf %154 : vector<4x64xf32>
    %156 = math.exp %155 : vector<4x64xf32>
    %cst_54 = arith.constant 1.000000e+00 : f32
    %157 = vector.broadcast %cst_54 : f32 to vector<4x64xf32>
    %158 = arith.addf %157, %156 : vector<4x64xf32>
    %159 = arith.divf %157, %158 : vector<4x64xf32>
    %160 = vector.extract_strided_slice %147 {offsets = [0, 128], sizes = [4, 64], strides = [1, 1]} : vector<4x256xf32> to vector<4x64xf32>
    %161 = math.tanh %160 : vector<4x64xf32>
    %162 = vector.extract_strided_slice %147 {offsets = [0, 192], sizes = [4, 64], strides = [1, 1]} : vector<4x256xf32> to vector<4x64xf32>
    %163 = arith.negf %162 : vector<4x64xf32>
    %164 = math.exp %163 : vector<4x64xf32>
    %cst_55 = arith.constant 1.000000e+00 : f32
    %165 = vector.broadcast %cst_55 : f32 to vector<4x64xf32>
    %166 = arith.addf %165, %164 : vector<4x64xf32>
    %167 = arith.divf %165, %166 : vector<4x64xf32>
    %168 = arith.mulf %159, %109 : vector<4x64xf32>
    %169 = arith.mulf %153, %161 : vector<4x64xf32>
    %170 = arith.addf %168, %169 : vector<4x64xf32>
    %171 = math.tanh %170 : vector<4x64xf32>
    %172 = arith.mulf %167, %171 : vector<4x64xf32>
    %173 = arith.truncf %140 : vector<4x64xf32> to vector<4x64xbf16>
    %c0_56 = arith.constant 0 : index
    %c0_57 = arith.constant 0 : index
    %174 = vector.load %arg3[%c0_56, %c0_57] : memref<64x256xbf16, #tpu.memory_space<vmem>>, vector<64x256xbf16>
    %cst_58 = arith.constant dense<0.000000e+00> : vector<4x256xf32>
    %175 = tpu.matmul %173, %174, %cst_58 {dimension_numbers = #tpu.dot_dimension_numbers<[1], [0], [0], [1], [0, 0, 1, 1], [], []>} : vector<4x64xbf16>, vector<64x256xbf16>, vector<4x256xf32> -> vector<4x256xf32>
    %176 = arith.addf %19, %175 : vector<4x256xf32>
    %177 = vector.extract_strided_slice %176 {offsets = [0, 0], sizes = [4, 64], strides = [1, 1]} : vector<4x256xf32> to vector<4x64xf32>
    %178 = arith.negf %177 : vector<4x64xf32>
    %179 = math.exp %178 : vector<4x64xf32>
    %cst_59 = arith.constant 1.000000e+00 : f32
    %180 = vector.broadcast %cst_59 : f32 to vector<4x64xf32>
    %181 = arith.addf %180, %179 : vector<4x64xf32>
    %182 = arith.divf %180, %181 : vector<4x64xf32>
    %183 = vector.extract_strided_slice %176 {offsets = [0, 64], sizes = [4, 64], strides = [1, 1]} : vector<4x256xf32> to vector<4x64xf32>
    %184 = arith.negf %183 : vector<4x64xf32>
    %185 = math.exp %184 : vector<4x64xf32>
    %cst_60 = arith.constant 1.000000e+00 : f32
    %186 = vector.broadcast %cst_60 : f32 to vector<4x64xf32>
    %187 = arith.addf %186, %185 : vector<4x64xf32>
    %188 = arith.divf %186, %187 : vector<4x64xf32>
    %189 = vector.extract_strided_slice %176 {offsets = [0, 128], sizes = [4, 64], strides = [1, 1]} : vector<4x256xf32> to vector<4x64xf32>
    %190 = math.tanh %189 : vector<4x64xf32>
    %191 = vector.extract_strided_slice %176 {offsets = [0, 192], sizes = [4, 64], strides = [1, 1]} : vector<4x256xf32> to vector<4x64xf32>
    %192 = arith.negf %191 : vector<4x64xf32>
    %193 = math.exp %192 : vector<4x64xf32>
    %cst_61 = arith.constant 1.000000e+00 : f32
    %194 = vector.broadcast %cst_61 : f32 to vector<4x64xf32>
    %195 = arith.addf %194, %193 : vector<4x64xf32>
    %196 = arith.divf %194, %195 : vector<4x64xf32>
    %197 = arith.mulf %188, %138 : vector<4x64xf32>
    %198 = arith.mulf %182, %190 : vector<4x64xf32>
    %199 = arith.addf %197, %198 : vector<4x64xf32>
    %200 = math.tanh %199 : vector<4x64xf32>
    %201 = arith.mulf %196, %200 : vector<4x64xf32>
    %202 = tpu.concatenate %201, %172 in 1 : vector<4x64xf32>, vector<4x64xf32> -> vector<4x128xf32>
    %203 = arith.truncf %202 : vector<4x128xf32> to vector<4x128xbf16>
    %c0_62 = arith.constant 0 : index
    %c0_63 = arith.constant 0 : index
    %204 = vector.load %arg5[%c0_62, %c0_63] : memref<128x256xbf16, #tpu.memory_space<vmem>>, vector<128x256xbf16>
    %cst_64 = arith.constant dense<0.000000e+00> : vector<4x256xf32>
    %205 = tpu.matmul %203, %204, %cst_64 {dimension_numbers = #tpu.dot_dimension_numbers<[1], [0], [0], [1], [0, 0, 1, 1], [], []>} : vector<4x128xbf16>, vector<128x256xbf16>, vector<4x256xf32> -> vector<4x256xf32>
    %c0_65 = arith.constant 0 : index
    %c0_66 = arith.constant 0 : index
    %206 = vector.load %arg6[%c0_65, %c0_66] : memref<1x256xf32, #tpu.memory_space<vmem>>, vector<1x256xf32>
    %207 = vector.broadcast %206 : vector<1x256xf32> to vector<4x256xf32>
    %208 = arith.addf %205, %207 : vector<4x256xf32>
    %209 = vector.extract_strided_slice %208 {offsets = [0, 0], sizes = [4, 64], strides = [1, 1]} : vector<4x256xf32> to vector<4x64xf32>
    %210 = arith.negf %209 : vector<4x64xf32>
    %211 = math.exp %210 : vector<4x64xf32>
    %cst_67 = arith.constant 1.000000e+00 : f32
    %212 = vector.broadcast %cst_67 : f32 to vector<4x64xf32>
    %213 = arith.addf %212, %211 : vector<4x64xf32>
    %214 = arith.divf %212, %213 : vector<4x64xf32>
    %215 = vector.extract_strided_slice %208 {offsets = [0, 64], sizes = [4, 64], strides = [1, 1]} : vector<4x256xf32> to vector<4x64xf32>
    %216 = arith.negf %215 : vector<4x64xf32>
    %217 = math.exp %216 : vector<4x64xf32>
    %cst_68 = arith.constant 1.000000e+00 : f32
    %218 = vector.broadcast %cst_68 : f32 to vector<4x64xf32>
    %219 = arith.addf %218, %217 : vector<4x64xf32>
    %220 = arith.divf %218, %219 : vector<4x64xf32>
    %221 = vector.extract_strided_slice %208 {offsets = [0, 128], sizes = [4, 64], strides = [1, 1]} : vector<4x256xf32> to vector<4x64xf32>
    %222 = math.tanh %221 : vector<4x64xf32>
    %223 = vector.extract_strided_slice %208 {offsets = [0, 192], sizes = [4, 64], strides = [1, 1]} : vector<4x256xf32> to vector<4x64xf32>
    %224 = arith.negf %223 : vector<4x64xf32>
    %225 = math.exp %224 : vector<4x64xf32>
    %cst_69 = arith.constant 1.000000e+00 : f32
    %226 = vector.broadcast %cst_69 : f32 to vector<4x64xf32>
    %227 = arith.addf %226, %225 : vector<4x64xf32>
    %228 = arith.divf %226, %227 : vector<4x64xf32>
    %229 = arith.mulf %220, %170 : vector<4x64xf32>
    %230 = arith.mulf %214, %222 : vector<4x64xf32>
    %231 = arith.addf %229, %230 : vector<4x64xf32>
    %232 = math.tanh %231 : vector<4x64xf32>
    %233 = arith.mulf %228, %232 : vector<4x64xf32>
    %234 = arith.truncf %201 : vector<4x64xf32> to vector<4x64xbf16>
    %c0_70 = arith.constant 0 : index
    %c0_71 = arith.constant 0 : index
    %235 = vector.load %arg3[%c0_70, %c0_71] : memref<64x256xbf16, #tpu.memory_space<vmem>>, vector<64x256xbf16>
    %cst_72 = arith.constant dense<0.000000e+00> : vector<4x256xf32>
    %236 = tpu.matmul %234, %235, %cst_72 {dimension_numbers = #tpu.dot_dimension_numbers<[1], [0], [0], [1], [0, 0, 1, 1], [], []>} : vector<4x64xbf16>, vector<64x256xbf16>, vector<4x256xf32> -> vector<4x256xf32>
    %237 = arith.addf %25, %236 : vector<4x256xf32>
    %238 = vector.extract_strided_slice %237 {offsets = [0, 0], sizes = [4, 64], strides = [1, 1]} : vector<4x256xf32> to vector<4x64xf32>
    %239 = arith.negf %238 : vector<4x64xf32>
    %240 = math.exp %239 : vector<4x64xf32>
    %cst_73 = arith.constant 1.000000e+00 : f32
    %241 = vector.broadcast %cst_73 : f32 to vector<4x64xf32>
    %242 = arith.addf %241, %240 : vector<4x64xf32>
    %243 = arith.divf %241, %242 : vector<4x64xf32>
    %244 = vector.extract_strided_slice %237 {offsets = [0, 64], sizes = [4, 64], strides = [1, 1]} : vector<4x256xf32> to vector<4x64xf32>
    %245 = arith.negf %244 : vector<4x64xf32>
    %246 = math.exp %245 : vector<4x64xf32>
    %cst_74 = arith.constant 1.000000e+00 : f32
    %247 = vector.broadcast %cst_74 : f32 to vector<4x64xf32>
    %248 = arith.addf %247, %246 : vector<4x64xf32>
    %249 = arith.divf %247, %248 : vector<4x64xf32>
    %250 = vector.extract_strided_slice %237 {offsets = [0, 128], sizes = [4, 64], strides = [1, 1]} : vector<4x256xf32> to vector<4x64xf32>
    %251 = math.tanh %250 : vector<4x64xf32>
    %252 = vector.extract_strided_slice %237 {offsets = [0, 192], sizes = [4, 64], strides = [1, 1]} : vector<4x256xf32> to vector<4x64xf32>
    %253 = arith.negf %252 : vector<4x64xf32>
    %254 = math.exp %253 : vector<4x64xf32>
    %cst_75 = arith.constant 1.000000e+00 : f32
    %255 = vector.broadcast %cst_75 : f32 to vector<4x64xf32>
    %256 = arith.addf %255, %254 : vector<4x64xf32>
    %257 = arith.divf %255, %256 : vector<4x64xf32>
    %258 = arith.mulf %249, %199 : vector<4x64xf32>
    %259 = arith.mulf %243, %251 : vector<4x64xf32>
    %260 = arith.addf %258, %259 : vector<4x64xf32>
    %261 = math.tanh %260 : vector<4x64xf32>
    %262 = arith.mulf %257, %261 : vector<4x64xf32>
    %263 = tpu.concatenate %262, %233 in 1 : vector<4x64xf32>, vector<4x64xf32> -> vector<4x128xf32>
    %264 = arith.truncf %263 : vector<4x128xf32> to vector<4x128xbf16>
    %c0_76 = arith.constant 0 : index
    %c0_77 = arith.constant 0 : index
    %265 = vector.load %arg5[%c0_76, %c0_77] : memref<128x256xbf16, #tpu.memory_space<vmem>>, vector<128x256xbf16>
    %cst_78 = arith.constant dense<0.000000e+00> : vector<4x256xf32>
    %266 = tpu.matmul %264, %265, %cst_78 {dimension_numbers = #tpu.dot_dimension_numbers<[1], [0], [0], [1], [0, 0, 1, 1], [], []>} : vector<4x128xbf16>, vector<128x256xbf16>, vector<4x256xf32> -> vector<4x256xf32>
    %c0_79 = arith.constant 0 : index
    %c0_80 = arith.constant 0 : index
    %267 = vector.load %arg6[%c0_79, %c0_80] : memref<1x256xf32, #tpu.memory_space<vmem>>, vector<1x256xf32>
    %268 = vector.broadcast %267 : vector<1x256xf32> to vector<4x256xf32>
    %269 = arith.addf %266, %268 : vector<4x256xf32>
    %270 = vector.extract_strided_slice %269 {offsets = [0, 0], sizes = [4, 64], strides = [1, 1]} : vector<4x256xf32> to vector<4x64xf32>
    %271 = arith.negf %270 : vector<4x64xf32>
    %272 = math.exp %271 : vector<4x64xf32>
    %cst_81 = arith.constant 1.000000e+00 : f32
    %273 = vector.broadcast %cst_81 : f32 to vector<4x64xf32>
    %274 = arith.addf %273, %272 : vector<4x64xf32>
    %275 = arith.divf %273, %274 : vector<4x64xf32>
    %276 = vector.extract_strided_slice %269 {offsets = [0, 64], sizes = [4, 64], strides = [1, 1]} : vector<4x256xf32> to vector<4x64xf32>
    %277 = arith.negf %276 : vector<4x64xf32>
    %278 = math.exp %277 : vector<4x64xf32>
    %cst_82 = arith.constant 1.000000e+00 : f32
    %279 = vector.broadcast %cst_82 : f32 to vector<4x64xf32>
    %280 = arith.addf %279, %278 : vector<4x64xf32>
    %281 = arith.divf %279, %280 : vector<4x64xf32>
    %282 = vector.extract_strided_slice %269 {offsets = [0, 128], sizes = [4, 64], strides = [1, 1]} : vector<4x256xf32> to vector<4x64xf32>
    %283 = math.tanh %282 : vector<4x64xf32>
    %284 = vector.extract_strided_slice %269 {offsets = [0, 192], sizes = [4, 64], strides = [1, 1]} : vector<4x256xf32> to vector<4x64xf32>
    %285 = arith.negf %284 : vector<4x64xf32>
    %286 = math.exp %285 : vector<4x64xf32>
    %cst_83 = arith.constant 1.000000e+00 : f32
    %287 = vector.broadcast %cst_83 : f32 to vector<4x64xf32>
    %288 = arith.addf %287, %286 : vector<4x64xf32>
    %289 = arith.divf %287, %288 : vector<4x64xf32>
    %290 = arith.mulf %281, %231 : vector<4x64xf32>
    %291 = arith.mulf %275, %283 : vector<4x64xf32>
    %292 = arith.addf %290, %291 : vector<4x64xf32>
    %293 = math.tanh %292 : vector<4x64xf32>
    %294 = arith.mulf %289, %293 : vector<4x64xf32>
    %295 = arith.truncf %262 : vector<4x64xf32> to vector<4x64xbf16>
    %c0_84 = arith.constant 0 : index
    %c0_85 = arith.constant 0 : index
    %296 = vector.load %arg3[%c0_84, %c0_85] : memref<64x256xbf16, #tpu.memory_space<vmem>>, vector<64x256xbf16>
    %cst_86 = arith.constant dense<0.000000e+00> : vector<4x256xf32>
    %297 = tpu.matmul %295, %296, %cst_86 {dimension_numbers = #tpu.dot_dimension_numbers<[1], [0], [0], [1], [0, 0, 1, 1], [], []>} : vector<4x64xbf16>, vector<64x256xbf16>, vector<4x256xf32> -> vector<4x256xf32>
    %298 = arith.addf %31, %297 : vector<4x256xf32>
    %299 = vector.extract_strided_slice %298 {offsets = [0, 0], sizes = [4, 64], strides = [1, 1]} : vector<4x256xf32> to vector<4x64xf32>
    %300 = arith.negf %299 : vector<4x64xf32>
    %301 = math.exp %300 : vector<4x64xf32>
    %cst_87 = arith.constant 1.000000e+00 : f32
    %302 = vector.broadcast %cst_87 : f32 to vector<4x64xf32>
    %303 = arith.addf %302, %301 : vector<4x64xf32>
    %304 = arith.divf %302, %303 : vector<4x64xf32>
    %305 = vector.extract_strided_slice %298 {offsets = [0, 64], sizes = [4, 64], strides = [1, 1]} : vector<4x256xf32> to vector<4x64xf32>
    %306 = arith.negf %305 : vector<4x64xf32>
    %307 = math.exp %306 : vector<4x64xf32>
    %cst_88 = arith.constant 1.000000e+00 : f32
    %308 = vector.broadcast %cst_88 : f32 to vector<4x64xf32>
    %309 = arith.addf %308, %307 : vector<4x64xf32>
    %310 = arith.divf %308, %309 : vector<4x64xf32>
    %311 = vector.extract_strided_slice %298 {offsets = [0, 128], sizes = [4, 64], strides = [1, 1]} : vector<4x256xf32> to vector<4x64xf32>
    %312 = math.tanh %311 : vector<4x64xf32>
    %313 = vector.extract_strided_slice %298 {offsets = [0, 192], sizes = [4, 64], strides = [1, 1]} : vector<4x256xf32> to vector<4x64xf32>
    %314 = arith.negf %313 : vector<4x64xf32>
    %315 = math.exp %314 : vector<4x64xf32>
    %cst_89 = arith.constant 1.000000e+00 : f32
    %316 = vector.broadcast %cst_89 : f32 to vector<4x64xf32>
    %317 = arith.addf %316, %315 : vector<4x64xf32>
    %318 = arith.divf %316, %317 : vector<4x64xf32>
    %319 = arith.mulf %310, %260 : vector<4x64xf32>
    %320 = arith.mulf %304, %312 : vector<4x64xf32>
    %321 = arith.addf %319, %320 : vector<4x64xf32>
    %322 = math.tanh %321 : vector<4x64xf32>
    %323 = arith.mulf %318, %322 : vector<4x64xf32>
    %324 = tpu.concatenate %323, %294 in 1 : vector<4x64xf32>, vector<4x64xf32> -> vector<4x128xf32>
    %325 = arith.truncf %324 : vector<4x128xf32> to vector<4x128xbf16>
    %c0_90 = arith.constant 0 : index
    %c0_91 = arith.constant 0 : index
    %326 = vector.load %arg5[%c0_90, %c0_91] : memref<128x256xbf16, #tpu.memory_space<vmem>>, vector<128x256xbf16>
    %cst_92 = arith.constant dense<0.000000e+00> : vector<4x256xf32>
    %327 = tpu.matmul %325, %326, %cst_92 {dimension_numbers = #tpu.dot_dimension_numbers<[1], [0], [0], [1], [0, 0, 1, 1], [], []>} : vector<4x128xbf16>, vector<128x256xbf16>, vector<4x256xf32> -> vector<4x256xf32>
    %c0_93 = arith.constant 0 : index
    %c0_94 = arith.constant 0 : index
    %328 = vector.load %arg6[%c0_93, %c0_94] : memref<1x256xf32, #tpu.memory_space<vmem>>, vector<1x256xf32>
    %329 = vector.broadcast %328 : vector<1x256xf32> to vector<4x256xf32>
    %330 = arith.addf %327, %329 : vector<4x256xf32>
    %331 = vector.extract_strided_slice %330 {offsets = [0, 0], sizes = [4, 64], strides = [1, 1]} : vector<4x256xf32> to vector<4x64xf32>
    %332 = arith.negf %331 : vector<4x64xf32>
    %333 = math.exp %332 : vector<4x64xf32>
    %cst_95 = arith.constant 1.000000e+00 : f32
    %334 = vector.broadcast %cst_95 : f32 to vector<4x64xf32>
    %335 = arith.addf %334, %333 : vector<4x64xf32>
    %336 = arith.divf %334, %335 : vector<4x64xf32>
    %337 = vector.extract_strided_slice %330 {offsets = [0, 64], sizes = [4, 64], strides = [1, 1]} : vector<4x256xf32> to vector<4x64xf32>
    %338 = arith.negf %337 : vector<4x64xf32>
    %339 = math.exp %338 : vector<4x64xf32>
    %cst_96 = arith.constant 1.000000e+00 : f32
    %340 = vector.broadcast %cst_96 : f32 to vector<4x64xf32>
    %341 = arith.addf %340, %339 : vector<4x64xf32>
    %342 = arith.divf %340, %341 : vector<4x64xf32>
    %343 = vector.extract_strided_slice %330 {offsets = [0, 128], sizes = [4, 64], strides = [1, 1]} : vector<4x256xf32> to vector<4x64xf32>
    %344 = math.tanh %343 : vector<4x64xf32>
    %345 = vector.extract_strided_slice %330 {offsets = [0, 192], sizes = [4, 64], strides = [1, 1]} : vector<4x256xf32> to vector<4x64xf32>
    %346 = arith.negf %345 : vector<4x64xf32>
    %347 = math.exp %346 : vector<4x64xf32>
    %cst_97 = arith.constant 1.000000e+00 : f32
    %348 = vector.broadcast %cst_97 : f32 to vector<4x64xf32>
    %349 = arith.addf %348, %347 : vector<4x64xf32>
    %350 = arith.divf %348, %349 : vector<4x64xf32>
    %351 = arith.mulf %342, %292 : vector<4x64xf32>
    %352 = arith.mulf %336, %344 : vector<4x64xf32>
    %353 = arith.addf %351, %352 : vector<4x64xf32>
    %354 = math.tanh %353 : vector<4x64xf32>
    %355 = arith.mulf %350, %354 : vector<4x64xf32>
    %356 = arith.truncf %323 : vector<4x64xf32> to vector<4x64xbf16>
    %c0_98 = arith.constant 0 : index
    %c0_99 = arith.constant 0 : index
    %357 = vector.load %arg3[%c0_98, %c0_99] : memref<64x256xbf16, #tpu.memory_space<vmem>>, vector<64x256xbf16>
    %cst_100 = arith.constant dense<0.000000e+00> : vector<4x256xf32>
    %358 = tpu.matmul %356, %357, %cst_100 {dimension_numbers = #tpu.dot_dimension_numbers<[1], [0], [0], [1], [0, 0, 1, 1], [], []>} : vector<4x64xbf16>, vector<64x256xbf16>, vector<4x256xf32> -> vector<4x256xf32>
    %359 = arith.addf %37, %358 : vector<4x256xf32>
    %360 = vector.extract_strided_slice %359 {offsets = [0, 0], sizes = [4, 64], strides = [1, 1]} : vector<4x256xf32> to vector<4x64xf32>
    %361 = arith.negf %360 : vector<4x64xf32>
    %362 = math.exp %361 : vector<4x64xf32>
    %cst_101 = arith.constant 1.000000e+00 : f32
    %363 = vector.broadcast %cst_101 : f32 to vector<4x64xf32>
    %364 = arith.addf %363, %362 : vector<4x64xf32>
    %365 = arith.divf %363, %364 : vector<4x64xf32>
    %366 = vector.extract_strided_slice %359 {offsets = [0, 64], sizes = [4, 64], strides = [1, 1]} : vector<4x256xf32> to vector<4x64xf32>
    %367 = arith.negf %366 : vector<4x64xf32>
    %368 = math.exp %367 : vector<4x64xf32>
    %cst_102 = arith.constant 1.000000e+00 : f32
    %369 = vector.broadcast %cst_102 : f32 to vector<4x64xf32>
    %370 = arith.addf %369, %368 : vector<4x64xf32>
    %371 = arith.divf %369, %370 : vector<4x64xf32>
    %372 = vector.extract_strided_slice %359 {offsets = [0, 128], sizes = [4, 64], strides = [1, 1]} : vector<4x256xf32> to vector<4x64xf32>
    %373 = math.tanh %372 : vector<4x64xf32>
    %374 = vector.extract_strided_slice %359 {offsets = [0, 192], sizes = [4, 64], strides = [1, 1]} : vector<4x256xf32> to vector<4x64xf32>
    %375 = arith.negf %374 : vector<4x64xf32>
    %376 = math.exp %375 : vector<4x64xf32>
    %cst_103 = arith.constant 1.000000e+00 : f32
    %377 = vector.broadcast %cst_103 : f32 to vector<4x64xf32>
    %378 = arith.addf %377, %376 : vector<4x64xf32>
    %379 = arith.divf %377, %378 : vector<4x64xf32>
    %380 = arith.mulf %371, %321 : vector<4x64xf32>
    %381 = arith.mulf %365, %373 : vector<4x64xf32>
    %382 = arith.addf %380, %381 : vector<4x64xf32>
    %383 = math.tanh %382 : vector<4x64xf32>
    %384 = arith.mulf %379, %383 : vector<4x64xf32>
    %385 = tpu.concatenate %384, %355 in 1 : vector<4x64xf32>, vector<4x64xf32> -> vector<4x128xf32>
    %386 = arith.truncf %385 : vector<4x128xf32> to vector<4x128xbf16>
    %c0_104 = arith.constant 0 : index
    %c0_105 = arith.constant 0 : index
    %387 = vector.load %arg5[%c0_104, %c0_105] : memref<128x256xbf16, #tpu.memory_space<vmem>>, vector<128x256xbf16>
    %cst_106 = arith.constant dense<0.000000e+00> : vector<4x256xf32>
    %388 = tpu.matmul %386, %387, %cst_106 {dimension_numbers = #tpu.dot_dimension_numbers<[1], [0], [0], [1], [0, 0, 1, 1], [], []>} : vector<4x128xbf16>, vector<128x256xbf16>, vector<4x256xf32> -> vector<4x256xf32>
    %c0_107 = arith.constant 0 : index
    %c0_108 = arith.constant 0 : index
    %389 = vector.load %arg6[%c0_107, %c0_108] : memref<1x256xf32, #tpu.memory_space<vmem>>, vector<1x256xf32>
    %390 = vector.broadcast %389 : vector<1x256xf32> to vector<4x256xf32>
    %391 = arith.addf %388, %390 : vector<4x256xf32>
    %392 = vector.extract_strided_slice %391 {offsets = [0, 0], sizes = [4, 64], strides = [1, 1]} : vector<4x256xf32> to vector<4x64xf32>
    %393 = arith.negf %392 : vector<4x64xf32>
    %394 = math.exp %393 : vector<4x64xf32>
    %cst_109 = arith.constant 1.000000e+00 : f32
    %395 = vector.broadcast %cst_109 : f32 to vector<4x64xf32>
    %396 = arith.addf %395, %394 : vector<4x64xf32>
    %397 = arith.divf %395, %396 : vector<4x64xf32>
    %398 = vector.extract_strided_slice %391 {offsets = [0, 64], sizes = [4, 64], strides = [1, 1]} : vector<4x256xf32> to vector<4x64xf32>
    %399 = arith.negf %398 : vector<4x64xf32>
    %400 = math.exp %399 : vector<4x64xf32>
    %cst_110 = arith.constant 1.000000e+00 : f32
    %401 = vector.broadcast %cst_110 : f32 to vector<4x64xf32>
    %402 = arith.addf %401, %400 : vector<4x64xf32>
    %403 = arith.divf %401, %402 : vector<4x64xf32>
    %404 = vector.extract_strided_slice %391 {offsets = [0, 128], sizes = [4, 64], strides = [1, 1]} : vector<4x256xf32> to vector<4x64xf32>
    %405 = math.tanh %404 : vector<4x64xf32>
    %406 = vector.extract_strided_slice %391 {offsets = [0, 192], sizes = [4, 64], strides = [1, 1]} : vector<4x256xf32> to vector<4x64xf32>
    %407 = arith.negf %406 : vector<4x64xf32>
    %408 = math.exp %407 : vector<4x64xf32>
    %cst_111 = arith.constant 1.000000e+00 : f32
    %409 = vector.broadcast %cst_111 : f32 to vector<4x64xf32>
    %410 = arith.addf %409, %408 : vector<4x64xf32>
    %411 = arith.divf %409, %410 : vector<4x64xf32>
    %412 = arith.mulf %403, %353 : vector<4x64xf32>
    %413 = arith.mulf %397, %405 : vector<4x64xf32>
    %414 = arith.addf %412, %413 : vector<4x64xf32>
    %415 = math.tanh %414 : vector<4x64xf32>
    %416 = arith.mulf %411, %415 : vector<4x64xf32>
    %417 = arith.truncf %384 : vector<4x64xf32> to vector<4x64xbf16>
    %c0_112 = arith.constant 0 : index
    %c0_113 = arith.constant 0 : index
    %418 = vector.load %arg3[%c0_112, %c0_113] : memref<64x256xbf16, #tpu.memory_space<vmem>>, vector<64x256xbf16>
    %cst_114 = arith.constant dense<0.000000e+00> : vector<4x256xf32>
    %419 = tpu.matmul %417, %418, %cst_114 {dimension_numbers = #tpu.dot_dimension_numbers<[1], [0], [0], [1], [0, 0, 1, 1], [], []>} : vector<4x64xbf16>, vector<64x256xbf16>, vector<4x256xf32> -> vector<4x256xf32>
    %420 = arith.addf %43, %419 : vector<4x256xf32>
    %421 = vector.extract_strided_slice %420 {offsets = [0, 0], sizes = [4, 64], strides = [1, 1]} : vector<4x256xf32> to vector<4x64xf32>
    %422 = arith.negf %421 : vector<4x64xf32>
    %423 = math.exp %422 : vector<4x64xf32>
    %cst_115 = arith.constant 1.000000e+00 : f32
    %424 = vector.broadcast %cst_115 : f32 to vector<4x64xf32>
    %425 = arith.addf %424, %423 : vector<4x64xf32>
    %426 = arith.divf %424, %425 : vector<4x64xf32>
    %427 = vector.extract_strided_slice %420 {offsets = [0, 64], sizes = [4, 64], strides = [1, 1]} : vector<4x256xf32> to vector<4x64xf32>
    %428 = arith.negf %427 : vector<4x64xf32>
    %429 = math.exp %428 : vector<4x64xf32>
    %cst_116 = arith.constant 1.000000e+00 : f32
    %430 = vector.broadcast %cst_116 : f32 to vector<4x64xf32>
    %431 = arith.addf %430, %429 : vector<4x64xf32>
    %432 = arith.divf %430, %431 : vector<4x64xf32>
    %433 = vector.extract_strided_slice %420 {offsets = [0, 128], sizes = [4, 64], strides = [1, 1]} : vector<4x256xf32> to vector<4x64xf32>
    %434 = math.tanh %433 : vector<4x64xf32>
    %435 = vector.extract_strided_slice %420 {offsets = [0, 192], sizes = [4, 64], strides = [1, 1]} : vector<4x256xf32> to vector<4x64xf32>
    %436 = arith.negf %435 : vector<4x64xf32>
    %437 = math.exp %436 : vector<4x64xf32>
    %cst_117 = arith.constant 1.000000e+00 : f32
    %438 = vector.broadcast %cst_117 : f32 to vector<4x64xf32>
    %439 = arith.addf %438, %437 : vector<4x64xf32>
    %440 = arith.divf %438, %439 : vector<4x64xf32>
    %441 = arith.mulf %432, %382 : vector<4x64xf32>
    %442 = arith.mulf %426, %434 : vector<4x64xf32>
    %443 = arith.addf %441, %442 : vector<4x64xf32>
    %444 = math.tanh %443 : vector<4x64xf32>
    %445 = arith.mulf %440, %444 : vector<4x64xf32>
    %446 = tpu.concatenate %445, %416 in 1 : vector<4x64xf32>, vector<4x64xf32> -> vector<4x128xf32>
    %447 = arith.truncf %446 : vector<4x128xf32> to vector<4x128xbf16>
    %c0_118 = arith.constant 0 : index
    %c0_119 = arith.constant 0 : index
    %448 = vector.load %arg5[%c0_118, %c0_119] : memref<128x256xbf16, #tpu.memory_space<vmem>>, vector<128x256xbf16>
    %cst_120 = arith.constant dense<0.000000e+00> : vector<4x256xf32>
    %449 = tpu.matmul %447, %448, %cst_120 {dimension_numbers = #tpu.dot_dimension_numbers<[1], [0], [0], [1], [0, 0, 1, 1], [], []>} : vector<4x128xbf16>, vector<128x256xbf16>, vector<4x256xf32> -> vector<4x256xf32>
    %c0_121 = arith.constant 0 : index
    %c0_122 = arith.constant 0 : index
    %450 = vector.load %arg6[%c0_121, %c0_122] : memref<1x256xf32, #tpu.memory_space<vmem>>, vector<1x256xf32>
    %451 = vector.broadcast %450 : vector<1x256xf32> to vector<4x256xf32>
    %452 = arith.addf %449, %451 : vector<4x256xf32>
    %453 = vector.extract_strided_slice %452 {offsets = [0, 0], sizes = [4, 64], strides = [1, 1]} : vector<4x256xf32> to vector<4x64xf32>
    %454 = arith.negf %453 : vector<4x64xf32>
    %455 = math.exp %454 : vector<4x64xf32>
    %cst_123 = arith.constant 1.000000e+00 : f32
    %456 = vector.broadcast %cst_123 : f32 to vector<4x64xf32>
    %457 = arith.addf %456, %455 : vector<4x64xf32>
    %458 = arith.divf %456, %457 : vector<4x64xf32>
    %459 = vector.extract_strided_slice %452 {offsets = [0, 64], sizes = [4, 64], strides = [1, 1]} : vector<4x256xf32> to vector<4x64xf32>
    %460 = arith.negf %459 : vector<4x64xf32>
    %461 = math.exp %460 : vector<4x64xf32>
    %cst_124 = arith.constant 1.000000e+00 : f32
    %462 = vector.broadcast %cst_124 : f32 to vector<4x64xf32>
    %463 = arith.addf %462, %461 : vector<4x64xf32>
    %464 = arith.divf %462, %463 : vector<4x64xf32>
    %465 = vector.extract_strided_slice %452 {offsets = [0, 128], sizes = [4, 64], strides = [1, 1]} : vector<4x256xf32> to vector<4x64xf32>
    %466 = math.tanh %465 : vector<4x64xf32>
    %467 = vector.extract_strided_slice %452 {offsets = [0, 192], sizes = [4, 64], strides = [1, 1]} : vector<4x256xf32> to vector<4x64xf32>
    %468 = arith.negf %467 : vector<4x64xf32>
    %469 = math.exp %468 : vector<4x64xf32>
    %cst_125 = arith.constant 1.000000e+00 : f32
    %470 = vector.broadcast %cst_125 : f32 to vector<4x64xf32>
    %471 = arith.addf %470, %469 : vector<4x64xf32>
    %472 = arith.divf %470, %471 : vector<4x64xf32>
    %473 = arith.mulf %464, %414 : vector<4x64xf32>
    %474 = arith.mulf %458, %466 : vector<4x64xf32>
    %475 = arith.addf %473, %474 : vector<4x64xf32>
    %476 = math.tanh %475 : vector<4x64xf32>
    %477 = arith.mulf %472, %476 : vector<4x64xf32>
    %478 = arith.truncf %445 : vector<4x64xf32> to vector<4x64xbf16>
    %c0_126 = arith.constant 0 : index
    %c0_127 = arith.constant 0 : index
    %479 = vector.load %arg3[%c0_126, %c0_127] : memref<64x256xbf16, #tpu.memory_space<vmem>>, vector<64x256xbf16>
    %cst_128 = arith.constant dense<0.000000e+00> : vector<4x256xf32>
    %480 = tpu.matmul %478, %479, %cst_128 {dimension_numbers = #tpu.dot_dimension_numbers<[1], [0], [0], [1], [0, 0, 1, 1], [], []>} : vector<4x64xbf16>, vector<64x256xbf16>, vector<4x256xf32> -> vector<4x256xf32>
    %481 = arith.addf %49, %480 : vector<4x256xf32>
    %482 = vector.extract_strided_slice %481 {offsets = [0, 0], sizes = [4, 64], strides = [1, 1]} : vector<4x256xf32> to vector<4x64xf32>
    %483 = arith.negf %482 : vector<4x64xf32>
    %484 = math.exp %483 : vector<4x64xf32>
    %cst_129 = arith.constant 1.000000e+00 : f32
    %485 = vector.broadcast %cst_129 : f32 to vector<4x64xf32>
    %486 = arith.addf %485, %484 : vector<4x64xf32>
    %487 = arith.divf %485, %486 : vector<4x64xf32>
    %488 = vector.extract_strided_slice %481 {offsets = [0, 64], sizes = [4, 64], strides = [1, 1]} : vector<4x256xf32> to vector<4x64xf32>
    %489 = arith.negf %488 : vector<4x64xf32>
    %490 = math.exp %489 : vector<4x64xf32>
    %cst_130 = arith.constant 1.000000e+00 : f32
    %491 = vector.broadcast %cst_130 : f32 to vector<4x64xf32>
    %492 = arith.addf %491, %490 : vector<4x64xf32>
    %493 = arith.divf %491, %492 : vector<4x64xf32>
    %494 = vector.extract_strided_slice %481 {offsets = [0, 128], sizes = [4, 64], strides = [1, 1]} : vector<4x256xf32> to vector<4x64xf32>
    %495 = math.tanh %494 : vector<4x64xf32>
    %496 = vector.extract_strided_slice %481 {offsets = [0, 192], sizes = [4, 64], strides = [1, 1]} : vector<4x256xf32> to vector<4x64xf32>
    %497 = arith.negf %496 : vector<4x64xf32>
    %498 = math.exp %497 : vector<4x64xf32>
    %cst_131 = arith.constant 1.000000e+00 : f32
    %499 = vector.broadcast %cst_131 : f32 to vector<4x64xf32>
    %500 = arith.addf %499, %498 : vector<4x64xf32>
    %501 = arith.divf %499, %500 : vector<4x64xf32>
    %502 = arith.mulf %493, %443 : vector<4x64xf32>
    %503 = arith.mulf %487, %495 : vector<4x64xf32>
    %504 = arith.addf %502, %503 : vector<4x64xf32>
    %505 = math.tanh %504 : vector<4x64xf32>
    %506 = arith.mulf %501, %505 : vector<4x64xf32>
    %507 = tpu.concatenate %506, %477 in 1 : vector<4x64xf32>, vector<4x64xf32> -> vector<4x128xf32>
    %508 = arith.truncf %507 : vector<4x128xf32> to vector<4x128xbf16>
    %c0_132 = arith.constant 0 : index
    %c0_133 = arith.constant 0 : index
    %509 = vector.load %arg5[%c0_132, %c0_133] : memref<128x256xbf16, #tpu.memory_space<vmem>>, vector<128x256xbf16>
    %cst_134 = arith.constant dense<0.000000e+00> : vector<4x256xf32>
    %510 = tpu.matmul %508, %509, %cst_134 {dimension_numbers = #tpu.dot_dimension_numbers<[1], [0], [0], [1], [0, 0, 1, 1], [], []>} : vector<4x128xbf16>, vector<128x256xbf16>, vector<4x256xf32> -> vector<4x256xf32>
    %c0_135 = arith.constant 0 : index
    %c0_136 = arith.constant 0 : index
    %511 = vector.load %arg6[%c0_135, %c0_136] : memref<1x256xf32, #tpu.memory_space<vmem>>, vector<1x256xf32>
    %512 = vector.broadcast %511 : vector<1x256xf32> to vector<4x256xf32>
    %513 = arith.addf %510, %512 : vector<4x256xf32>
    %514 = vector.extract_strided_slice %513 {offsets = [0, 0], sizes = [4, 64], strides = [1, 1]} : vector<4x256xf32> to vector<4x64xf32>
    %515 = arith.negf %514 : vector<4x64xf32>
    %516 = math.exp %515 : vector<4x64xf32>
    %cst_137 = arith.constant 1.000000e+00 : f32
    %517 = vector.broadcast %cst_137 : f32 to vector<4x64xf32>
    %518 = arith.addf %517, %516 : vector<4x64xf32>
    %519 = arith.divf %517, %518 : vector<4x64xf32>
    %520 = vector.extract_strided_slice %513 {offsets = [0, 64], sizes = [4, 64], strides = [1, 1]} : vector<4x256xf32> to vector<4x64xf32>
    %521 = arith.negf %520 : vector<4x64xf32>
    %522 = math.exp %521 : vector<4x64xf32>
    %cst_138 = arith.constant 1.000000e+00 : f32
    %523 = vector.broadcast %cst_138 : f32 to vector<4x64xf32>
    %524 = arith.addf %523, %522 : vector<4x64xf32>
    %525 = arith.divf %523, %524 : vector<4x64xf32>
    %526 = vector.extract_strided_slice %513 {offsets = [0, 128], sizes = [4, 64], strides = [1, 1]} : vector<4x256xf32> to vector<4x64xf32>
    %527 = math.tanh %526 : vector<4x64xf32>
    %528 = vector.extract_strided_slice %513 {offsets = [0, 192], sizes = [4, 64], strides = [1, 1]} : vector<4x256xf32> to vector<4x64xf32>
    %529 = arith.negf %528 : vector<4x64xf32>
    %530 = math.exp %529 : vector<4x64xf32>
    %cst_139 = arith.constant 1.000000e+00 : f32
    %531 = vector.broadcast %cst_139 : f32 to vector<4x64xf32>
    %532 = arith.addf %531, %530 : vector<4x64xf32>
    %533 = arith.divf %531, %532 : vector<4x64xf32>
    %534 = arith.mulf %525, %475 : vector<4x64xf32>
    %535 = arith.mulf %519, %527 : vector<4x64xf32>
    %536 = arith.addf %534, %535 : vector<4x64xf32>
    %537 = math.tanh %536 : vector<4x64xf32>
    %538 = arith.mulf %533, %537 : vector<4x64xf32>
    %c0_140 = arith.constant 0 : index
    %c0_141 = arith.constant 0 : index
    %539 = vector.load %arg7[%c0_140, %c0_141] : memref<64x32xf32, #tpu.memory_space<vmem>>, vector<64x32xf32>
    %cst_142 = arith.constant dense<0.000000e+00> : vector<4x32xf32>
    %540 = tpu.matmul %538, %539, %cst_142 {dimension_numbers = #tpu.dot_dimension_numbers<[1], [0], [0], [1], [0, 0, 1, 1], [], []>} : vector<4x64xf32>, vector<64x32xf32>, vector<4x32xf32> -> vector<4x32xf32>
    %c0_143 = arith.constant 0 : index
    %c0_144 = arith.constant 0 : index
    %541 = vector.load %arg8[%c0_143, %c0_144] : memref<1x32xf32, #tpu.memory_space<vmem>>, vector<1x32xf32>
    %542 = vector.broadcast %541 : vector<1x32xf32> to vector<4x32xf32>
    %543 = arith.addf %540, %542 : vector<4x32xf32>
    %cst_145 = arith.constant 0.000000e+00 : f32
    %544 = vector.broadcast %cst_145 : f32 to vector<4x32xf32>
    %545 = arith.maximumf %543, %544 : vector<4x32xf32>
    %c0_146 = arith.constant 0 : index
    %c0_147 = arith.constant 0 : index
    %546 = vector.load %arg9[%c0_146, %c0_147] : memref<32x16xf32, #tpu.memory_space<vmem>>, vector<32x16xf32>
    %cst_148 = arith.constant dense<0.000000e+00> : vector<4x16xf32>
    %547 = tpu.matmul %545, %546, %cst_148 {dimension_numbers = #tpu.dot_dimension_numbers<[1], [0], [0], [1], [0, 0, 1, 1], [], []>} : vector<4x32xf32>, vector<32x16xf32>, vector<4x16xf32> -> vector<4x16xf32>
    %c0_149 = arith.constant 0 : index
    %c0_150 = arith.constant 0 : index
    %548 = vector.load %arg10[%c0_149, %c0_150] : memref<1x16xf32, #tpu.memory_space<vmem>>, vector<1x16xf32>
    %549 = vector.broadcast %548 : vector<1x16xf32> to vector<4x16xf32>
    %550 = arith.addf %547, %549 : vector<4x16xf32>
    %cst_151 = arith.constant 0.000000e+00 : f32
    %551 = vector.broadcast %cst_151 : f32 to vector<4x16xf32>
    %552 = arith.maximumf %550, %551 : vector<4x16xf32>
    %c0_152 = arith.constant 0 : index
    %c0_153 = arith.constant 0 : index
    %553 = vector.load %arg11[%c0_152, %c0_153] : memref<1x16xf32, #tpu.memory_space<vmem>>, vector<1x16xf32>
    %554 = vector.broadcast %553 : vector<1x16xf32> to vector<4x16xf32>
    %555 = arith.mulf %552, %554 : vector<4x16xf32>
    %cst_154 = arith.constant dense<0.000000e+00> : vector<4xf32>
    %556 = vector.multi_reduction <add>, %555, %cst_154 [1] : vector<4x16xf32> to vector<4xf32>
    %557 = vector.shape_cast %556 : vector<4xf32> to vector<4x1xf32>
    %c0_155 = arith.constant 0 : index
    %c0_156 = arith.constant 0 : index
    %558 = vector.load %arg12[%c0_155, %c0_156] : memref<1x1xf32, #tpu.memory_space<vmem>>, vector<1x1xf32>
    %559 = vector.broadcast %558 : vector<1x1xf32> to vector<4x1xf32>
    %560 = arith.addf %557, %559 : vector<4x1xf32>
    %c0_157 = arith.constant 0 : index
    %c0_158 = arith.constant 0 : index
    %561 = vector.load %arg13[%c0_157, %c0_158] : memref<4x1xf32, #tpu.memory_space<vmem>>, vector<4x1xf32>
    tpu.vector_store %arg13[%c0_157, %c0_158], %560 {strides = array<i32>} : memref<4x1xf32, #tpu.memory_space<vmem>>, vector<4x1xf32>,
    return
  }
  func.func @transform_0(%arg0: i32) -> (i32, i32, i32) {
    %c0_i32 = arith.constant 0 : i32
    %c0_i32_0 = arith.constant 0 : i32
    %c0_i32_1 = arith.constant 0 : i32
    return %c0_i32, %arg0, %c0_i32_0 : i32, i32, i32
  }
  func.func @transform_1(%arg0: i32) -> (i32, i32) {
    %c0_i32 = arith.constant 0 : i32
    %c0_i32_0 = arith.constant 0 : i32
    %c0_i32_1 = arith.constant 0 : i32
    return %c0_i32, %c0_i32_0 : i32, i32
  }
  func.func @transform_2(%arg0: i32) -> (i32, i32) {
    %c0_i32 = arith.constant 0 : i32
    %c0_i32_0 = arith.constant 0 : i32
    %c0_i32_1 = arith.constant 0 : i32
    return %c0_i32, %c0_i32_0 : i32, i32
  }
  func.func @transform_3(%arg0: i32) -> (i32, i32) {
    %c0_i32 = arith.constant 0 : i32
    %c0_i32_0 = arith.constant 0 : i32
    %c0_i32_1 = arith.constant 0 : i32
    return %c0_i32, %c0_i32_0 : i32, i32
  }
  func.func @transform_4(%arg0: i32) -> (i32, i32) {
    %c0_i32 = arith.constant 0 : i32
    %c0_i32_0 = arith.constant 0 : i32
    %c0_i32_1 = arith.constant 0 : i32
    return %c0_i32, %c0_i32_0 : i32, i32
  }
  func.func @transform_5(%arg0: i32) -> (i32, i32) {
    %c0_i32 = arith.constant 0 : i32
    %c0_i32_0 = arith.constant 0 : i32
    %c0_i32_1 = arith.constant 0 : i32
    return %c0_i32, %c0_i32_0 : i32, i32
  }
  func.func @transform_6(%arg0: i32) -> (i32, i32) {
    %c0_i32 = arith.constant 0 : i32
    %c0_i32_0 = arith.constant 0 : i32
    %c0_i32_1 = arith.constant 0 : i32
    return %c0_i32, %c0_i32_0 : i32, i32
  }
  func.func @transform_7(%arg0: i32) -> (i32, i32) {
    %c0_i32 = arith.constant 0 : i32
    %c0_i32_0 = arith.constant 0 : i32
    %c0_i32_1 = arith.constant 0 : i32
    return %c0_i32, %c0_i32_0 : i32, i32
  }
  func.func @transform_8(%arg0: i32) -> (i32, i32) {
    %c0_i32 = arith.constant 0 : i32
    %c0_i32_0 = arith.constant 0 : i32
    %c0_i32_1 = arith.constant 0 : i32
    return %c0_i32, %c0_i32_0 : i32, i32
  }
  func.func @transform_9(%arg0: i32) -> (i32, i32) {
    %c0_i32 = arith.constant 0 : i32
    %c0_i32_0 = arith.constant 0 : i32
    %c0_i32_1 = arith.constant 0 : i32
    return %c0_i32, %c0_i32_0 : i32, i32
  }
  func.func @transform_10(%arg0: i32) -> (i32, i32) {
    %c0_i32 = arith.constant 0 : i32
    %c0_i32_0 = arith.constant 0 : i32
    %c0_i32_1 = arith.constant 0 : i32
    return %c0_i32, %c0_i32_0 : i32, i32
  }
  func.func @transform_11(%arg0: i32) -> (i32, i32) {
    %c0_i32 = arith.constant 0 : i32
    %c0_i32_0 = arith.constant 0 : i32
    %c0_i32_1 = arith.constant 0 : i32
    return %c0_i32, %c0_i32_0 : i32, i32
  }
  func.func @transform_12(%arg0: i32) -> (i32, i32) {
    %c0_i32 = arith.constant 0 : i32
    %c0_i32_0 = arith.constant 0 : i32
    return %arg0, %c0_i32 : i32, i32
  }
}

</mosaic_0001>

<bundles_post_ra>
// kernel: tpu_custom_call.1
= control target key start
LH: loop header
LB: loop body
LE: loop exit
PB: predicated region body
PF: predicated region fallthrough
CT: control target
= control target key end

     0   :  { %s3006_s0 = inlined_call_operand.vmem [shape: f32[8,4,16], index: 0, kind: input, shape index: {}]   ;;  %s3007_s1 = inlined_call_operand.vmem [shape: bf16[16,256], index: 1, kind: input, shape index: {}]   ;;  %s3008_s2 = inlined_call_operand.vmem [shape: bf16[64,256], index: 2, kind: input, shape index: {}]   ;;  %s3009_s3 = inlined_call_operand.vmem [shape: f32[1,256], index: 3, kind: input, shape index: {}]   ;;  %s3010_s4 = inlined_call_operand.hbm [shape: bf16[128,256], index: 4, kind: input, shape index: {}]   ;;  %s3011_s5 = inlined_call_operand.vmem [shape: f32[1,256], index: 5, kind: input, shape index: {}]   ;;  %s3012_s6 = inlined_call_operand.vmem [shape: f32[64,32], index: 6, kind: input, shape index: {}]   ;;  %s3013_s7 = inlined_call_operand.vmem [shape: f32[1,32], index: 7, kind: input, shape index: {}]   ;;  %s3014_s8 = inlined_call_operand.vmem [shape: f32[32,16], index: 8, kind: input, shape index: {}]   ;;  %s3015_s9 = inlined_call_operand.vmem [shape: f32[1,16], index: 9, kind: input, shape index: {}]   ;;  %s3016_s10 = inlined_call_operand.vmem [shape: f32[1,16], index: 10, kind: input, shape index: {}]   ;;  %s3017_s11 = inlined_call_operand.<no memory space> [shape: f32[1,1], index: 11, kind: input, shape index: {}]   ;;  %s3018_s12 = inlined_call_operand.vmem [shape: f32[4,1], index: 12, kind: output, shape index: {}]  }
   0x1   :  { %v17_v0 = vstv %s3017_s11 }
   0x2   :  { %18 = vst [vmem:[#allocation2] sm:$0x1] %v17_v0 }
   0x3   :  { %19 = vsyncpa [#allocation4], 0  ;;  %s32_s25 = sshll.u32 %s3010_s4, 4  ;;  %s2311_s26 = smov [#allocation3]   ;;  %s33_s25 = int_to_ptr.hbm [resolvable:$true] %s32_s25 }
   0x4   :  { %s34_s27 = sshll.u32 %s2311_s26, 4  ;;  %s2312_s28 = smov 128   ;;  %s35_s27 = int_to_ptr.vmem [resolvable:$true] %s34_s27 }
   0x5   :  { %s2313_s29 = smov 8  }
   0x6   :  { %40 = dma.hbm_to_vmem [thread:$0]  %s33_s25, 2048, %s35_s27, [#allocation4], %s2312_s28, %s2312_s28, %s2313_s29  }
   0x7   :  { %2309 = dma.done.wait [#allocation4], 2048  }
   0x8   :  { %2310 = vsyncadd [#allocation4], 4294965248  ;;  %v1879_v1 = vld [vmem:[%s3007_s1] sm:$0xf]  ;;  %v2059_v2 = vld [vmem:[%s3007_s1 + $0x4] sm:$0xf0] }
   0x9   :  { %v1890_v3 = vld [vmem:[%s3006_s0 + $0x8] sm:$0xf]  ;;  %v2396_v4 = vor.u32 %v2059_v2, %v1879_v1  ;;  %v2058_v5 = vld [vmem:[%s3007_s1 + $0x4] sm:$0xf]  ;;  %v1881_v6 = vld [vmem:[%s3007_s1 + $0x8] sm:$0xf0] }
   0xa   :  { %vm80_vm0 = vcmask 130048   ;;  %v144_v7 = vpack.c.bf16 %v1890_v3, %v1890_v3  ;;  %v2404_v8 = vor.u32 %v2058_v5, %v1881_v6  ;;  %v63_v9 = vld [vmem:[%s3006_s0] sm:$0xf]  ;;  %v1896_v11 = vld [vmem:[%s3006_s0 + $0x10] sm:$0xf]  ;;  %v2314_v39 = vmov 0  }
   0xb   :  { %155 = vmatpush.bf16.msra.mxu0 %v2396_v4  ;;  %91 = vmatpush.bf16.msra.mxu2 %v2396_v4  ;;  %v64_v10 = vpack.c.bf16 %v63_v9, %v63_v9  ;;  %v1934_v12 = vld [vmem:[%s3008_s2 + $0x30] sm:$0xf]  ;;  %v2067_v13 = vld [vmem:[%s3008_s2 + $0x34] sm:$0xf0]  ;;  %v2066_v14 = vld [vmem:[%s3008_s2 + $0x34] sm:$0xf]  ;;  %v208_v16 = vpack.c.bf16 %v1896_v11, %v1896_v11 }
   0xc   :  { %168 = vmatpush.bf16.msra.mxu1 %v2404_v8  ;;  %104 = vmatpush.bf16.msra.mxu3 %v2404_v8  ;;  %v1936_v15 = vld [vmem:[%s3008_s2 + $0x38] sm:$0xf0]  ;;  %v2440_v17 = vor.u32 %v2067_v13, %v1934_v12  ;;  %v1926_v18 = vld [vmem:[%s3008_s2 + $0x20] sm:$0xf]  ;;  %v2065_v19 = vld [vmem:[%s3008_s2 + $0x24] sm:$0xf0] }
   0xd   :  { %v2448_v20 = vor.u32 %v2066_v14, %v1936_v15  ;;  %v2064_v21 = vld [vmem:[%s3008_s2 + $0x24] sm:$0xf]  ;;  %v1928_v22 = vld [vmem:[%s3008_s2 + $0x28] sm:$0xf0]  ;;  %v2459_v23 = vor.u32 %v2065_v19, %v1926_v18  ;;  %v1918_v24 = vld [vmem:[%s3008_s2 + $0x10] sm:$0xf] }
   0xe   :  { %1891 = vmatmul.msk.bf16.vlgmr.msra.gmra.mxu0 %vm80_vm0, %v144_v7  ;;  %1885 = vmatmul.msk.bf16.vlgmr.msra.gmra.mxu2 %vm80_vm0, %v64_v10  ;;  %v2063_v25 = vld [vmem:[%s3008_s2 + $0x14] sm:$0xf0]  ;;  %v2468_v26 = vor.u32 %v2064_v21, %v1928_v22  ;;  %v2062_v27 = vld [vmem:[%s3008_s2 + $0x14] sm:$0xf]  ;;  %v1920_v28 = vld [vmem:[%s3008_s2 + $0x18] sm:$0xf0] }
   0xf   :  { %219 = vmatpush.bf16.msrb.mxu0 %v2396_v4  ;;  %1892 = vmatmul.msk.bf16.vlgmr.msra.gmra.mxu1 %vm80_vm0, %v144_v7  ;;  %v2477_v29 = vor.u32 %v2063_v25, %v1918_v24  ;;  %v1910_v30 = vld [vmem:[%s3008_s2] sm:$0xf]  ;;  %v2061_v31 = vld [vmem:[%s3008_s2 + $0x4] sm:$0xf0]  ;;  %v2486_v32 = vor.u32 %v2062_v27, %v1920_v28  ;;  %v2060_v33 = vld [vmem:[%s3008_s2 + $0x4] sm:$0xf] }
  0x10   :  { %232 = vmatpush.bf16.msrb.mxu1 %v2404_v8  ;;  %1886 = vmatmul.msk.bf16.vlgmr.msra.gmra.mxu3 %vm80_vm0, %v64_v10  ;;  %v1912_v34 = vld [vmem:[%s3008_s2 + $0x8] sm:$0xf0]  ;;  %v1902_v35 = vld [vmem:[%s3006_s0 + $0x18] sm:$0xf]  ;;  %v2498_v36 = vor.u32 %v2061_v31, %v1910_v30  ;;  %v62_v54 = vld [vmem:[%s3009_s3] sm:$0x3] }
  0x11   :  { %123 = vmatpush.bf16.msrb.mxu2 %v2396_v4  ;;  %136 = vmatpush.bf16.msrb.mxu3 %v2404_v8  ;;  %v2501_v37 = vor.u32 %v2060_v33, %v1912_v34  ;;  %v272_v38 = vpack.c.bf16 %v1902_v35, %v1902_v35  ;;  %v2530_v57 = vperm.slane %v62_v54, 0  ;;  %v2533_v3 = vperm.slane %v62_v54, 1  ;;  %s2315_s3 = smov 64   ;;  %v1887_v27 = vld [vmem:[%s3006_s0 + $0x4] sm:$0xf] }
  0x12   :  { %v112_v28 = vpack.c.bf16 %v1887_v27, %v1887_v27  ;;  %vm382_vm9 = vcmask 523264  }
  0x13   :  { %283 = vmatpush.bf16.msra.mxu0 %v2396_v4 }
  0x14   :  { %296 = vmatpush.bf16.msra.mxu1 %v2404_v8 }
  0x15   :  { %187 = vmatpush.bf16.msra.mxu2 %v2396_v4  ;;  %200 = vmatpush.bf16.msra.mxu3 %v2404_v8 }
  0x1e   :  { %1897 = vmatmul.msk.bf16.vlgmr.msrb.gmra.mxu0 %vm80_vm0, %v208_v16  ;;  %1888 = vmatmul.msk.bf16.vlgmr.msrb.gmra.mxu2 %vm80_vm0, %v112_v28 }
  0x1f   :  { %1898 = vmatmul.msk.bf16.vlgmr.msrb.gmra.mxu1 %vm80_vm0, %v208_v16  ;;  %390 = vmatpush.bf16.msrb.mxu0 %v2440_v17 }
  0x20   :  { %403 = vmatpush.bf16.msrb.mxu1 %v2448_v20  ;;  %1889 = vmatmul.msk.bf16.vlgmr.msrb.gmra.mxu3 %vm80_vm0, %v112_v28  ;;  %v1984_v28 = vld [vmem:[#allocation3 + $0x50] sm:$0xf] }
  0x21   :  { %251 = vmatpush.bf16.msrb.mxu2 %v2396_v4  ;;  %264 = vmatpush.bf16.msrb.mxu3 %v2404_v8 }
  0x23   :  { %391 = vmatpush.bf16.msrb.mxu0 %v2459_v23 }
  0x24   :  { %404 = vmatpush.bf16.msrb.mxu1 %v2468_v26 }
  0x27   :  { %392 = vmatpush.bf16.msrb.mxu0 %v2477_v29 }
  0x28   :  { %405 = vmatpush.bf16.msrb.mxu1 %v2486_v32 }
  0x2b   :  { %393 = vmatpush.bf16.msrb.mxu0 %v2498_v36 }
  0x2c   :  { %406 = vmatpush.bf16.msrb.mxu1 %v2501_v37 }
  0x2e   :  { %1903 = vmatmul.msk.bf16.vlgmr.msra.gmra.mxu0 %vm80_vm0, %v272_v38 }
  0x2f   :  { %1904 = vmatmul.msk.bf16.vlgmr.msra.gmra.mxu1 %vm80_vm0, %v272_v38  ;;  %655 = vmatpush.bf16.msra.mxu0 %v2440_v17 }
  0x30   :  { %668 = vmatpush.bf16.msra.mxu1 %v2448_v20 }
  0x33   :  { %656 = vmatpush.bf16.msra.mxu0 %v2459_v23 }
  0x34   :  { %669 = vmatpush.bf16.msra.mxu1 %v2468_v26 }
  0x37   :  { %657 = vmatpush.bf16.msra.mxu0 %v2477_v29 }
  0x38   :  { %670 = vmatpush.bf16.msra.mxu1 %v2486_v32 }
  0x3b   :  { %658 = vmatpush.bf16.msra.mxu0 %v2498_v36 }
  0x3c   :  { %671 = vmatpush.bf16.msra.mxu1 %v2501_v37 }
  0x3e   :  { %394 = vmatmul.bf16.vlgmr.msrb.gmra.mxu0 %v2314_v39 }
  0x3f   :  { %407 = vmatmul.bf16.vlgmr.msrb.gmra.mxu1 %v2314_v39 }
  0x8b   :  { %v2515_v40 = vpop.f32.mrf.mxu0 }
  0x8c   :  { %v2517_v41 = vpop.f32.mrf.mxu1 }
  0x91   :  { %v93_v42 = vpop.f32.mrf.mxu2 }
  0x92   :  { %v94_v58 = vadd.f32 %v93_v42, %v2530_v57 }
  0x93   :  { %v159_v43 = vpop.f32.mrf.mxu0  ;;  %v106_v48 = vpop.f32.mrf.mxu3 }
  0x94   :  { %v172_v44 = vpop.f32.mrf.mxu1  ;;  %v107_v5 = vadd.f32 %v106_v48, %v2533_v3 }
  0x99   :  { %v95_v45 = vpop.f32.mrf.mxu2 }
  0x9b   :  { %v2519_v46 = vpop.f32.mrf.mxu0  ;;  %v108_v51 = vpop.f32.mrf.mxu3 }
  0x9c   :  { %v2521_v47 = vpop.f32.mrf.mxu1 }
  0xa3   :  { %v223_v49 = vpop.f32.mrf.mxu0 }
  0xa4   :  { %v236_v50 = vpop.f32.mrf.mxu1 }
  0xab   :  { %v2523_v52 = vpop.f32.mrf.mxu0 }
  0xac   :  { %v2525_v53 = vpop.f32.mrf.mxu1 }
  0xb3   :  { %v287_v55 = vpop.f32.mrf.mxu0 }
  0xb4   :  { %v300_v56 = vpop.f32.mrf.mxu1  ;;  %v125_v55 = vpop.f32.mrf.mxu2 }
  0xb5   :  { %v138_v56 = vpop.f32.mrf.mxu3 }
  0xbb   :  { %v395_v59 = vpop.f32.mrf.mxu0 }
  0xbc   :  { %v412_v60 = vadd.f32 %v395_v59, %v94_v58  ;;  %v408_v61 = vpop.f32.mrf.mxu1  ;;  %v127_v58 = vpop.f32.mrf.mxu2 }
  0xbd   :  { %v413_v7 = vadd.f32 %v408_v61, %v107_v5  ;;  %v140_v59 = vpop.f32.mrf.mxu3  ;;  %v126_v61 = vadd.f32 %v125_v55, %v2530_v57 }
  0xbe   :  { %v1940_v62 = vmul.f32 -1.442695, %v412_v60  ;;  %v1968_v59 = vld [vmem:[#allocation3 + $0x30] sm:$0xf] }
  0xbf   :  { %v1941_v22 = vmul.f32 -1.442695, %v413_v7 }
  0xc0   :  { %2093 = vpow2.f32 %v1940_v62 }
  0xc3   :  { %v397_v63 = vpop.f32.mrf.mxu0 }
  0xc4   :  { %v410_v0 = vpop.f32.mrf.mxu1 }
  0xc6   :  { %v2094_v1 = vpop.eup %2093 }
  0xc7   :  { %v417_v2 = vadd.f32 1.0, %v2094_v1 }
  0xc9   :  { %2095 = vrcp.f32 %v417_v2  ;;  %v429_v11 = vand.u32 2147483648, %v417_v2  ;;  %v427_v13 = vand.u32 2147483647, %v417_v2  ;;  %vm423_vm2 = vweird.f32 %v417_v2 }
  0xca   :  { %2097 = vtanh.f32 %v413_v7  ;;  %v2000_v7 = vld [vmem:[#allocation3 + $0x70] sm:$0xf] }
  0xcb   :  { %v430_v16 = vor.u32 1.1754944e-38, %v429_v11  ;;  %vm428_vm4 = vcmp.eq.f32.partialorder %v427_v13, 8.507059e+37  ;;  %2099 = vpow2.f32 %v1941_v22  ;;  %v2082_v11 = vld [vmem:[#allocation3 + $0x74] sm:$0xf]  ;;  %v1994_v22 = vld [vmem:[#allocation3 + $0x68] sm:$0xf0] }
  0xcf   :  { %v2096_v6 = vpop.eup %2095 }
  0xd0   :  { %v419_v9 = vmul.f32 %v2096_v6, %v417_v2  ;;  %vm424_vm1 = vweird.f32 %v2096_v6  ;;  %v2098_v15 = vpop.eup %2097 }
  0xd1   :  { %vm425_vm3 = vmor %vm423_vm2, %vm424_vm1  ;;  %v2100_v24 = vpop.eup %2099 }
  0xd2   :  { %v420_v10 = vsub.f32 1.0, %v419_v9  ;;  %v437_v25 = vadd.f32 1.0, %v2100_v24  ;;  %v139_v24 = vadd.f32 %v138_v56, %v2533_v3  ;;  %vm2006_vm1 = vmpackc.low %vm382_vm9, %vm382_vm9 }
  0xd4   :  { %v421_v12 = vmul.f32 %v2096_v6, %v420_v10  ;;  %2101 = vrcp.f32 %v437_v25  ;;  %vm443_vm5 = vweird.f32 %v437_v25  ;;  %v449_v42 = vand.u32 2147483648, %v437_v25  ;;  %v2083_v10 = vld [vmem:[#allocation3 + $0x74] sm:$0xf0] }
  0xd5   :  { %v447_v44 = vand.u32 2147483647, %v437_v25 }
  0xd6   :  { %v422_v14 = vadd.f32 %v2096_v6, %v421_v12  ;;  %v450_v45 = vor.u32 1.1754944e-38, %v449_v42  ;;  %v2002_v12 = vld [vmem:[#allocation3 + $0x78] sm:$0xf0]  ;;  %v1976_v42 = vld [vmem:[#allocation3 + $0x40] sm:$0xf] }
  0xd7   :  { %vm448_vm8 = vcmp.eq.f32.partialorder %v447_v44, 8.507059e+37  ;;  %v2077_v44 = vld [vmem:[#allocation3 + $0x44] sm:$0xf0] }
  0xd8   :  { %v426_v18 = vsel %vm425_vm3, %v2096_v6, %v422_v14  ;;  %v1893_v6 = vld [vmem:[%s3006_s0 + $0xc] sm:$0xf]  ;;  %v2587_v56 = vor.u32 %v2077_v44, %v1976_v42 }
  0xd9   :  { %v431_v19 = vsel %vm428_vm4, %v430_v16, %v426_v18  ;;  %v176_v9 = vpack.c.bf16 %v1893_v6, %v1893_v6  ;;  %v2562_v16 = vor.u32 %v2082_v11, %v2002_v12  ;;  %v1992_v18 = vld [vmem:[#allocation3 + $0x60] sm:$0xf]  ;;  %v2072_v12 = vld [vmem:[#allocation3 + $0x24] sm:$0xf]  ;;  %v1946_v44 = vld [vmem:[#allocation3 + $0x8] sm:$0xf0] }
  0xda   :  { %v454_v21 = vmul.f32 %v2098_v15, %v431_v19  ;;  %v2102_v30 = vpop.eup %2101  ;;  %v453_v35 = vmul.f32 0.0, %v431_v19  ;;  %v2560_v15 = vor.u32 %v2083_v10, %v2000_v7  ;;  %v2081_v19 = vld [vmem:[#allocation3 + $0x64] sm:$0xf0] }
  0xdb   :  { %v439_v31 = vmul.f32 %v2102_v30, %v437_v25  ;;  %vm444_vm6 = vweird.f32 %v2102_v30  ;;  %1894 = vmatmul.msk.bf16.vlgmr.msra.gmra.mxu2 %vm80_vm0, %v176_v9  ;;  %1895 = vmatmul.msk.bf16.vlgmr.msra.gmra.mxu3 %vm80_vm0, %v176_v9  ;;  %v2569_v25 = vor.u32 %v2081_v19, %v1992_v18  ;;  %v1960_v9 = vld [vmem:[#allocation3 + $0x20] sm:$0xf]  ;;  %v2073_v10 = vld [vmem:[#allocation3 + $0x24] sm:$0xf0] }
  0xdc   :  { %456 = vrot.lane.b32.xlu0 %v454_v21, %s2315_s3  ;;  %vm445_vm7 = vmor %vm443_vm5, %vm444_vm6  ;;  %315 = vmatpush.bf16.msra.mxu2 %v2396_v4  ;;  %v2080_v21 = vld [vmem:[#allocation3 + $0x64] sm:$0xf]  ;;  %v1986_v4 = vld [vmem:[#allocation3 + $0x58] sm:$0xf0]  ;;  %v2606_v18 = vor.u32 %v2073_v10, %v1960_v9 }
  0xdd   :  { %v440_v33 = vsub.f32 1.0, %v439_v31  ;;  %328 = vmatpush.bf16.msra.mxu3 %v2404_v8  ;;  %733 = vmatpush.bf16.msrb.mxu0 %v2560_v15  ;;  %v2571_v27 = vor.u32 %v2080_v21, %v1994_v22  ;;  %v2078_v31 = vld [vmem:[#allocation3 + $0x54] sm:$0xf]  ;;  %v1905_v21 = vld [vmem:[%s3006_s0 + $0x1c] sm:$0xf] }
  0xde   :  { %746 = vmatpush.bf16.msrb.mxu1 %v2562_v16  ;;  %v304_v22 = vpack.c.bf16 %v1905_v21, %v1905_v21 }
  0xdf   :  { %v441_v34 = vmul.f32 %v2102_v30, %v440_v33 }
  0xe1   :  { %v442_v43 = vadd.f32 %v2102_v30, %v441_v34  ;;  %734 = vmatpush.bf16.msrb.mxu0 %v2569_v25  ;;  %v1899_v34 = vld [vmem:[%s3006_s0 + $0x14] sm:$0xf] }
  0xe2   :  { %747 = vmatpush.bf16.msrb.mxu1 %v2571_v27 }
  0xe3   :  { %v446_v48 = vsel %vm445_vm7, %v2102_v30, %v442_v43  ;;  %v2079_v30 = vld [vmem:[#allocation3 + $0x54] sm:$0xf0] }
  0xe4   :  { %v451_v50 = vsel %vm448_vm8, %v450_v45, %v446_v48  ;;  %v2076_v45 = vld [vmem:[#allocation3 + $0x44] sm:$0xf]  ;;  %v1978_v48 = vld [vmem:[#allocation3 + $0x48] sm:$0xf0] }
  0xe5   :  { %v2589_v58 = vor.u32 %v2076_v45, %v1978_v48 }
 0x14e   :  { %v457_v38 = vpop.permute.xlu0 %456 }
 0x14f   :  { %v2544_v39 = vadd.f32 %v457_v38, %v453_v35  ;;  %v2580_v35 = vor.u32 %v2079_v30, %v1984_v28  ;;  %v2582_v38 = vor.u32 %v2078_v31, %v1986_v4  ;;  %v2071_v28 = vld [vmem:[#allocation3 + $0x14] sm:$0xf0]  ;;  %v2070_v30 = vld [vmem:[#allocation3 + $0x14] sm:$0xf]  ;;  %v1954_v4 = vld [vmem:[#allocation3 + $0x18] sm:$0xf0] }
 0x150   :  { %v2633_v42 = vor.u32 %v2070_v30, %v1954_v4 }
 0x151   :  { %2103 = vtanh.f32 %v2544_v39  ;;  %735 = vmatpush.bf16.msrb.mxu0 %v2580_v35  ;;  %748 = vmatpush.bf16.msrb.mxu1 %v2582_v38 }
 0x155   :  { %736 = vmatpush.bf16.msrb.mxu0 %v2587_v56  ;;  %749 = vmatpush.bf16.msrb.mxu1 %v2589_v58 }
 0x157   :  { %v2104_v49 = vpop.eup %2103 }
 0x158   :  { %v2547_v51 = vmul.f32 %v2104_v49, %v451_v50  ;;  %v240_v50 = vpack.c.bf16 %v1899_v34, %v1899_v34  ;;  %v2069_v34 = vld [vmem:[#allocation3 + $0x4] sm:$0xf0] }
 0x15a   :  { %v644_v54 = vpack.c.bf16 %v2547_v51, %v2547_v51  ;;  %1900 = vmatmul.msk.bf16.vlgmr.msrb.gmra.mxu2 %vm80_vm0, %v240_v50  ;;  %1901 = vmatmul.msk.bf16.vlgmr.msrb.gmra.mxu3 %vm80_vm0, %v240_v50 }
 0x15b   :  { %570 = vmatpush.bf16.msrb.mxu2 %v2560_v15  ;;  %583 = vmatpush.bf16.msrb.mxu3 %v2562_v16 }
 0x15c   :  { %646 = vrot.lane.b32.xlu0 %v644_v54, %s2315_s3 }
 0x15f   :  { %571 = vmatpush.bf16.msrb.mxu2 %v2569_v25  ;;  %584 = vmatpush.bf16.msrb.mxu3 %v2571_v27 }
 0x163   :  { %572 = vmatpush.bf16.msrb.mxu2 %v2580_v35  ;;  %585 = vmatpush.bf16.msrb.mxu3 %v2582_v38 }
 0x167   :  { %573 = vmatpush.bf16.msrb.mxu2 %v2587_v56  ;;  %586 = vmatpush.bf16.msrb.mxu3 %v2589_v58 }
 0x16a   :  { %1906 = vmatmul.msk.bf16.vlgmr.msra.gmra.mxu2 %vm80_vm0, %v304_v22  ;;  %1907 = vmatmul.msk.bf16.vlgmr.msra.gmra.mxu3 %vm80_vm0, %v304_v22 }
 0x1ce   :  { %v647_v60 = vpop.permute.xlu0 %646 }
 0x1cf   :  { %2014 = vmatmul.msk.bf16.vlgmr.msra.gmra.mxu0 %vm382_vm9, %v647_v60  ;;  %2015 = vmatmul.msk.bf16.vlgmr.msra.gmra.mxu1 %vm382_vm9, %v647_v60 }
 0x24c   :  { %v660_v62 = vpop.f32.mrf.mxu0  ;;  %v673_v63 = vpop.f32.mrf.mxu1 }
 0x24d   :  { %v677_v0 = vadd.f32 %v660_v62, %v126_v61  ;;  %v2575_v8 = vadd.f32 %v673_v63, %v139_v24  ;;  %v2075_v61 = vld [vmem:[#allocation3 + $0x34] sm:$0xf0]  ;;  %v2074_v62 = vld [vmem:[#allocation3 + $0x34] sm:$0xf]  ;;  %v1970_v63 = vld [vmem:[#allocation3 + $0x38] sm:$0xf0] }
 0x24f   :  { %v2016_v1 = vmul.f32 -1.442695, %v677_v0  ;;  %v2017_v24 = vmul.f32 -1.442695, %v2575_v8 }
 0x251   :  { %2105 = vpow2.f32 %v2016_v1 }
 0x254   :  { %v662_v2 = vpop.f32.mrf.mxu0  ;;  %v675_v5 = vpop.f32.mrf.mxu1 }
 0x255   :  { %v2595_v2 = vor.u32 %v2075_v61, %v1968_v59  ;;  %v2597_v5 = vor.u32 %v2074_v62, %v1970_v63  ;;  %v2663_v59 = vpop.f32.mrf.mxu2 }
 0x257   :  { %v2106_v13 = vpop.eup %2105  ;;  %737 = vmatpush.bf16.msrb.mxu0 %v2595_v2  ;;  %750 = vmatpush.bf16.msrb.mxu1 %v2597_v5 }
 0x258   :  { %v682_v14 = vadd.f32 1.0, %v2106_v13  ;;  %v1962_v13 = vld [vmem:[#allocation3 + $0x28] sm:$0xf0]  ;;  %574 = vmatpush.bf16.msrb.mxu2 %v2595_v2  ;;  %587 = vmatpush.bf16.msrb.mxu3 %v2597_v5 }
 0x259   :  { %v2610_v19 = vor.u32 %v2072_v12, %v1962_v13 }
 0x25a   :  { %2107 = vrcp.f32 %v682_v14  ;;  %v692_v54 = vand.u32 2147483647, %v682_v14  ;;  %v694_v55 = vand.u32 2147483648, %v682_v14  ;;  %vm688_vm11 = vweird.f32 %v682_v14 }
 0x25b   :  { %2109 = vtanh.f32 %v2575_v8  ;;  %738 = vmatpush.bf16.msrb.mxu0 %v2606_v18  ;;  %751 = vmatpush.bf16.msrb.mxu1 %v2610_v19 }
 0x25c   :  { %v695_v1 = vor.u32 1.1754944e-38, %v694_v55  ;;  %vm693_vm13 = vcmp.eq.f32.partialorder %v692_v54, 8.507059e+37  ;;  %575 = vmatpush.bf16.msrb.mxu2 %v2606_v18  ;;  %588 = vmatpush.bf16.msrb.mxu3 %v2610_v19  ;;  %2111 = vpow2.f32 %v2017_v24 }
 0x25d   :  { %v191_v9 = vpop.f32.mrf.mxu2 }
 0x25f   :  { %752 = vmatpush.bf16.msrb.mxu1 %v2633_v42 }
 0x260   :  { %v2108_v33 = vpop.eup %2107  ;;  %589 = vmatpush.bf16.msrb.mxu3 %v2633_v42 }
 0x261   :  { %v684_v43 = vmul.f32 %v2108_v33, %v682_v14  ;;  %vm689_vm10 = vweird.f32 %v2108_v33  ;;  %v2110_v6 = vpop.eup %2109 }
 0x262   :  { %vm690_vm12 = vmor %vm688_vm11, %vm689_vm10  ;;  %v2112_v8 = vpop.eup %2111 }
 0x263   :  { %v685_v49 = vsub.f32 1.0, %v684_v43  ;;  %v2068_v43 = vld [vmem:[#allocation3 + $0x4] sm:$0xf] }
 0x264   :  { %v2640_v48 = vor.u32 %v2068_v43, %v1946_v44 }
 0x265   :  { %v686_v60 = vmul.f32 %v2108_v33, %v685_v49  ;;  %v702_v49 = vadd.f32 1.0, %v2112_v8 }
 0x266   :  { %590 = vmatpush.bf16.msrb.mxu3 %v2640_v48  ;;  %753 = vmatpush.bf16.msrb.mxu1 %v2640_v48 }
 0x267   :  { %v687_v0 = vadd.f32 %v2108_v33, %v686_v60  ;;  %2113 = vrcp.f32 %v702_v49  ;;  %v2665_v60 = vpop.f32.mrf.mxu3  ;;  %vm708_vm15 = vweird.f32 %v702_v49 }
 0x269   :  { %v691_v7 = vsel %vm690_vm12, %v2108_v33, %v687_v0  ;;  %v1944_v33 = vld [vmem:[#allocation3] sm:$0xf] }
 0x26a   :  { %v2601_v11 = vsel %vm693_vm13, %v695_v1, %v691_v7  ;;  %v2636_v45 = vor.u32 %v2069_v34, %v1944_v33  ;;  %831 = vmatpush.bf16.msra.mxu3 %v2448_v20  ;;  %994 = vmatpush.bf16.msra.mxu1 %v2448_v20  ;;  %v712_v7 = vand.u32 2147483647, %v702_v49 }
 0x26b   :  { %v719_v14 = vmul.f32 %v2110_v6, %v2601_v11  ;;  %v718_v62 = vmul.f32 %v2601_v11, %v2544_v39  ;;  %v714_v6 = vand.u32 2147483648, %v702_v49 }
 0x26c   :  { %vm713_vm2 = vcmp.eq.f32.partialorder %v712_v7, 8.507059e+37 }
 0x26d   :  { %721 = vrot.lane.b32.xlu1 %v719_v14, %s2315_s3  ;;  %v2114_v50 = vpop.eup %2113  ;;  %v715_v13 = vor.u32 1.1754944e-38, %v714_v6 }
 0x26e   :  { %832 = vmatpush.bf16.msra.mxu3 %v2468_v26  ;;  %995 = vmatpush.bf16.msra.mxu1 %v2468_v26  ;;  %v704_v54 = vmul.f32 %v2114_v50, %v702_v49  ;;  %vm709_vm14 = vweird.f32 %v2114_v50  ;;  %v484_v49 = vld [vmem:[%s3011_s5] sm:$0x3] }
 0x26f   :  { %v204_v10 = vpop.f32.mrf.mxu3  ;;  %vm710_vm0 = vmor %vm708_vm15, %vm709_vm14  ;;  %v2716_v9 = vperm.slane %v484_v49, 1 }
 0x270   :  { %v705_v55 = vsub.f32 1.0, %v704_v54 }
 0x272   :  { %833 = vmatpush.bf16.msra.mxu3 %v2486_v32  ;;  %996 = vmatpush.bf16.msra.mxu1 %v2486_v32  ;;  %v706_v61 = vmul.f32 %v2114_v50, %v705_v55 }
 0x274   :  { %v707_v1 = vadd.f32 %v2114_v50, %v706_v61 }
 0x275   :  { %463 = vrot.lane.b32.xlu1 %v2547_v51, %s2315_s3  ;;  %v1952_v51 = vld [vmem:[#allocation3 + $0x10] sm:$0xf] }
 0x276   :  { %v2631_v31 = vor.u32 %v2071_v28, %v1952_v51  ;;  %834 = vmatpush.bf16.msra.mxu3 %v2501_v37  ;;  %997 = vmatpush.bf16.msra.mxu1 %v2501_v37  ;;  %v711_v12 = vsel %vm710_vm0, %v2114_v50, %v707_v1  ;;  %v2692_v51 = vpop.f32.mrf.mxu2  ;;  %v2713_v50 = vperm.slane %v484_v49, 0 }
 0x277   :  { %v716_v21 = vsel %vm713_vm2, %v715_v13, %v711_v12  ;;  %v2694_v28 = vpop.f32.mrf.mxu3 }
 0x278   :  { %576 = vmatpush.bf16.msrb.mxu2 %v2631_v31  ;;  %739 = vmatpush.bf16.msrb.mxu0 %v2631_v31 }
 0x27c   :  { %577 = vmatpush.bf16.msrb.mxu2 %v2636_v45  ;;  %740 = vmatpush.bf16.msrb.mxu0 %v2636_v45 }
 0x27e   :  { %v255_v30 = vpop.f32.mrf.mxu2 }
 0x27f   :  { %v268_v4 = vpop.f32.mrf.mxu3 }
 0x280   :  { %818 = vmatpush.bf16.msra.mxu2 %v2440_v17  ;;  %981 = vmatpush.bf16.msra.mxu0 %v2440_v17 }
 0x284   :  { %819 = vmatpush.bf16.msra.mxu2 %v2459_v23  ;;  %982 = vmatpush.bf16.msra.mxu0 %v2459_v23 }
 0x286   :  { %v2696_v33 = vpop.f32.mrf.mxu2 }
 0x287   :  { %v2698_v34 = vpop.f32.mrf.mxu3 }
 0x288   :  { %820 = vmatpush.bf16.msra.mxu2 %v2477_v29  ;;  %983 = vmatpush.bf16.msra.mxu0 %v2477_v29 }
 0x28c   :  { %821 = vmatpush.bf16.msra.mxu2 %v2498_v36  ;;  %984 = vmatpush.bf16.msra.mxu0 %v2498_v36 }
 0x28e   :  { %v319_v43 = vpop.f32.mrf.mxu2 }
 0x28f   :  { %v332_v44 = vpop.f32.mrf.mxu3 }
 0x2df   :  { %v722_v63 = vpop.permute.xlu1 %721 }
 0x2e0   :  { %v2669_v0 = vadd.f32 %v722_v63, %v718_v62 }
 0x2e2   :  { %2115 = vtanh.f32 %v2669_v0 }
 0x2e7   :  { %v464_v14 = vpop.permute.xlu1 %463 }
 0x2e8   :  { %v2116_v39 = vpop.eup %2115  ;;  %v2007_v11 = vpack.c.bf16 %v464_v14, %v464_v14 }
 0x2e9   :  { %v726_v22 = vmul.f32 %v2116_v39, %v716_v21 }
 0x2ea   :  { %2008 = vmatmul.msk.bf16.vlgmr.msrb.gmra.mxu2 %vm2006_vm1, %v2007_v11  ;;  %2011 = vmatmul.msk.bf16.vlgmr.msrb.gmra.mxu3 %vm2006_vm1, %v2007_v11 }
 0x2eb   :  { %728 = vrot.lane.b32.xlu1 %v726_v22, %s2315_s3  ;;  %v807_v24 = vpack.c.bf16 %v726_v22, %v726_v22  ;;  %896 = vmatpush.bf16.msrb.mxu2 %v2560_v15 }
 0x2ec   :  { %909 = vmatpush.bf16.msrb.mxu3 %v2562_v16 }
 0x2ed   :  { %809 = vrot.lane.b32.xlu2 %v807_v24, %s2315_s3 }
 0x2ef   :  { %897 = vmatpush.bf16.msrb.mxu2 %v2569_v25 }
 0x2f0   :  { %910 = vmatpush.bf16.msrb.mxu3 %v2571_v27 }
 0x2f3   :  { %898 = vmatpush.bf16.msrb.mxu2 %v2580_v35 }
 0x2f4   :  { %911 = vmatpush.bf16.msrb.mxu3 %v2582_v38 }
 0x2f7   :  { %899 = vmatpush.bf16.msrb.mxu2 %v2587_v56 }
 0x2f8   :  { %912 = vmatpush.bf16.msrb.mxu3 %v2589_v58 }
 0x2fb   :  { %900 = vmatpush.bf16.msrb.mxu2 %v2595_v2 }
 0x2fc   :  { %913 = vmatpush.bf16.msrb.mxu3 %v2597_v5 }
 0x2ff   :  { %901 = vmatpush.bf16.msrb.mxu2 %v2606_v18 }
 0x300   :  { %914 = vmatpush.bf16.msrb.mxu3 %v2610_v19 }
 0x303   :  { %902 = vmatpush.bf16.msrb.mxu2 %v2631_v31 }
 0x304   :  { %915 = vmatpush.bf16.msrb.mxu3 %v2633_v42 }
 0x307   :  { %903 = vmatpush.bf16.msrb.mxu2 %v2636_v45 }
 0x308   :  { %916 = vmatpush.bf16.msrb.mxu3 %v2640_v48 }
 0x347   :  { %v810_v8 = vpop.permute.xlu2 %809 }
 0x348   :  { %2020 = vmatmul.msk.bf16.vlgmr.msra.gmra.mxu2 %vm382_vm9, %v810_v8  ;;  %2021 = vmatmul.msk.bf16.vlgmr.msra.gmra.mxu3 %vm382_vm9, %v810_v8  ;;  %v158_v8 = vadd.f32 %v2515_v40, %v2530_v57 }
 0x349   :  { %1144 = vmatpush.bf16.msra.mxu2 %v2440_v17  ;;  %1157 = vmatpush.bf16.msra.mxu3 %v2448_v20 }
 0x34d   :  { %1145 = vmatpush.bf16.msra.mxu2 %v2459_v23  ;;  %1158 = vmatpush.bf16.msra.mxu3 %v2468_v26 }
 0x351   :  { %1146 = vmatpush.bf16.msra.mxu2 %v2477_v29  ;;  %1159 = vmatpush.bf16.msra.mxu3 %v2486_v32 }
 0x355   :  { %1147 = vmatpush.bf16.msra.mxu2 %v2498_v36  ;;  %1160 = vmatpush.bf16.msra.mxu3 %v2501_v37 }
 0x36d   :  { %v579_v54 = vpop.f32.mrf.mxu2  ;;  %v592_v55 = vpop.f32.mrf.mxu3 }
 0x36e   :  { %v580_v61 = vadd.f32 %v579_v54, %v2713_v50  ;;  %v593_v12 = vadd.f32 %v592_v55, %v2716_v9 }
 0x370   :  { %v2012_v62 = vmul.f32 -1.442695, %v580_v61 }
 0x372   :  { %2117 = vpow2.f32 %v2012_v62 }
 0x375   :  { %v581_v63 = vpop.f32.mrf.mxu2  ;;  %v594_v1 = vpop.f32.mrf.mxu3 }
 0x378   :  { %v2118_v6 = vpop.eup %2117 }
 0x379   :  { %v599_v7 = vadd.f32 1.0, %v2118_v6 }
 0x37b   :  { %2119 = vrcp.f32 %v599_v7  ;;  %v611_v39 = vand.u32 2147483648, %v599_v7  ;;  %v609_v21 = vand.u32 2147483647, %v599_v7  ;;  %vm605_vm4 = vweird.f32 %v599_v7 }
 0x37c   :  { %2121 = vtanh.f32 %v593_v12 }
 0x37d   :  { %v612_v24 = vor.u32 1.1754944e-38, %v611_v39  ;;  %vm610_vm6 = vcmp.eq.f32.partialorder %v609_v21, 8.507059e+37 }
 0x381   :  { %v2120_v10 = vpop.eup %2119 }
 0x382   :  { %v601_v13 = vmul.f32 %v2120_v10, %v599_v7  ;;  %vm606_vm3 = vweird.f32 %v2120_v10  ;;  %v2122_v4 = vpop.eup %2121  ;;  %v2013_v7 = vmul.f32 -1.442695, %v593_v12 }
 0x383   :  { %vm607_vm5 = vmor %vm605_vm4, %vm606_vm3 }
 0x384   :  { %v602_v14 = vsub.f32 1.0, %v601_v13 }
 0x386   :  { %v603_v11 = vmul.f32 %v2120_v10, %v602_v14 }
 0x388   :  { %v604_v22 = vadd.f32 %v2120_v10, %v603_v11 }
 0x38a   :  { %v608_v30 = vsel %vm607_vm5, %v2120_v10, %v604_v22  ;;  %v171_v10 = vadd.f32 %v2517_v41, %v2533_v3 }
 0x38b   :  { %v613_v43 = vsel %vm610_vm6, %v612_v24, %v608_v30 }
 0x38c   :  { %v636_v44 = vmul.f32 %v2122_v4, %v613_v43 }
 0x38e   :  { %638 = vrot.lane.b32.xlu0 %v636_v44, %s2315_s3 }
 0x3cb   :  { %v823_v49 = vpop.f32.mrf.mxu2  ;;  %v836_v54 = vpop.f32.mrf.mxu3 }
 0x3cc   :  { %v840_v55 = vadd.f32 %v823_v49, %v158_v8  ;;  %v841_v14 = vadd.f32 %v836_v54, %v171_v10 }
 0x3ce   :  { %v2022_v61 = vmul.f32 -1.442695, %v840_v55 }
 0x3d0   :  { %2123 = vpow2.f32 %v2022_v61 }
 0x3d3   :  { %v825_v62 = vpop.f32.mrf.mxu2  ;;  %v838_v63 = vpop.f32.mrf.mxu3 }
 0x3d4   :  { %v635_v63 = vmul.f32 0.0, %v613_v43 }
 0x3d6   :  { %v2124_v1 = vpop.eup %2123 }
 0x3d7   :  { %v845_v6 = vadd.f32 1.0, %v2124_v1 }
 0x3d9   :  { %2125 = vrcp.f32 %v845_v6  ;;  %v857_v40 = vand.u32 2147483648, %v845_v6  ;;  %v855_v22 = vand.u32 2147483647, %v845_v6  ;;  %vm851_vm8 = vweird.f32 %v845_v6 }
 0x3da   :  { %2127 = vpow2.f32 %v2013_v7 }
 0x3db   :  { %2129 = vtanh.f32 %v841_v14  ;;  %v858_v4 = vor.u32 1.1754944e-38, %v857_v40  ;;  %vm856_vm11 = vcmp.eq.f32.partialorder %v855_v22, 8.507059e+37 }
 0x3df   :  { %v2126_v13 = vpop.eup %2125 }
 0x3e0   :  { %v847_v39 = vmul.f32 %v2126_v13, %v845_v6  ;;  %vm852_vm7 = vweird.f32 %v2126_v13  ;;  %v2128_v24 = vpop.eup %2127 }
 0x3e1   :  { %vm853_vm10 = vmor %vm851_vm8, %vm852_vm7  ;;  %v2130_v12 = vpop.eup %2129  ;;  %v619_v8 = vadd.f32 1.0, %v2128_v24  ;;  %v729_v24 = vpop.permute.xlu1 %728 }
 0x3e2   :  { %v848_v11 = vsub.f32 1.0, %v847_v39 }
 0x3e3   :  { %2131 = vrcp.f32 %v619_v8  ;;  %v631_v10 = vand.u32 2147483648, %v619_v8  ;;  %vm625_vm13 = vweird.f32 %v619_v8 }
 0x3e4   :  { %v849_v21 = vmul.f32 %v2126_v13, %v848_v11 }
 0x3e5   :  { %v632_v11 = vor.u32 1.1754944e-38, %v631_v10 }
 0x3e6   :  { %v850_v30 = vadd.f32 %v2126_v13, %v849_v21 }
 0x3e8   :  { %v854_v44 = vsel %vm853_vm10, %v2126_v13, %v850_v30  ;;  %v629_v13 = vand.u32 2147483647, %v619_v8 }
 0x3e9   :  { %v859_v41 = vsel %vm856_vm11, %v858_v4, %v854_v44  ;;  %v2132_v54 = vpop.eup %2131  ;;  %v2023_v4 = vmul.f32 -1.442695, %v841_v14 }
 0x3ea   :  { %v882_v49 = vmul.f32 %v2130_v12, %v859_v41  ;;  %v621_v55 = vmul.f32 %v2132_v54, %v619_v8  ;;  %vm626_vm12 = vweird.f32 %v2132_v54  ;;  %vm630_vm15 = vcmp.eq.f32.partialorder %v629_v13, 8.507059e+37 }
 0x3eb   :  { %vm627_vm14 = vmor %vm625_vm13, %vm626_vm12 }
 0x3ec   :  { %884 = vrot.lane.b32.xlu2 %v882_v49, %s2315_s3  ;;  %v622_v61 = vsub.f32 1.0, %v621_v55  ;;  %v881_v55 = vmul.f32 %v859_v41, %v2669_v0 }
 0x3ee   :  { %v623_v62 = vmul.f32 %v2132_v54, %v622_v61 }
 0x3f0   :  { %v624_v6 = vadd.f32 %v2132_v54, %v623_v62 }
 0x3f2   :  { %v628_v39 = vsel %vm627_vm14, %v2132_v54, %v624_v6 }
 0x3f3   :  { %v633_v21 = vsel %vm630_vm15, %v632_v11, %v628_v39 }
 0x400   :  { %v639_v1 = vpop.permute.xlu0 %638 }
 0x401   :  { %v2725_v7 = vadd.f32 %v639_v1, %v635_v63 }
 0x403   :  { %2133 = vtanh.f32 %v2725_v7 }
 0x404   :  { %2135 = vpow2.f32 %v2023_v4 }
 0x409   :  { %v2134_v40 = vpop.eup %2133 }
 0x40a   :  { %v643_v22 = vmul.f32 %v2134_v40, %v633_v21  ;;  %v2136_v44 = vpop.eup %2135 }
 0x40b   :  { %v865_v12 = vadd.f32 1.0, %v2136_v44 }
 0x40c   :  { %v731_v43 = vsel %vm382_vm9, %v729_v24, %v643_v22 }
 0x40d   :  { %v732_v30 = vpack.c.bf16 %v731_v43, %v731_v43  ;;  %2137 = vrcp.f32 %v865_v12  ;;  %v877_v1 = vand.u32 2147483648, %v865_v12  ;;  %vm871_vm1 = vweird.f32 %v865_v12 }
 0x40e   :  { %v875_v6 = vand.u32 2147483647, %v865_v12 }
 0x40f   :  { %741 = vmatmul.bf16.vlgmr.msrb.gmra.mxu0 %v732_v30  ;;  %754 = vmatmul.bf16.vlgmr.msrb.gmra.mxu1 %v732_v30  ;;  %v878_v13 = vor.u32 1.1754944e-38, %v877_v1 }
 0x410   :  { %1059 = vmatpush.bf16.msrb.mxu0 %v2560_v15  ;;  %1072 = vmatpush.bf16.msrb.mxu1 %v2562_v16  ;;  %vm876_vm3 = vcmp.eq.f32.partialorder %v875_v6, 8.507059e+37 }
 0x413   :  { %v2138_v8 = vpop.eup %2137 }
 0x414   :  { %1060 = vmatpush.bf16.msrb.mxu0 %v2569_v25  ;;  %1073 = vmatpush.bf16.msrb.mxu1 %v2571_v27  ;;  %v867_v49 = vmul.f32 %v2138_v8, %v865_v12  ;;  %vm872_vm0 = vweird.f32 %v2138_v8 }
 0x415   :  { %vm873_vm2 = vmor %vm871_vm1, %vm872_vm0 }
 0x416   :  { %v868_v54 = vsub.f32 1.0, %v867_v49 }
 0x418   :  { %1061 = vmatpush.bf16.msrb.mxu0 %v2580_v35  ;;  %1074 = vmatpush.bf16.msrb.mxu1 %v2582_v38  ;;  %v869_v14 = vmul.f32 %v2138_v8, %v868_v54 }
 0x41a   :  { %v870_v63 = vadd.f32 %v2138_v8, %v869_v14 }
 0x41c   :  { %1062 = vmatpush.bf16.msrb.mxu0 %v2587_v56  ;;  %1075 = vmatpush.bf16.msrb.mxu1 %v2589_v58  ;;  %v874_v10 = vsel %vm873_vm2, %v2138_v8, %v870_v63 }
 0x41d   :  { %v879_v11 = vsel %vm876_vm3, %v878_v13, %v874_v10 }
 0x420   :  { %1063 = vmatpush.bf16.msrb.mxu0 %v2595_v2  ;;  %1076 = vmatpush.bf16.msrb.mxu1 %v2597_v5 }
 0x424   :  { %1064 = vmatpush.bf16.msrb.mxu0 %v2606_v18  ;;  %1077 = vmatpush.bf16.msrb.mxu1 %v2610_v19 }
 0x428   :  { %1065 = vmatpush.bf16.msrb.mxu0 %v2631_v31  ;;  %1078 = vmatpush.bf16.msrb.mxu1 %v2633_v42 }
 0x42c   :  { %1066 = vmatpush.bf16.msrb.mxu0 %v2636_v45  ;;  %1079 = vmatpush.bf16.msrb.mxu1 %v2640_v48 }
 0x446   :  { %v885_v61 = vpop.permute.xlu2 %884 }
 0x447   :  { %v2746_v62 = vadd.f32 %v885_v61, %v881_v55 }
 0x449   :  { %2139 = vtanh.f32 %v2746_v62 }
 0x44f   :  { %v2140_v39 = vpop.eup %2139 }
 0x450   :  { %v889_v40 = vmul.f32 %v2140_v39, %v879_v11 }
 0x452   :  { %891 = vrot.lane.b32.xlu1 %v889_v40, %s2315_s3  ;;  %v970_v0 = vpack.c.bf16 %v889_v40, %v889_v40 }
 0x454   :  { %972 = vrot.lane.b32.xlu2 %v970_v0, %s2315_s3 }
 0x48c   :  { %v742_v41 = vpop.f32.mrf.mxu0  ;;  %v755_v21 = vpop.f32.mrf.mxu1 }
 0x48d   :  { %v743_v22 = vadd.f32 %v742_v41, %v2713_v50  ;;  %v756_v8 = vadd.f32 %v755_v21, %v2716_v9 }
 0x48f   :  { %v2018_v24 = vmul.f32 -1.442695, %v743_v22  ;;  %v2019_v40 = vmul.f32 -1.442695, %v756_v8 }
 0x491   :  { %2141 = vpow2.f32 %v2018_v24 }
 0x494   :  { %v744_v43 = vpop.f32.mrf.mxu0  ;;  %v757_v30 = vpop.f32.mrf.mxu1 }
 0x497   :  { %v2142_v4 = vpop.eup %2141 }
 0x498   :  { %v762_v44 = vadd.f32 1.0, %v2142_v4 }
 0x49a   :  { %2143 = vrcp.f32 %v762_v44  ;;  %v774_v14 = vand.u32 2147483648, %v762_v44  ;;  %v772_v61 = vand.u32 2147483647, %v762_v44  ;;  %vm768_vm5 = vweird.f32 %v762_v44 }
 0x49b   :  { %2145 = vtanh.f32 %v756_v8 }
 0x49c   :  { %v775_v1 = vor.u32 1.1754944e-38, %v774_v14  ;;  %vm773_vm7 = vcmp.eq.f32.partialorder %v772_v61, 8.507059e+37  ;;  %2147 = vpow2.f32 %v2019_v40 }
 0x4a0   :  { %v2144_v12 = vpop.eup %2143 }
 0x4a1   :  { %v764_v49 = vmul.f32 %v2144_v12, %v762_v44  ;;  %vm769_vm4 = vweird.f32 %v2144_v12  ;;  %v2146_v10 = vpop.eup %2145 }
 0x4a2   :  { %vm770_vm6 = vmor %vm768_vm5, %vm769_vm4  ;;  %v2148_v0 = vpop.eup %2147 }
 0x4a3   :  { %v765_v54 = vsub.f32 1.0, %v764_v49  ;;  %v782_v41 = vadd.f32 1.0, %v2148_v0 }
 0x4a5   :  { %v766_v55 = vmul.f32 %v2144_v12, %v765_v54  ;;  %2149 = vrcp.f32 %v782_v41  ;;  %v794_v49 = vand.u32 2147483648, %v782_v41  ;;  %vm788_vm10 = vweird.f32 %v782_v41 }
 0x4a6   :  { %v792_v8 = vand.u32 2147483647, %v782_v41 }
 0x4a7   :  { %v767_v63 = vadd.f32 %v2144_v12, %v766_v55  ;;  %v795_v14 = vor.u32 1.1754944e-38, %v794_v49 }
 0x4a8   :  { %vm793_vm12 = vcmp.eq.f32.partialorder %v792_v8, 8.507059e+37 }
 0x4a9   :  { %v771_v6 = vsel %vm770_vm6, %v2144_v12, %v767_v63 }
 0x4aa   :  { %v776_v13 = vsel %vm773_vm7, %v775_v1, %v771_v6 }
 0x4ab   :  { %v799_v39 = vmul.f32 %v2146_v10, %v776_v13  ;;  %v2150_v21 = vpop.eup %2149  ;;  %v798_v30 = vmul.f32 %v776_v13, %v2725_v7  ;;  %v190_v7 = vadd.f32 %v2663_v59, %v2530_v57 }
 0x4ac   :  { %v784_v22 = vmul.f32 %v2150_v21, %v782_v41  ;;  %vm789_vm8 = vweird.f32 %v2150_v21 }
 0x4ad   :  { %801 = vrot.lane.b32.xlu0 %v799_v39, %s2315_s3  ;;  %vm790_vm11 = vmor %vm788_vm10, %vm789_vm8 }
 0x4ae   :  { %v973_v11 = vpop.permute.xlu2 %972  ;;  %v785_v24 = vsub.f32 1.0, %v784_v22  ;;  %v203_v22 = vadd.f32 %v2665_v60, %v2533_v3 }
 0x4af   :  { %2026 = vmatmul.msk.bf16.vlgmr.msra.gmra.mxu0 %vm382_vm9, %v973_v11  ;;  %2027 = vmatmul.msk.bf16.vlgmr.msra.gmra.mxu1 %vm382_vm9, %v973_v11 }
 0x4b0   :  { %1307 = vmatpush.bf16.msra.mxu0 %v2440_v17  ;;  %1320 = vmatpush.bf16.msra.mxu1 %v2448_v20  ;;  %v786_v43 = vmul.f32 %v2150_v21, %v785_v24 }
 0x4b2   :  { %v787_v12 = vadd.f32 %v2150_v21, %v786_v43 }
 0x4b4   :  { %1308 = vmatpush.bf16.msra.mxu0 %v2459_v23  ;;  %1321 = vmatpush.bf16.msra.mxu1 %v2468_v26  ;;  %v791_v54 = vsel %vm790_vm11, %v2150_v21, %v787_v12 }
 0x4b5   :  { %v796_v61 = vsel %vm793_vm12, %v795_v14, %v791_v54 }
 0x4b8   :  { %1309 = vmatpush.bf16.msra.mxu0 %v2477_v29  ;;  %1322 = vmatpush.bf16.msra.mxu1 %v2486_v32 }
 0x4bc   :  { %1310 = vmatpush.bf16.msra.mxu0 %v2498_v36  ;;  %1323 = vmatpush.bf16.msra.mxu1 %v2501_v37 }
 0x4c4   :  { %v892_v1 = vpop.permute.xlu1 %891 }
 0x51f   :  { %v802_v4 = vpop.permute.xlu0 %801 }
 0x520   :  { %v2765_v44 = vadd.f32 %v802_v4, %v798_v30 }
 0x522   :  { %2151 = vtanh.f32 %v2765_v44 }
 0x528   :  { %v2152_v55 = vpop.eup %2151 }
 0x529   :  { %v806_v63 = vmul.f32 %v2152_v55, %v796_v61 }
 0x52b   :  { %v894_v6 = vsel %vm382_vm9, %v892_v1, %v806_v63 }
 0x52c   :  { %v986_v10 = vpop.f32.mrf.mxu0  ;;  %v999_v13 = vpop.f32.mrf.mxu1  ;;  %v895_v39 = vpack.c.bf16 %v894_v6, %v894_v6 }
 0x52d   :  { %v1003_v11 = vadd.f32 %v986_v10, %v190_v7  ;;  %v1004_v43 = vadd.f32 %v999_v13, %v203_v22 }
 0x52e   :  { %904 = vmatmul.bf16.vlgmr.msrb.gmra.mxu2 %v895_v39  ;;  %917 = vmatmul.bf16.vlgmr.msrb.gmra.mxu3 %v895_v39 }
 0x52f   :  { %v2028_v40 = vmul.f32 -1.442695, %v1003_v11  ;;  %1222 = vmatpush.bf16.msrb.mxu2 %v2560_v15  ;;  %1235 = vmatpush.bf16.msrb.mxu3 %v2562_v16  ;;  %v2029_v1 = vmul.f32 -1.442695, %v1004_v43 }
 0x531   :  { %2153 = vpow2.f32 %v2028_v40 }
 0x533   :  { %1223 = vmatpush.bf16.msrb.mxu2 %v2569_v25  ;;  %1236 = vmatpush.bf16.msrb.mxu3 %v2571_v27 }
 0x534   :  { %v988_v0 = vpop.f32.mrf.mxu0  ;;  %v1001_v59 = vpop.f32.mrf.mxu1 }
 0x537   :  { %v2154_v41 = vpop.eup %2153  ;;  %1224 = vmatpush.bf16.msrb.mxu2 %v2580_v35  ;;  %1237 = vmatpush.bf16.msrb.mxu3 %v2582_v38 }
 0x538   :  { %v1008_v21 = vadd.f32 1.0, %v2154_v41 }
 0x53a   :  { %2155 = vrcp.f32 %v1008_v21  ;;  %v1020_v12 = vand.u32 2147483648, %v1008_v21  ;;  %v1018_v8 = vand.u32 2147483647, %v1008_v21  ;;  %vm1014_vm14 = vweird.f32 %v1008_v21 }
 0x53b   :  { %1225 = vmatpush.bf16.msrb.mxu2 %v2587_v56  ;;  %1238 = vmatpush.bf16.msrb.mxu3 %v2589_v58  ;;  %2157 = vtanh.f32 %v1004_v43 }
 0x53c   :  { %v1021_v60 = vor.u32 1.1754944e-38, %v1020_v12  ;;  %vm1019_vm0 = vcmp.eq.f32.partialorder %v1018_v8, 8.507059e+37  ;;  %2159 = vpow2.f32 %v2029_v1 }
 0x53f   :  { %1226 = vmatpush.bf16.msrb.mxu2 %v2595_v2  ;;  %1239 = vmatpush.bf16.msrb.mxu3 %v2597_v5 }
 0x540   :  { %v2156_v24 = vpop.eup %2155 }
 0x541   :  { %v1010_v30 = vmul.f32 %v2156_v24, %v1008_v21  ;;  %vm1015_vm13 = vweird.f32 %v2156_v24  ;;  %v2158_v55 = vpop.eup %2157 }
 0x542   :  { %vm1016_vm15 = vmor %vm1014_vm14, %vm1015_vm13  ;;  %v2160_v7 = vpop.eup %2159 }
 0x543   :  { %v1011_v4 = vsub.f32 1.0, %v1010_v30  ;;  %1227 = vmatpush.bf16.msrb.mxu2 %v2606_v18  ;;  %1240 = vmatpush.bf16.msrb.mxu3 %v2610_v19  ;;  %v1028_v6 = vadd.f32 1.0, %v2160_v7 }
 0x545   :  { %v1012_v49 = vmul.f32 %v2156_v24, %v1011_v4  ;;  %2161 = vrcp.f32 %v1028_v6  ;;  %v1040_v21 = vand.u32 2147483648, %v1028_v6  ;;  %vm1034_vm2 = vweird.f32 %v1028_v6 }
 0x546   :  { %v1038_v22 = vand.u32 2147483647, %v1028_v6 }
 0x547   :  { %v1013_v54 = vadd.f32 %v2156_v24, %v1012_v49  ;;  %1228 = vmatpush.bf16.msrb.mxu2 %v2631_v31  ;;  %1241 = vmatpush.bf16.msrb.mxu3 %v2633_v42  ;;  %v1041_v43 = vor.u32 1.1754944e-38, %v1040_v21 }
 0x548   :  { %vm1039_vm4 = vcmp.eq.f32.partialorder %v1038_v22, 8.507059e+37 }
 0x549   :  { %v1017_v14 = vsel %vm1016_vm15, %v2156_v24, %v1013_v54 }
 0x54a   :  { %v1022_v61 = vsel %vm1019_vm0, %v1021_v60, %v1017_v14 }
 0x54b   :  { %v1045_v63 = vmul.f32 %v2158_v55, %v1022_v61  ;;  %1229 = vmatpush.bf16.msrb.mxu2 %v2636_v45  ;;  %1242 = vmatpush.bf16.msrb.mxu3 %v2640_v48  ;;  %v2162_v10 = vpop.eup %2161  ;;  %v1044_v40 = vmul.f32 %v1022_v61, %v2746_v62 }
 0x54c   :  { %v1030_v13 = vmul.f32 %v2162_v10, %v1028_v6  ;;  %vm1035_vm1 = vweird.f32 %v2162_v10 }
 0x54d   :  { %1047 = vrot.lane.b32.xlu2 %v1045_v63, %s2315_s3  ;;  %vm1036_vm3 = vmor %vm1034_vm2, %vm1035_vm1 }
 0x54e   :  { %v1031_v39 = vsub.f32 1.0, %v1030_v13 }
 0x550   :  { %v1032_v11 = vmul.f32 %v2162_v10, %v1031_v39 }
 0x552   :  { %v1033_v41 = vadd.f32 %v2162_v10, %v1032_v11 }
 0x554   :  { %v1037_v24 = vsel %vm1036_vm3, %v2162_v10, %v1033_v41 }
 0x555   :  { %v1042_v4 = vsel %vm1039_vm4, %v1041_v43, %v1037_v24 }
 0x5a7   :  { %v1048_v0 = vpop.permute.xlu2 %1047 }
 0x5a8   :  { %v2791_v59 = vadd.f32 %v1048_v0, %v1044_v40 }
 0x5aa   :  { %2163 = vtanh.f32 %v2791_v59 }
 0x5b0   :  { %v2164_v30 = vpop.eup %2163 }
 0x5b1   :  { %v905_v12 = vpop.f32.mrf.mxu2  ;;  %v918_v49 = vpop.f32.mrf.mxu3  ;;  %v1052_v8 = vmul.f32 %v2164_v30, %v1042_v4 }
 0x5b2   :  { %v906_v62 = vadd.f32 %v905_v12, %v2713_v50  ;;  %v919_v7 = vadd.f32 %v918_v49, %v2716_v9 }
 0x5b3   :  { %1054 = vrot.lane.b32.xlu2 %v1052_v8, %s2315_s3  ;;  %v1133_v54 = vpack.c.bf16 %v1052_v8, %v1052_v8 }
 0x5b4   :  { %v2024_v60 = vmul.f32 -1.442695, %v906_v62  ;;  %v2025_v43 = vmul.f32 -1.442695, %v919_v7 }
 0x5b5   :  { %1135 = vrot.lane.b32.xlu0 %v1133_v54, %s2315_s3 }
 0x5b6   :  { %2165 = vpow2.f32 %v2024_v60 }
 0x5b9   :  { %v907_v14 = vpop.f32.mrf.mxu2  ;;  %v920_v55 = vpop.f32.mrf.mxu3 }
 0x5bc   :  { %v2166_v61 = vpop.eup %2165 }
 0x5bd   :  { %v925_v63 = vadd.f32 1.0, %v2166_v61 }
 0x5bf   :  { %2167 = vrcp.f32 %v925_v63  ;;  %v937_v13 = vand.u32 2147483648, %v925_v63  ;;  %v935_v11 = vand.u32 2147483647, %v925_v63  ;;  %vm931_vm6 = vweird.f32 %v925_v63 }
 0x5c0   :  { %2169 = vtanh.f32 %v919_v7 }
 0x5c1   :  { %v938_v0 = vor.u32 1.1754944e-38, %v937_v13  ;;  %vm936_vm8 = vcmp.eq.f32.partialorder %v935_v11, 8.507059e+37  ;;  %2171 = vpow2.f32 %v2025_v43 }
 0x5c5   :  { %v2168_v1 = vpop.eup %2167 }
 0x5c6   :  { %v927_v6 = vmul.f32 %v2168_v1, %v925_v63  ;;  %vm932_vm5 = vweird.f32 %v2168_v1  ;;  %v2170_v21 = vpop.eup %2169 }
 0x5c7   :  { %vm933_vm7 = vmor %vm931_vm6, %vm932_vm5  ;;  %v2172_v4 = vpop.eup %2171 }
 0x5c8   :  { %v928_v10 = vsub.f32 1.0, %v927_v6  ;;  %v945_v12 = vadd.f32 1.0, %v2172_v4 }
 0x5ca   :  { %v929_v39 = vmul.f32 %v2168_v1, %v928_v10  ;;  %2173 = vrcp.f32 %v945_v12  ;;  %v957_v63 = vand.u32 2147483648, %v945_v12  ;;  %vm951_vm11 = vweird.f32 %v945_v12 }
 0x5cc   :  { %v930_v40 = vadd.f32 %v2168_v1, %v929_v39  ;;  %v958_v6 = vor.u32 1.1754944e-38, %v957_v63 }
 0x5ce   :  { %v934_v41 = vsel %vm933_vm7, %v2168_v1, %v930_v40  ;;  %v955_v1 = vand.u32 2147483647, %v945_v12 }
 0x5cf   :  { %v939_v22 = vsel %vm936_vm8, %v938_v0, %v934_v41  ;;  %v222_v0 = vadd.f32 %v2519_v46, %v2530_v57 }
 0x5d0   :  { %v962_v24 = vmul.f32 %v2170_v21, %v939_v22  ;;  %v2174_v49 = vpop.eup %2173  ;;  %v961_v60 = vmul.f32 %v939_v22, %v2765_v44  ;;  %vm956_vm13 = vcmp.eq.f32.partialorder %v955_v1, 8.507059e+37 }
 0x5d1   :  { %v947_v8 = vmul.f32 %v2174_v49, %v945_v12  ;;  %vm952_vm10 = vweird.f32 %v2174_v49 }
 0x5d2   :  { %964 = vrot.lane.b32.xlu1 %v962_v24, %s2315_s3  ;;  %vm953_vm12 = vmor %vm951_vm11, %vm952_vm10 }
 0x5d3   :  { %v948_v62 = vsub.f32 1.0, %v947_v8 }
 0x5d5   :  { %v949_v54 = vmul.f32 %v2174_v49, %v948_v62 }
 0x5d7   :  { %v950_v61 = vadd.f32 %v2174_v49, %v949_v54 }
 0x5d9   :  { %v954_v7 = vsel %vm953_vm12, %v2174_v49, %v950_v61  ;;  %v235_v49 = vadd.f32 %v2521_v47, %v2533_v3 }
 0x5da   :  { %v959_v13 = vsel %vm956_vm13, %v958_v6, %v954_v7 }
 0x60d   :  { %v1055_v11 = vpop.permute.xlu2 %1054 }
 0x627   :  { %v1136_v30 = vpop.permute.xlu0 %1135 }
 0x628   :  { %2032 = vmatmul.msk.bf16.vlgmr.msra.gmra.mxu2 %vm382_vm9, %v1136_v30  ;;  %2033 = vmatmul.msk.bf16.vlgmr.msra.gmra.mxu3 %vm382_vm9, %v1136_v30 }
 0x629   :  { %1470 = vmatpush.bf16.msra.mxu2 %v2440_v17  ;;  %1483 = vmatpush.bf16.msra.mxu3 %v2448_v20 }
 0x62d   :  { %1471 = vmatpush.bf16.msra.mxu2 %v2459_v23  ;;  %1484 = vmatpush.bf16.msra.mxu3 %v2468_v26 }
 0x631   :  { %1472 = vmatpush.bf16.msra.mxu2 %v2477_v29  ;;  %1485 = vmatpush.bf16.msra.mxu3 %v2486_v32 }
 0x635   :  { %1473 = vmatpush.bf16.msra.mxu2 %v2498_v36  ;;  %1486 = vmatpush.bf16.msra.mxu3 %v2501_v37 }
 0x644   :  { %v965_v14 = vpop.permute.xlu1 %964 }
 0x645   :  { %v2810_v55 = vadd.f32 %v965_v14, %v961_v60 }
 0x647   :  { %2175 = vtanh.f32 %v2810_v55 }
 0x64d   :  { %v2176_v10 = vpop.eup %2175 }
 0x64e   :  { %v969_v39 = vmul.f32 %v2176_v10, %v959_v13 }
 0x650   :  { %v1057_v44 = vsel %vm382_vm9, %v1055_v11, %v969_v39 }
 0x651   :  { %v1058_v40 = vpack.c.bf16 %v1057_v44, %v1057_v44 }
 0x653   :  { %1067 = vmatmul.bf16.vlgmr.msrb.gmra.mxu0 %v1058_v40  ;;  %1080 = vmatmul.bf16.vlgmr.msrb.gmra.mxu1 %v1058_v40 }
 0x654   :  { %1385 = vmatpush.bf16.msrb.mxu0 %v2560_v15  ;;  %1398 = vmatpush.bf16.msrb.mxu1 %v2562_v16 }
 0x658   :  { %1386 = vmatpush.bf16.msrb.mxu0 %v2569_v25  ;;  %1399 = vmatpush.bf16.msrb.mxu1 %v2571_v27 }
 0x65c   :  { %1387 = vmatpush.bf16.msrb.mxu0 %v2580_v35  ;;  %1400 = vmatpush.bf16.msrb.mxu1 %v2582_v38 }
 0x660   :  { %1388 = vmatpush.bf16.msrb.mxu0 %v2587_v56  ;;  %1401 = vmatpush.bf16.msrb.mxu1 %v2589_v58 }
 0x664   :  { %1389 = vmatpush.bf16.msrb.mxu0 %v2595_v2  ;;  %1402 = vmatpush.bf16.msrb.mxu1 %v2597_v5 }
 0x668   :  { %1390 = vmatpush.bf16.msrb.mxu0 %v2606_v18  ;;  %1403 = vmatpush.bf16.msrb.mxu1 %v2610_v19 }
 0x66c   :  { %1391 = vmatpush.bf16.msrb.mxu0 %v2631_v31  ;;  %1404 = vmatpush.bf16.msrb.mxu1 %v2633_v42 }
 0x670   :  { %1392 = vmatpush.bf16.msrb.mxu0 %v2636_v45  ;;  %1405 = vmatpush.bf16.msrb.mxu1 %v2640_v48 }
 0x6ab   :  { %v1149_v41 = vpop.f32.mrf.mxu2  ;;  %v1162_v21 = vpop.f32.mrf.mxu3 }
 0x6ac   :  { %v1166_v22 = vadd.f32 %v1149_v41, %v222_v0  ;;  %v1167_v62 = vadd.f32 %v1162_v21, %v235_v49 }
 0x6ae   :  { %v2034_v24 = vmul.f32 -1.442695, %v1166_v22 }
 0x6b0   :  { %2177 = vpow2.f32 %v2034_v24 }
 0x6b3   :  { %v1151_v43 = vpop.f32.mrf.mxu2  ;;  %v1164_v30 = vpop.f32.mrf.mxu3 }
 0x6b6   :  { %v2178_v4 = vpop.eup %2177 }
 0x6b7   :  { %v1171_v12 = vadd.f32 1.0, %v2178_v4 }
 0x6b9   :  { %2179 = vrcp.f32 %v1171_v12  ;;  %v1183_v14 = vand.u32 2147483648, %v1171_v12  ;;  %v1181_v61 = vand.u32 2147483647, %v1171_v12  ;;  %vm1177_vm15 = vweird.f32 %v1171_v12 }
 0x6ba   :  { %2181 = vtanh.f32 %v1167_v62 }
 0x6bb   :  { %v1184_v1 = vor.u32 1.1754944e-38, %v1183_v14  ;;  %vm1182_vm1 = vcmp.eq.f32.partialorder %v1181_v61, 8.507059e+37 }
 0x6bf   :  { %v2180_v8 = vpop.eup %2179 }
 0x6c0   :  { %v1173_v54 = vmul.f32 %v2180_v8, %v1171_v12  ;;  %vm1178_vm14 = vweird.f32 %v2180_v8  ;;  %v2182_v6 = vpop.eup %2181 }
 0x6c1   :  { %vm1179_vm0 = vmor %vm1177_vm15, %vm1178_vm14 }
 0x6c2   :  { %v1174_v60 = vsub.f32 1.0, %v1173_v54 }
 0x6c4   :  { %v1175_v46 = vmul.f32 %v2180_v8, %v1174_v60 }
 0x6c6   :  { %v1176_v63 = vadd.f32 %v2180_v8, %v1175_v46 }
 0x6c8   :  { %v1180_v7 = vsel %vm1179_vm0, %v2180_v8, %v1176_v63  ;;  %v2035_v63 = vmul.f32 -1.442695, %v1167_v62 }
 0x6c9   :  { %v1185_v10 = vsel %vm1182_vm1, %v1184_v1, %v1180_v7 }
 0x6ca   :  { %v1208_v13 = vmul.f32 %v2182_v6, %v1185_v10 }
 0x6cc   :  { %1210 = vrot.lane.b32.xlu0 %v1208_v13, %s2315_s3 }
 0x6d0   :  { %v1068_v47 = vpop.f32.mrf.mxu0  ;;  %v1081_v39 = vpop.f32.mrf.mxu1 }
 0x6d1   :  { %v1069_v11 = vadd.f32 %v1068_v47, %v2713_v50  ;;  %v1082_v24 = vadd.f32 %v1081_v39, %v2716_v9 }
 0x6d3   :  { %v2030_v44 = vmul.f32 -1.442695, %v1069_v11  ;;  %v1207_v11 = vmul.f32 %v1185_v10, %v2791_v59  ;;  %v2031_v10 = vmul.f32 -1.442695, %v1082_v24 }
 0x6d5   :  { %2183 = vpow2.f32 %v2030_v44 }
 0x6d8   :  { %v1070_v40 = vpop.f32.mrf.mxu0  ;;  %v1083_v0 = vpop.f32.mrf.mxu1 }
 0x6db   :  { %v2184_v41 = vpop.eup %2183 }
 0x6dc   :  { %v1088_v21 = vadd.f32 1.0, %v2184_v41 }
 0x6de   :  { %2185 = vrcp.f32 %v1088_v21  ;;  %v1100_v4 = vand.u32 2147483648, %v1088_v21  ;;  %v1098_v49 = vand.u32 2147483647, %v1088_v21  ;;  %vm1094_vm3 = vweird.f32 %v1088_v21 }
 0x6df   :  { %2187 = vtanh.f32 %v1082_v24 }
 0x6e0   :  { %v1101_v54 = vor.u32 1.1754944e-38, %v1100_v4  ;;  %vm1099_vm5 = vcmp.eq.f32.partialorder %v1098_v49, 8.507059e+37  ;;  %2189 = vpow2.f32 %v2035_v63 }
 0x6e4   :  { %v2186_v22 = vpop.eup %2185 }
 0x6e5   :  { %v1090_v43 = vmul.f32 %v2186_v22, %v1088_v21  ;;  %vm1095_vm2 = vweird.f32 %v2186_v22  ;;  %v2188_v14 = vpop.eup %2187 }
 0x6e6   :  { %vm1096_vm4 = vmor %vm1094_vm3, %vm1095_vm2  ;;  %v2190_v1 = vpop.eup %2189 }
 0x6e7   :  { %v1091_v30 = vsub.f32 1.0, %v1090_v43  ;;  %v1191_v7 = vadd.f32 1.0, %v2190_v1 }
 0x6e9   :  { %v1092_v12 = vmul.f32 %v2186_v22, %v1091_v30  ;;  %2191 = vrcp.f32 %v1191_v7  ;;  %v1203_v41 = vand.u32 2147483648, %v1191_v7  ;;  %vm1197_vm7 = vweird.f32 %v1191_v7 }
 0x6ea   :  { %v1201_v62 = vand.u32 2147483647, %v1191_v7 }
 0x6eb   :  { %v1093_v8 = vadd.f32 %v2186_v22, %v1092_v12 }
 0x6ec   :  { %vm1202_vm10 = vcmp.eq.f32.partialorder %v1201_v62, 8.507059e+37 }
 0x6ed   :  { %v1097_v60 = vsel %vm1096_vm4, %v2186_v22, %v1093_v8  ;;  %v1204_v22 = vor.u32 1.1754944e-38, %v1203_v41 }
 0x6ee   :  { %v1102_v46 = vsel %vm1099_vm5, %v1101_v54, %v1097_v60 }
 0x6ef   :  { %v1125_v61 = vmul.f32 %v2188_v14, %v1102_v46  ;;  %v2192_v6 = vpop.eup %2191 }
 0x6f0   :  { %v1193_v13 = vmul.f32 %v2192_v6, %v1191_v7  ;;  %vm1198_vm6 = vweird.f32 %v2192_v6 }
 0x6f1   :  { %1127 = vrot.lane.b32.xlu2 %v1125_v61, %s2315_s3  ;;  %vm1199_vm8 = vmor %vm1197_vm7, %vm1198_vm6  ;;  %v1124_v61 = vmul.f32 %v1102_v46, %v2810_v55 }
 0x6f2   :  { %v1194_v47 = vsub.f32 1.0, %v1193_v13 }
 0x6f4   :  { %v1195_v39 = vmul.f32 %v2192_v6, %v1194_v47 }
 0x6f6   :  { %v1196_v0 = vadd.f32 %v2192_v6, %v1195_v39 }
 0x6f8   :  { %v1200_v21 = vsel %vm1199_vm8, %v2192_v6, %v1196_v0 }
 0x6f9   :  { %v1205_v30 = vsel %vm1202_vm10, %v1204_v22, %v1200_v21 }
 0x73e   :  { %v1211_v44 = vpop.permute.xlu0 %1210 }
 0x73f   :  { %v2839_v40 = vadd.f32 %v1211_v44, %v1207_v11 }
 0x741   :  { %2193 = vtanh.f32 %v2839_v40 }
 0x742   :  { %2195 = vpow2.f32 %v2031_v10 }
 0x747   :  { %v2194_v43 = vpop.eup %2193 }
 0x748   :  { %v1215_v4 = vmul.f32 %v2194_v43, %v1205_v30  ;;  %v2196_v12 = vpop.eup %2195 }
 0x749   :  { %v1108_v49 = vadd.f32 1.0, %v2196_v12 }
 0x74a   :  { %1217 = vrot.lane.b32.xlu0 %v1215_v4, %s2315_s3  ;;  %v1296_v59 = vpack.c.bf16 %v1215_v4, %v1215_v4 }
 0x74b   :  { %2197 = vrcp.f32 %v1108_v49  ;;  %v1128_v14 = vpop.permute.xlu2 %1127  ;;  %v1120_v6 = vand.u32 2147483648, %v1108_v49  ;;  %vm1114_vm12 = vweird.f32 %v1108_v49  ;;  %v1118_v24 = vand.u32 2147483647, %v1108_v49 }
 0x74c   :  { %1298 = vrot.lane.b32.xlu1 %v1296_v59, %s2315_s3  ;;  %v2845_v63 = vadd.f32 %v1128_v14, %v1124_v61 }
 0x74d   :  { %v1121_v39 = vor.u32 1.1754944e-38, %v1120_v6  ;;  %vm1119_vm14 = vcmp.eq.f32.partialorder %v1118_v24, 8.507059e+37 }
 0x74e   :  { %2199 = vtanh.f32 %v2845_v63 }
 0x751   :  { %v2198_v8 = vpop.eup %2197 }
 0x752   :  { %v1110_v54 = vmul.f32 %v2198_v8, %v1108_v49  ;;  %vm1115_vm11 = vweird.f32 %v2198_v8 }
 0x753   :  { %vm1116_vm13 = vmor %vm1114_vm12, %vm1115_vm11 }
 0x754   :  { %v1111_v60 = vsub.f32 1.0, %v1110_v54  ;;  %v2200_v47 = vpop.eup %2199 }
 0x756   :  { %v1112_v1 = vmul.f32 %v2198_v8, %v1111_v60 }
 0x758   :  { %v1113_v7 = vadd.f32 %v2198_v8, %v1112_v1 }
 0x75a   :  { %v1117_v13 = vsel %vm1116_vm13, %v2198_v8, %v1113_v7 }
 0x75b   :  { %v1122_v11 = vsel %vm1119_vm14, %v1121_v39, %v1117_v13 }
 0x75c   :  { %v1132_v44 = vmul.f32 %v2200_v47, %v1122_v11 }
 0x7bc   :  { %v1218_v0 = vpop.permute.xlu0 %1217 }
 0x7bd   :  { %v1220_v55 = vsel %vm382_vm9, %v1218_v0, %v1132_v44 }
 0x7be   :  { %v1221_v46 = vpack.c.bf16 %v1220_v55, %v1220_v55  ;;  %v1299_v41 = vpop.permute.xlu1 %1298 }
 0x7bf   :  { %2038 = vmatmul.msk.bf16.vlgmr.msra.gmra.mxu0 %vm382_vm9, %v1299_v41  ;;  %2039 = vmatmul.msk.bf16.vlgmr.msra.gmra.mxu1 %vm382_vm9, %v1299_v41 }
 0x7c0   :  { %1230 = vmatmul.bf16.vlgmr.msrb.gmra.mxu2 %v1221_v46  ;;  %1243 = vmatmul.bf16.vlgmr.msrb.gmra.mxu3 %v1221_v46 }
 0x7c1   :  { %1548 = vmatpush.bf16.msrb.mxu2 %v2560_v15  ;;  %1561 = vmatpush.bf16.msrb.mxu3 %v2562_v16 }
 0x7c2   :  { %1633 = vmatpush.bf16.msra.mxu0 %v2440_v17  ;;  %1646 = vmatpush.bf16.msra.mxu1 %v2448_v20  ;;  %v254_v17 = vadd.f32 %v2692_v51, %v2530_v57  ;;  %v267_v51 = vadd.f32 %v2694_v28, %v2533_v3 }
 0x7c5   :  { %1549 = vmatpush.bf16.msrb.mxu2 %v2569_v25  ;;  %1562 = vmatpush.bf16.msrb.mxu3 %v2571_v27 }
 0x7c6   :  { %1634 = vmatpush.bf16.msra.mxu0 %v2459_v23  ;;  %1647 = vmatpush.bf16.msra.mxu1 %v2468_v26 }
 0x7c9   :  { %1550 = vmatpush.bf16.msrb.mxu2 %v2580_v35  ;;  %1563 = vmatpush.bf16.msrb.mxu3 %v2582_v38 }
 0x7ca   :  { %1635 = vmatpush.bf16.msra.mxu0 %v2477_v29  ;;  %1648 = vmatpush.bf16.msra.mxu1 %v2486_v32 }
 0x7cd   :  { %1551 = vmatpush.bf16.msrb.mxu2 %v2587_v56  ;;  %1564 = vmatpush.bf16.msrb.mxu3 %v2589_v58 }
 0x7ce   :  { %1636 = vmatpush.bf16.msra.mxu0 %v2498_v36  ;;  %1649 = vmatpush.bf16.msra.mxu1 %v2501_v37 }
 0x7d1   :  { %1552 = vmatpush.bf16.msrb.mxu2 %v2595_v2  ;;  %1565 = vmatpush.bf16.msrb.mxu3 %v2597_v5 }
 0x7d5   :  { %1553 = vmatpush.bf16.msrb.mxu2 %v2606_v18  ;;  %1566 = vmatpush.bf16.msrb.mxu3 %v2610_v19 }
 0x7d9   :  { %1554 = vmatpush.bf16.msrb.mxu2 %v2631_v31  ;;  %1567 = vmatpush.bf16.msrb.mxu3 %v2633_v42 }
 0x7dd   :  { %1555 = vmatpush.bf16.msrb.mxu2 %v2636_v45  ;;  %1568 = vmatpush.bf16.msrb.mxu3 %v2640_v48 }
 0x83c   :  { %v1312_v20 = vpop.f32.mrf.mxu0  ;;  %v1325_v23 = vpop.f32.mrf.mxu1 }
 0x83d   :  { %v1329_v26 = vadd.f32 %v1312_v20, %v254_v17  ;;  %v1330_v8 = vadd.f32 %v1325_v23, %v267_v51 }
 0x83f   :  { %v2040_v29 = vmul.f32 -1.442695, %v1329_v26 }
 0x841   :  { %2201 = vpow2.f32 %v2040_v29 }
 0x843   :  { %v1231_v32 = vpop.f32.mrf.mxu2  ;;  %v1244_v36 = vpop.f32.mrf.mxu3 }
 0x844   :  { %v1232_v37 = vadd.f32 %v1231_v32, %v2713_v50  ;;  %v1314_v62 = vpop.f32.mrf.mxu0  ;;  %v1327_v21 = vpop.f32.mrf.mxu1  ;;  %v1245_v6 = vadd.f32 %v1244_v36, %v2716_v9  ;;  %v2041_v36 = vmul.f32 -1.442695, %v1330_v8 }
 0x846   :  { %v2036_v22 = vmul.f32 -1.442695, %v1232_v37 }
 0x847   :  { %v2202_v43 = vpop.eup %2201 }
 0x848   :  { %v1334_v30 = vadd.f32 1.0, %v2202_v43  ;;  %2203 = vpow2.f32 %v2036_v22 }
 0x84a   :  { %2205 = vrcp.f32 %v1334_v30  ;;  %v1346_v14 = vand.u32 2147483648, %v1334_v30  ;;  %v1344_v1 = vand.u32 2147483647, %v1334_v30  ;;  %vm1340_vm0 = vweird.f32 %v1334_v30 }
 0x84b   :  { %v1233_v4 = vpop.f32.mrf.mxu2  ;;  %v1246_v59 = vpop.f32.mrf.mxu3 }
 0x84c   :  { %v1347_v47 = vor.u32 1.1754944e-38, %v1346_v14  ;;  %vm1345_vm2 = vcmp.eq.f32.partialorder %v1344_v1, 8.507059e+37  ;;  %v2037_v1 = vmul.f32 -1.442695, %v1245_v6 }
 0x84e   :  { %v2204_v10 = vpop.eup %2203 }
 0x84f   :  { %v1251_v12 = vadd.f32 1.0, %v2204_v10 }
 0x850   :  { %v2206_v49 = vpop.eup %2205 }
 0x851   :  { %v1336_v54 = vmul.f32 %v2206_v49, %v1334_v30  ;;  %2207 = vrcp.f32 %v1251_v12  ;;  %vm1341_vm15 = vweird.f32 %v2206_v49  ;;  %v1263_v55 = vand.u32 2147483648, %v1251_v12 }
 0x852   :  { %2209 = vtanh.f32 %v1330_v8  ;;  %vm1342_vm1 = vmor %vm1340_vm0, %vm1341_vm15  ;;  %v1261_v41 = vand.u32 2147483647, %v1251_v12  ;;  %vm1257_vm4 = vweird.f32 %v1251_v12 }
 0x853   :  { %v1337_v60 = vsub.f32 1.0, %v1336_v54  ;;  %2211 = vtanh.f32 %v1245_v6  ;;  %v1264_v20 = vor.u32 1.1754944e-38, %v1263_v55 }
 0x854   :  { %vm1262_vm6 = vcmp.eq.f32.partialorder %v1261_v41, 8.507059e+37  ;;  %2213 = vpow2.f32 %v2041_v36 }
 0x855   :  { %v1338_v61 = vmul.f32 %v2206_v49, %v1337_v60 }
 0x857   :  { %v2208_v7 = vpop.eup %2207  ;;  %v1339_v24 = vadd.f32 %v2206_v49, %v1338_v61 }
 0x858   :  { %v1253_v13 = vmul.f32 %v2208_v7, %v1251_v12  ;;  %v2210_v39 = vpop.eup %2209  ;;  %vm1258_vm3 = vweird.f32 %v2208_v7 }
 0x859   :  { %v1343_v28 = vsel %vm1342_vm1, %v2206_v49, %v1339_v24  ;;  %vm1259_vm5 = vmor %vm1257_vm4, %vm1258_vm3  ;;  %v2212_v26 = vpop.eup %2211 }
 0x85a   :  { %v1348_v11 = vsel %vm1345_vm2, %v1347_v47, %v1343_v28  ;;  %v1254_v44 = vsub.f32 1.0, %v1253_v13  ;;  %v2214_v37 = vpop.eup %2213 }
 0x85b   :  { %v1371_v0 = vmul.f32 %v2210_v39, %v1348_v11  ;;  %v1354_v62 = vadd.f32 1.0, %v2214_v37  ;;  %v1370_v4 = vmul.f32 %v1348_v11, %v2839_v40 }
 0x85c   :  { %v1255_v46 = vmul.f32 %v2208_v7, %v1254_v44 }
 0x85d   :  { %1373 = vrot.lane.b32.xlu1 %v1371_v0, %s2315_s3  ;;  %2215 = vrcp.f32 %v1354_v62  ;;  %v1366_v12 = vand.u32 2147483648, %v1354_v62  ;;  %vm1360_vm8 = vweird.f32 %v1354_v62  ;;  %v1364_v49 = vand.u32 2147483647, %v1354_v62 }
 0x85e   :  { %v1256_v17 = vadd.f32 %v2208_v7, %v1255_v46 }
 0x85f   :  { %v1367_v54 = vor.u32 1.1754944e-38, %v1366_v12  ;;  %vm1365_vm11 = vcmp.eq.f32.partialorder %v1364_v49, 8.507059e+37 }
 0x860   :  { %v1260_v23 = vsel %vm1259_vm5, %v2208_v7, %v1256_v17 }
 0x861   :  { %v1265_v29 = vsel %vm1262_vm6, %v1264_v20, %v1260_v23 }
 0x862   :  { %v1288_v32 = vmul.f32 %v2212_v26, %v1265_v29  ;;  %v1287_v44 = vmul.f32 %v1265_v29, %v2845_v63 }
 0x863   :  { %v2216_v21 = vpop.eup %2215 }
 0x864   :  { %1290 = vrot.lane.b32.xlu0 %v1288_v32, %s2315_s3  ;;  %v1356_v22 = vmul.f32 %v2216_v21, %v1354_v62  ;;  %vm1361_vm7 = vweird.f32 %v2216_v21 }
 0x865   :  { %vm1362_vm10 = vmor %vm1360_vm8, %vm1361_vm7 }
 0x866   :  { %v1357_v43 = vsub.f32 1.0, %v1356_v22 }
 0x868   :  { %v1358_v30 = vmul.f32 %v2216_v21, %v1357_v43 }
 0x86a   :  { %v1359_v51 = vadd.f32 %v2216_v21, %v1358_v30 }
 0x86c   :  { %v1363_v8 = vsel %vm1362_vm10, %v2216_v21, %v1359_v51 }
 0x86d   :  { %v1368_v14 = vsel %vm1365_vm11, %v1367_v54, %v1363_v8 }
 0x8cf   :  { %v1374_v59 = vpop.permute.xlu1 %1373 }
 0x8d0   :  { %v2884_v10 = vadd.f32 %v1374_v59, %v1370_v4 }
 0x8d2   :  { %2217 = vtanh.f32 %v2884_v10 }
 0x8d3   :  { %2219 = vpow2.f32 %v2037_v1 }
 0x8d6   :  { %v1291_v11 = vpop.permute.xlu0 %1290 }
 0x8d7   :  { %v2892_v0 = vadd.f32 %v1291_v11, %v1287_v44 }
 0x8d8   :  { %v2218_v60 = vpop.eup %2217 }
 0x8d9   :  { %v1378_v61 = vmul.f32 %v2218_v60, %v1368_v14  ;;  %v2220_v7 = vpop.eup %2219 }
 0x8da   :  { %v1271_v24 = vadd.f32 1.0, %v2220_v7 }
 0x8db   :  { %1380 = vrot.lane.b32.xlu1 %v1378_v61, %s2315_s3  ;;  %v1459_v40 = vpack.c.bf16 %v1378_v61, %v1378_v61 }
 0x8dc   :  { %2221 = vrcp.f32 %v1271_v24  ;;  %v1283_v46 = vand.u32 2147483648, %v1271_v24  ;;  %vm1277_vm13 = vweird.f32 %v1271_v24  ;;  %v1281_v41 = vand.u32 2147483647, %v1271_v24 }
 0x8dd   :  { %1461 = vrot.lane.b32.xlu2 %v1459_v40, %s2315_s3  ;;  %2223 = vtanh.f32 %v2892_v0 }
 0x8de   :  { %v1284_v23 = vor.u32 1.1754944e-38, %v1283_v46  ;;  %vm1282_vm15 = vcmp.eq.f32.partialorder %v1281_v41, 8.507059e+37 }
 0x8e2   :  { %v2222_v13 = vpop.eup %2221 }
 0x8e3   :  { %v1273_v28 = vmul.f32 %v2222_v13, %v1271_v24  ;;  %vm1278_vm12 = vweird.f32 %v2222_v13  ;;  %v2224_v20 = vpop.eup %2223 }
 0x8e4   :  { %vm1279_vm14 = vmor %vm1277_vm13, %vm1278_vm12 }
 0x8e5   :  { %v1274_v39 = vsub.f32 1.0, %v1273_v28 }
 0x8e7   :  { %v1275_v55 = vmul.f32 %v2222_v13, %v1274_v39 }
 0x8e9   :  { %v1276_v6 = vadd.f32 %v2222_v13, %v1275_v55 }
 0x8eb   :  { %v1280_v17 = vsel %vm1279_vm14, %v2222_v13, %v1276_v6 }
 0x8ec   :  { %v1285_v26 = vsel %vm1282_vm15, %v1284_v23, %v1280_v17 }
 0x8ed   :  { %v1295_v32 = vmul.f32 %v2224_v20, %v1285_v26 }
 0x937   :  { %v1462_v47 = vpop.permute.xlu2 %1461 }
 0x938   :  { %2044 = vmatmul.msk.bf16.vlgmr.msra.gmra.mxu2 %vm382_vm9, %v1462_v47  ;;  %2045 = vmatmul.msk.bf16.vlgmr.msra.gmra.mxu3 %vm382_vm9, %v1462_v47 }
 0x94d   :  { %v1381_v36 = vpop.permute.xlu1 %1380 }
 0x94e   :  { %v1383_v63 = vsel %vm382_vm9, %v1381_v36, %v1295_v32 }
 0x94f   :  { %v1384_v29 = vpack.c.bf16 %v1383_v63, %v1383_v63 }
 0x951   :  { %1393 = vmatmul.bf16.vlgmr.msrb.gmra.mxu0 %v1384_v29  ;;  %1406 = vmatmul.bf16.vlgmr.msrb.gmra.mxu1 %v1384_v29 }
 0x952   :  { %1711 = vmatpush.bf16.msrb.mxu0 %v2560_v15  ;;  %1724 = vmatpush.bf16.msrb.mxu1 %v2562_v16  ;;  %v286_v15 = vadd.f32 %v2523_v52, %v2530_v57 }
 0x956   :  { %1712 = vmatpush.bf16.msrb.mxu0 %v2569_v25  ;;  %1725 = vmatpush.bf16.msrb.mxu1 %v2571_v27 }
 0x95a   :  { %1713 = vmatpush.bf16.msrb.mxu0 %v2580_v35  ;;  %1726 = vmatpush.bf16.msrb.mxu1 %v2582_v38 }
 0x95e   :  { %1714 = vmatpush.bf16.msrb.mxu0 %v2587_v56  ;;  %1727 = vmatpush.bf16.msrb.mxu1 %v2589_v58 }
 0x962   :  { %1715 = vmatpush.bf16.msrb.mxu0 %v2595_v2  ;;  %1728 = vmatpush.bf16.msrb.mxu1 %v2597_v5  ;;  %v299_v5 = vadd.f32 %v2525_v53, %v2533_v3 }
 0x966   :  { %1716 = vmatpush.bf16.msrb.mxu0 %v2606_v18  ;;  %1729 = vmatpush.bf16.msrb.mxu1 %v2610_v19 }
 0x96a   :  { %1717 = vmatpush.bf16.msrb.mxu0 %v2631_v31  ;;  %1730 = vmatpush.bf16.msrb.mxu1 %v2633_v42 }
 0x96e   :  { %1718 = vmatpush.bf16.msrb.mxu0 %v2636_v45  ;;  %1731 = vmatpush.bf16.msrb.mxu1 %v2640_v48 }
 0x9bb   :  { %v1475_v16 = vpop.f32.mrf.mxu2  ;;  %v1488_v25 = vpop.f32.mrf.mxu3 }
 0x9bc   :  { %v1492_v27 = vadd.f32 %v1475_v16, %v286_v15  ;;  %v1493_v18 = vadd.f32 %v1488_v25, %v299_v5 }
 0x9be   :  { %v2046_v35 = vmul.f32 -1.442695, %v1492_v27  ;;  %v2047_v55 = vmul.f32 -1.442695, %v1493_v18 }
 0x9c0   :  { %2225 = vpow2.f32 %v2046_v35 }
 0x9c3   :  { %v1477_v38 = vpop.f32.mrf.mxu2  ;;  %v1490_v56 = vpop.f32.mrf.mxu3 }
 0x9c6   :  { %v2226_v58 = vpop.eup %2225 }
 0x9c7   :  { %v1497_v2 = vadd.f32 1.0, %v2226_v58 }
 0x9c9   :  { %2227 = vrcp.f32 %v1497_v2  ;;  %v1509_v62 = vand.u32 2147483648, %v1497_v2  ;;  %v1507_v22 = vand.u32 2147483647, %v1497_v2  ;;  %vm1503_vm1 = vweird.f32 %v1497_v2 }
 0x9ca   :  { %2229 = vtanh.f32 %v1493_v18 }
 0x9cb   :  { %v1510_v53 = vor.u32 1.1754944e-38, %v1509_v62  ;;  %vm1508_vm3 = vcmp.eq.f32.partialorder %v1507_v22, 8.507059e+37 }
 0x9ce   :  { %v1394_v19 = vpop.f32.mrf.mxu0  ;;  %v1407_v31 = vpop.f32.mrf.mxu1 }
 0x9cf   :  { %v2228_v42 = vpop.eup %2227  ;;  %v1395_v45 = vadd.f32 %v1394_v19, %v2713_v50  ;;  %v1408_v14 = vadd.f32 %v1407_v31, %v2716_v9 }
 0x9d0   :  { %v1499_v52 = vmul.f32 %v2228_v42, %v1497_v2  ;;  %vm1504_vm0 = vweird.f32 %v2228_v42  ;;  %v2230_v59 = vpop.eup %2229 }
 0x9d1   :  { %v2042_v48 = vmul.f32 -1.442695, %v1395_v45  ;;  %vm1505_vm2 = vmor %vm1503_vm1, %vm1504_vm0  ;;  %v2043_v56 = vmul.f32 -1.442695, %v1408_v14 }
 0x9d2   :  { %v1500_v37 = vsub.f32 1.0, %v1499_v52 }
 0x9d3   :  { %2231 = vpow2.f32 %v2042_v48 }
 0x9d4   :  { %v1501_v21 = vmul.f32 %v2228_v42, %v1500_v37 }
 0x9d6   :  { %v1396_v43 = vpop.f32.mrf.mxu0  ;;  %v1409_v30 = vpop.f32.mrf.mxu1  ;;  %v1502_v4 = vadd.f32 %v2228_v42, %v1501_v21 }
 0x9d8   :  { %v1506_v51 = vsel %vm1505_vm2, %v2228_v42, %v1502_v4 }
 0x9d9   :  { %v2232_v12 = vpop.eup %2231  ;;  %v1511_v49 = vsel %vm1508_vm3, %v1510_v53, %v1506_v51 }
 0x9da   :  { %v1414_v8 = vadd.f32 1.0, %v2232_v12  ;;  %v1534_v54 = vmul.f32 %v2230_v59, %v1511_v49  ;;  %v1533_v26 = vmul.f32 %v1511_v49, %v2884_v10 }
 0x9dc   :  { %2233 = vrcp.f32 %v1414_v8  ;;  %1536 = vrot.lane.b32.xlu2 %v1534_v54, %s2315_s3  ;;  %v1426_v1 = vand.u32 2147483648, %v1414_v8  ;;  %v1424_v24 = vand.u32 2147483647, %v1414_v8  ;;  %vm1420_vm5 = vweird.f32 %v1414_v8 }
 0x9dd   :  { %2235 = vtanh.f32 %v1408_v14 }
 0x9de   :  { %v1427_v47 = vor.u32 1.1754944e-38, %v1426_v1  ;;  %vm1425_vm7 = vcmp.eq.f32.partialorder %v1424_v24, 8.507059e+37  ;;  %2237 = vpow2.f32 %v2047_v55  ;;  %v318_v1 = vadd.f32 %v2696_v33, %v2530_v57 }
 0x9e2   :  { %v2234_v60 = vpop.eup %2233 }
 0x9e3   :  { %v1416_v61 = vmul.f32 %v2234_v60, %v1414_v8  ;;  %vm1421_vm4 = vweird.f32 %v2234_v60  ;;  %v2236_v39 = vpop.eup %2235 }
 0x9e4   :  { %vm1422_vm6 = vmor %vm1420_vm5, %vm1421_vm4  ;;  %v2238_v6 = vpop.eup %2237 }
 0x9e5   :  { %v1417_v40 = vsub.f32 1.0, %v1416_v61  ;;  %v1517_v46 = vadd.f32 1.0, %v2238_v6 }
 0x9e7   :  { %v1418_v7 = vmul.f32 %v2234_v60, %v1417_v40  ;;  %2239 = vrcp.f32 %v1517_v46  ;;  %v1529_v29 = vand.u32 2147483648, %v1517_v46  ;;  %vm1523_vm10 = vweird.f32 %v1517_v46 }
 0x9e8   :  { %v1527_v15 = vand.u32 2147483647, %v1517_v46 }
 0x9e9   :  { %v1419_v13 = vadd.f32 %v2234_v60, %v1418_v7  ;;  %v1530_v25 = vor.u32 1.1754944e-38, %v1529_v29 }
 0x9ea   :  { %vm1528_vm12 = vcmp.eq.f32.partialorder %v1527_v15, 8.507059e+37  ;;  %v331_v15 = vadd.f32 %v2698_v34, %v2533_v3 }
 0x9eb   :  { %v1423_v28 = vsel %vm1422_vm6, %v2234_v60, %v1419_v13 }
 0x9ec   :  { %v1428_v11 = vsel %vm1425_vm7, %v1427_v47, %v1423_v28 }
 0x9ed   :  { %v1451_v44 = vmul.f32 %v2236_v39, %v1428_v11  ;;  %v2240_v41 = vpop.eup %2239  ;;  %v1450_v42 = vmul.f32 %v1428_v11, %v2892_v0 }
 0x9ee   :  { %v1519_v17 = vmul.f32 %v2240_v41, %v1517_v46  ;;  %vm1524_vm8 = vweird.f32 %v2240_v41 }
 0x9ef   :  { %1453 = vrot.lane.b32.xlu1 %v1451_v44, %s2315_s3  ;;  %vm1525_vm11 = vmor %vm1523_vm10, %vm1524_vm8 }
 0x9f0   :  { %v1520_v20 = vsub.f32 1.0, %v1519_v17 }
 0x9f2   :  { %v1521_v23 = vmul.f32 %v2240_v41, %v1520_v20 }
 0x9f4   :  { %v1522_v63 = vadd.f32 %v2240_v41, %v1521_v23 }
 0x9f6   :  { %v1526_v16 = vsel %vm1525_vm11, %v2240_v41, %v1522_v63 }
 0x9f7   :  { %v1531_v35 = vsel %vm1528_vm12, %v1530_v25, %v1526_v16 }
 0xa36   :  { %v1537_v32 = vpop.permute.xlu2 %1536 }
 0xa37   :  { %v2921_v36 = vadd.f32 %v1537_v32, %v1533_v26 }
 0xa39   :  { %2241 = vtanh.f32 %v2921_v36 }
 0xa3a   :  { %2243 = vpow2.f32 %v2043_v56 }
 0xa3f   :  { %v2242_v27 = vpop.eup %2241 }
 0xa40   :  { %v1541_v38 = vmul.f32 %v2242_v27, %v1531_v35  ;;  %v2244_v58 = vpop.eup %2243 }
 0xa41   :  { %v1434_v2 = vadd.f32 1.0, %v2244_v58 }
 0xa42   :  { %1543 = vrot.lane.b32.xlu2 %v1541_v38, %s2315_s3  ;;  %v1622_v10 = vpack.c.bf16 %v1541_v38, %v1541_v38 }
 0xa43   :  { %2245 = vrcp.f32 %v1434_v2  ;;  %v1446_v37 = vand.u32 2147483648, %v1434_v2  ;;  %vm1440_vm14 = vweird.f32 %v1434_v2  ;;  %v1444_v62 = vand.u32 2147483647, %v1434_v2 }
 0xa44   :  { %1624 = vrot.lane.b32.xlu0 %v1622_v10, %s2315_s3 }
 0xa45   :  { %v1447_v43 = vor.u32 1.1754944e-38, %v1446_v37  ;;  %vm1445_vm0 = vcmp.eq.f32.partialorder %v1444_v62, 8.507059e+37 }
 0xa49   :  { %v2246_v5 = vpop.eup %2245 }
 0xa4a   :  { %v1436_v18 = vmul.f32 %v2246_v5, %v1434_v2  ;;  %vm1441_vm13 = vweird.f32 %v2246_v5 }
 0xa4b   :  { %vm1442_vm15 = vmor %vm1440_vm14, %vm1441_vm13 }
 0xa4c   :  { %v1437_v19 = vsub.f32 1.0, %v1436_v18 }
 0xa4e   :  { %v1438_v52 = vmul.f32 %v2246_v5, %v1437_v19 }
 0xa50   :  { %v1439_v48 = vadd.f32 %v2246_v5, %v1438_v52 }
 0xa52   :  { %v1443_v21 = vsel %vm1442_vm15, %v2246_v5, %v1439_v48 }
 0xa53   :  { %v1448_v30 = vsel %vm1445_vm0, %v1447_v43, %v1443_v21 }
 0xa61   :  { %v1454_v31 = vpop.permute.xlu1 %1453 }
 0xa62   :  { %v2927_v45 = vadd.f32 %v1454_v31, %v1450_v42 }
 0xa64   :  { %2247 = vtanh.f32 %v2927_v45 }
 0xa6a   :  { %v2248_v22 = vpop.eup %2247 }
 0xa6b   :  { %v1458_v4 = vmul.f32 %v2248_v22, %v1448_v30 }
 0xa9c   :  { %v1544_v53 = vpop.permute.xlu2 %1543 }
 0xa9d   :  { %v1546_v0 = vsel %vm382_vm9, %v1544_v53, %v1458_v4 }
 0xa9e   :  { %v1547_v59 = vpack.c.bf16 %v1546_v0, %v1546_v0 }
 0xaa0   :  { %1556 = vmatmul.bf16.vlgmr.msrb.gmra.mxu2 %v1547_v59  ;;  %1569 = vmatmul.bf16.vlgmr.msrb.gmra.mxu3 %v1547_v59 }
 0xab6   :  { %v1625_v51 = vpop.permute.xlu0 %1624 }
 0xab7   :  { %2050 = vmatmul.msk.bf16.vlgmr.msra.gmra.mxu0 %vm382_vm9, %v1625_v51  ;;  %2051 = vmatmul.msk.bf16.vlgmr.msra.gmra.mxu1 %vm382_vm9, %v1625_v51 }
 0xb23   :  { %v1557_v12 = vpop.f32.mrf.mxu2  ;;  %v1570_v49 = vpop.f32.mrf.mxu3 }
 0xb24   :  { %v1558_v8 = vadd.f32 %v1557_v12, %v2713_v50  ;;  %v2937_v28 = vadd.f32 %v1570_v49, %v2716_v9 }
 0xb26   :  { %v2048_v54 = vmul.f32 -1.442695, %v1558_v8  ;;  %v2049_v8 = vmul.f32 -1.442695, %v2937_v28 }
 0xb28   :  { %2249 = vpow2.f32 %v2048_v54 }
 0xb2b   :  { %v1559_v60 = vpop.f32.mrf.mxu2  ;;  %v1572_v14 = vpop.f32.mrf.mxu3 }
 0xb2e   :  { %v2250_v61 = vpop.eup %2249 }
 0xb2f   :  { %v1577_v40 = vadd.f32 1.0, %v2250_v61 }
 0xb31   :  { %2251 = vrcp.f32 %v1577_v40  ;;  %v1589_v55 = vand.u32 2147483648, %v1577_v40  ;;  %v1587_v17 = vand.u32 2147483647, %v1577_v40  ;;  %vm1583_vm2 = vweird.f32 %v1577_v40 }
 0xb33   :  { %v1590_v20 = vor.u32 1.1754944e-38, %v1589_v55  ;;  %vm1588_vm4 = vcmp.eq.f32.partialorder %v1587_v17, 8.507059e+37 }
 0xb34   :  { %v1638_v7 = vpop.f32.mrf.mxu0  ;;  %v1651_v24 = vpop.f32.mrf.mxu1 }
 0xb35   :  { %v1655_v13 = vadd.f32 %v1638_v7, %v318_v1  ;;  %v1656_v25 = vadd.f32 %v1651_v24, %v331_v15 }
 0xb37   :  { %v2252_v47 = vpop.eup %2251  ;;  %v2052_v39 = vmul.f32 -1.442695, %v1655_v13  ;;  %v2053_v3 = vmul.f32 -1.442695, %v1656_v25 }
 0xb38   :  { %v1579_v11 = vmul.f32 %v2252_v47, %v1577_v40  ;;  %vm1584_vm1 = vweird.f32 %v2252_v47 }
 0xb39   :  { %2253 = vpow2.f32 %v2052_v39  ;;  %vm1585_vm3 = vmor %vm1583_vm2, %vm1584_vm1 }
 0xb3a   :  { %v1580_v44 = vsub.f32 1.0, %v1579_v11  ;;  %2255 = vtanh.f32 %v2937_v28 }
 0xb3c   :  { %v1640_v6 = vpop.f32.mrf.mxu0  ;;  %v1653_v46 = vpop.f32.mrf.mxu1  ;;  %v1581_v41 = vmul.f32 %v2252_v47, %v1580_v44 }
 0xb3e   :  { %v1582_v57 = vadd.f32 %v2252_v47, %v1581_v41 }
 0xb3f   :  { %v2254_v33 = vpop.eup %2253 }
 0xb40   :  { %v1660_v23 = vadd.f32 1.0, %v2254_v33  ;;  %v1586_v26 = vsel %vm1585_vm3, %v2252_v47, %v1582_v57  ;;  %v2256_v32 = vpop.eup %2255 }
 0xb41   :  { %v1591_v63 = vsel %vm1588_vm4, %v1590_v20, %v1586_v26 }
 0xb42   :  { %2257 = vrcp.f32 %v1660_v23  ;;  %v1614_v29 = vmul.f32 %v2256_v32, %v1591_v63  ;;  %v1672_v38 = vand.u32 2147483648, %v1660_v23  ;;  %v1670_v56 = vand.u32 2147483647, %v1660_v23 }
 0xb43   :  { %2259 = vtanh.f32 %v1656_v25  ;;  %vm1666_vm6 = vweird.f32 %v1660_v23  ;;  %v1613_v1 = vmul.f32 %v1591_v63, %v2927_v45 }
 0xb44   :  { %1616 = vrot.lane.b32.xlu1 %v1614_v29, %s2315_s3  ;;  %v1673_v2 = vor.u32 1.1754944e-38, %v1672_v38  ;;  %vm1671_vm8 = vcmp.eq.f32.partialorder %v1670_v56, 8.507059e+37  ;;  %2261 = vpow2.f32 %v2053_v3  ;;  %v1791_v3 = vld [vmem:[%s3012_s6 + $0x30] sm:$0xff] }
 0xb48   :  { %v2258_v16 = vpop.eup %2257 }
 0xb49   :  { %v1662_v27 = vmul.f32 %v2258_v16, %v1660_v23  ;;  %vm1667_vm5 = vweird.f32 %v2258_v16  ;;  %v2260_v18 = vpop.eup %2259 }
 0xb4a   :  { %vm1668_vm7 = vmor %vm1666_vm6, %vm1667_vm5  ;;  %v2262_v34 = vpop.eup %2261 }
 0xb4b   :  { %v1663_v35 = vsub.f32 1.0, %v1662_v27  ;;  %v1680_v42 = vadd.f32 1.0, %v2262_v34  ;;  %v1790_v34 = vld [vmem:[%s3012_s6 + $0x28] sm:$0xff] }
 0xb4d   :  { %v1664_v10 = vmul.f32 %v2258_v16, %v1663_v35  ;;  %2263 = vrcp.f32 %v1680_v42  ;;  %v1692_v4 = vand.u32 2147483648, %v1680_v42  ;;  %vm1686_vm11 = vweird.f32 %v1680_v42 }
 0xb4e   :  { %v1690_v53 = vand.u32 2147483647, %v1680_v42 }
 0xb4f   :  { %v1665_v58 = vadd.f32 %v2258_v16, %v1664_v10  ;;  %v1693_v59 = vor.u32 1.1754944e-38, %v1692_v4 }
 0xb50   :  { %vm1691_vm13 = vcmp.eq.f32.partialorder %v1690_v53, 8.507059e+37 }
 0xb51   :  { %v1669_v5 = vsel %vm1668_vm7, %v2258_v16, %v1665_v58 }
 0xb52   :  { %v1674_v19 = vsel %vm1671_vm8, %v1673_v2, %v1669_v5 }
 0xb53   :  { %v1697_v31 = vmul.f32 %v2260_v18, %v1674_v19  ;;  %v2264_v52 = vpop.eup %2263  ;;  %v1696_v21 = vmul.f32 %v1674_v19, %v2921_v36 }
 0xb54   :  { %v1682_v48 = vmul.f32 %v2264_v52, %v1680_v42  ;;  %vm1687_vm10 = vweird.f32 %v2264_v52  ;;  %v1789_v42 = vld [vmem:[%s3012_s6 + $0x20] sm:$0xff] }
 0xb55   :  { %1699 = vrot.lane.b32.xlu0 %v1697_v31, %s2315_s3  ;;  %vm1688_vm12 = vmor %vm1686_vm11, %vm1687_vm10  ;;  %v1792_v31 = vld [vmem:[%s3012_s6 + $0x38] sm:$0xff]  ;;  %vm1831_vm11 = vcmask 261120  }
 0xb56   :  { %v1683_v37 = vsub.f32 1.0, %v1682_v48  ;;  %1810 = vmatpush.msra.mxu2 %v1792_v31 }
 0xb58   :  { %v1684_v62 = vmul.f32 %v2264_v52, %v1683_v37  ;;  %1811 = vmatpush.msra.mxu2 %v1791_v3  ;;  %v1787_v37 = vld [vmem:[%s3012_s6 + $0x10] sm:$0xff] }
 0xb5a   :  { %v1685_v30 = vadd.f32 %v2264_v52, %v1684_v62  ;;  %1812 = vmatpush.msra.mxu2 %v1790_v34 }
 0xb5c   :  { %v1689_v0 = vsel %vm1688_vm12, %v2264_v52, %v1685_v30  ;;  %v1788_v52 = vld [vmem:[%s3012_s6 + $0x18] sm:$0xff]  ;;  %1813 = vmatpush.msra.mxu2 %v1789_v42  ;;  %vm1870_vm12 = vcmask 3072  }
 0xb5d   :  { %v1694_v12 = vsel %vm1691_vm13, %v1693_v59, %v1689_v0 }
 0xb5e   :  { %1814 = vmatpush.msra.mxu2 %v1788_v52 }
 0xb60   :  { %1815 = vmatpush.msra.mxu2 %v1787_v37 }
 0xbb6   :  { %v1617_v40 = vpop.permute.xlu1 %1616 }
 0xbb7   :  { %v2948_v7 = vadd.f32 %v1617_v40, %v1613_v1  ;;  %v1824_v40 = vld [vmem:[%s3014_s8 + $0x8] sm:$0xff] }
 0xbc7   :  { %v1700_v22 = vpop.permute.xlu0 %1699 }
 0xbc8   :  { %v1702_v43 = vadd.f32 %v1700_v22, %v1696_v21  ;;  %v1786_v21 = vld [vmem:[%s3012_s6 + $0x8] sm:$0xff]  ;;  %v1785_v22 = vld [vmem:[%s3012_s6] sm:$0xff] }
 0xbc9   :  { %1816 = vmatpush.msra.mxu2 %v1786_v21 }
 0xbca   :  { %2265 = vtanh.f32 %v1702_v43 }
 0xbcb   :  { %2267 = vpow2.f32 %v2049_v8  ;;  %1817 = vmatpush.msra.mxu2 %v1785_v22 }
 0xbd0   :  { %v2266_v51 = vpop.eup %2265 }
 0xbd1   :  { %v1704_v49 = vmul.f32 %v2266_v51, %v1694_v12  ;;  %v2268_v36 = vpop.eup %2267 }
 0xbd2   :  { %v1597_v54 = vadd.f32 1.0, %v2268_v36 }
 0xbd3   :  { %1706 = vrot.lane.b32.xlu2 %v1704_v49, %s2315_s3 }
 0xbd4   :  { %2269 = vrcp.f32 %v1597_v54  ;;  %v1609_v47 = vand.u32 2147483648, %v1597_v54  ;;  %vm1603_vm15 = vweird.f32 %v1597_v54  ;;  %v1607_v28 = vand.u32 2147483647, %v1597_v54 }
 0xbd5   :  { %2271 = vtanh.f32 %v2948_v7 }
 0xbd6   :  { %v1610_v44 = vor.u32 1.1754944e-38, %v1609_v47  ;;  %vm1608_vm1 = vcmp.eq.f32.partialorder %v1607_v28, 8.507059e+37 }
 0xbda   :  { %v2270_v60 = vpop.eup %2269 }
 0xbdb   :  { %v1599_v14 = vmul.f32 %v2270_v60, %v1597_v54  ;;  %vm1604_vm14 = vweird.f32 %v2270_v60  ;;  %v2272_v11 = vpop.eup %2271 }
 0xbdc   :  { %vm1605_vm0 = vmor %vm1603_vm15, %vm1604_vm14 }
 0xbdd   :  { %v1600_v61 = vsub.f32 1.0, %v1599_v14  ;;  %v1826_v14 = vld [vmem:[%s3014_s8 + $0x18] sm:$0xff] }
 0xbde   :  { %1847 = vmatpush.msra.mxu3 %v1826_v14 }
 0xbdf   :  { %v1601_v24 = vmul.f32 %v2270_v60, %v1600_v61  ;;  %v1825_v61 = vld [vmem:[%s3014_s8 + $0x10] sm:$0xff] }
 0xbe0   :  { %1848 = vmatpush.msra.mxu3 %v1825_v61 }
 0xbe1   :  { %v1602_v13 = vadd.f32 %v2270_v60, %v1601_v24  ;;  %v2089_v24 = vld [vmem:[%s3013_s7] ss:$0 sm:$0xff] }
 0xbe2   :  { %1849 = vmatpush.msra.mxu3 %v1824_v40 }
 0xbe3   :  { %v1606_v39 = vsel %vm1605_vm0, %v2270_v60, %v1602_v13 }
 0xbe4   :  { %v1611_v55 = vsel %vm1608_vm1, %v1610_v44, %v1606_v39  ;;  %v2090_v39 = vld [vmem:[%s3015_s9] ss:$0 sm:$0xff] }
 0xbe5   :  { %v1621_v6 = vmul.f32 %v2272_v11, %v1611_v55  ;;  %v2091_v55 = vld [vmem:[%s3016_s10] ss:$0 sm:$0xff] }
 0xc2d   :  { %v1707_v46 = vpop.permute.xlu2 %1706 }
 0xc2e   :  { %v1709_v45 = vsel %vm382_vm9, %v1707_v46, %v1621_v6 }
 0xc2f   :  { %v1710_v41 = vpack.c.bf16 %v1709_v45, %v1709_v45 }
 0xc31   :  { %1719 = vmatmul.bf16.vlgmr.msrb.gmra.mxu0 %v1710_v41  ;;  %1732 = vmatmul.bf16.vlgmr.msrb.gmra.mxu1 %v1710_v41  ;;  %v2092_v41 = vld [vmem:[#allocation2] ss:$0 sm:$0xff] }
 0xcae   :  { %v1720_v17 = vpop.f32.mrf.mxu0  ;;  %v1733_v57 = vpop.f32.mrf.mxu1 }
 0xcaf   :  { %v1721_v33 = vadd.f32 %v1720_v17, %v2713_v50  ;;  %v1734_v15 = vadd.f32 %v1733_v57, %v2716_v9 }
 0xcb1   :  { %v2054_v20 = vmul.f32 -1.442695, %v1721_v33  ;;  %v2055_v18 = vmul.f32 -1.442695, %v1734_v15 }
 0xcb3   :  { %2273 = vpow2.f32 %v2054_v20 }
 0xcb6   :  { %v1722_v23 = vpop.f32.mrf.mxu0  ;;  %v1735_v26 = vpop.f32.mrf.mxu1 }
 0xcb9   :  { %v2274_v32 = vpop.eup %2273 }
 0xcba   :  { %v1740_v63 = vadd.f32 1.0, %v2274_v32 }
 0xcbc   :  { %2275 = vrcp.f32 %v1740_v63  ;;  %v1752_v27 = vand.u32 2147483648, %v1740_v63  ;;  %v1750_v38 = vand.u32 2147483647, %v1740_v63  ;;  %vm1746_vm3 = vweird.f32 %v1740_v63 }
 0xcbd   :  { %2277 = vtanh.f32 %v1734_v15 }
 0xcbe   :  { %v1753_v50 = vor.u32 1.1754944e-38, %v1752_v27  ;;  %vm1751_vm5 = vcmp.eq.f32.partialorder %v1750_v38, 8.507059e+37  ;;  %2279 = vpow2.f32 %v2055_v18 }
 0xcc2   :  { %v2276_v29 = vpop.eup %2275 }
 0xcc3   :  { %v1742_v16 = vmul.f32 %v2276_v29, %v1740_v63  ;;  %vm1747_vm2 = vweird.f32 %v2276_v29  ;;  %v2278_v58 = vpop.eup %2277 }
 0xcc4   :  { %vm1748_vm4 = vmor %vm1746_vm3, %vm1747_vm2  ;;  %v2280_v9 = vpop.eup %2279 }
 0xcc5   :  { %v1743_v25 = vsub.f32 1.0, %v1742_v16  ;;  %v1760_v19 = vadd.f32 1.0, %v2280_v9 }
 0xcc7   :  { %v1744_v35 = vmul.f32 %v2276_v29, %v1743_v25  ;;  %2281 = vrcp.f32 %v1760_v19  ;;  %v1772_v51 = vand.u32 2147483648, %v1760_v19  ;;  %vm1766_vm7 = vweird.f32 %v1760_v19 }
 0xcc8   :  { %v1770_v12 = vand.u32 2147483647, %v1760_v19 }
 0xcc9   :  { %v1745_v10 = vadd.f32 %v2276_v29, %v1744_v35  ;;  %v1773_v8 = vor.u32 1.1754944e-38, %v1772_v51 }
 0xcca   :  { %vm1771_vm10 = vcmp.eq.f32.partialorder %v1770_v12, 8.507059e+37 }
 0xccb   :  { %v1749_v56 = vsel %vm1748_vm4, %v2276_v29, %v1745_v10 }
 0xccc   :  { %v1754_v2 = vsel %vm1751_vm5, %v1753_v50, %v1749_v56 }
 0xccd   :  { %v1777_v5 = vmul.f32 %v2278_v58, %v1754_v2  ;;  %v2282_v48 = vpop.eup %2281  ;;  %v1776_v4 = vmul.f32 %v1754_v2, %v2948_v7  ;;  %v1823_v7 = vld [vmem:[%s3014_s8] sm:$0xff] }
 0xcce   :  { %v1762_v62 = vmul.f32 %v2282_v48, %v1760_v19  ;;  %vm1767_vm6 = vweird.f32 %v2282_v48  ;;  %1850 = vmatpush.msra.mxu3 %v1823_v7 }
 0xccf   :  { %1779 = vrot.lane.b32.xlu0 %v1777_v5, %s2315_s3  ;;  %vm1768_vm8 = vmor %vm1766_vm7, %vm1767_vm6 }
 0xcd0   :  { %v1763_v43 = vsub.f32 1.0, %v1762_v62 }
 0xcd2   :  { %v1764_v30 = vmul.f32 %v2282_v48, %v1763_v43 }
 0xcd4   :  { %v1765_v59 = vadd.f32 %v2282_v48, %v1764_v30 }
 0xcd6   :  { %v1769_v49 = vsel %vm1768_vm8, %v2282_v48, %v1765_v59 }
 0xcd7   :  { %v1774_v54 = vsel %vm1771_vm10, %v1773_v8, %v1769_v49 }
 0xd41   :  { %v1780_v53 = vpop.permute.xlu0 %1779 }
 0xd42   :  { %v1782_v0 = vadd.f32 %v1780_v53, %v1776_v4 }
 0xd44   :  { %2283 = vtanh.f32 %v1782_v0 }
 0xd4a   :  { %v2284_v36 = vpop.eup %2283 }
 0xd4b   :  { %v1784_v60 = vmul.f32 %v2284_v36, %v1774_v54 }
 0xd4d   :  { %1798 = vrot.lane.b32.xlu1 %v1784_v60, %s2315_s3 }
 0xdbf   :  { %v1799_v1 = vpop.permute.xlu1 %1798 }
 0xdc0   :  { %2056 = vmatmul.msk.f32.vlgmr.msra.gmra.mxu2 %vm382_vm9, %v1799_v1  ;;  %vm1861_vm9 = vcmask 125952  }
 0xe43   :  { %v1819_v13 = vpop.f32.mrf.mxu2 }
 0xe44   :  { %v1820_v47 = vadd.f32 %v2089_v24, %v1819_v13 }
 0xe46   :  { %v1822_v28 = vmax.f32 %v1820_v47, 0.0 }
 0xe48   :  { %2057 = vmatmul.msk.f32.vlgmr.msra.gmra.mxu3 %vm1831_vm11, %v1822_v28 }
 0xecb   :  { %v1852_v11 = vpop.f32.mrf.mxu3 }
 0xecc   :  { %v1853_v44 = vadd.f32 %v2090_v39, %v1852_v11 }
 0xece   :  { %v1855_v6 = vmax.f32 %v1853_v44, 0.0 }
 0xed0   :  { %v1860_v46 = vmul.f32 %v2091_v55, %v1855_v6 }
 0xed2   :  { %v1862_v45 = vsel %vm1861_vm9, %v1860_v46, 0.0 }
 0xed3   :  { %1863 = vadd.xlane.f32.xlu2 %v1862_v45 }
 0xf46   :  { %v1864_v17 = vpop.xlane.xlu2 %1863 }
 0xf47   :  { %v1869_v57 = vadd.f32 %v2092_v41, %v1864_v17 }
 0xf49   :  { %1871 = vst.msk [vmem:[%s3018_s12] sm:$0xf] %vm1870_vm12, %v1869_v57 }
 0xf4a   :  { %1876 = vsyncpa [#allocation4], 1 }

</bundles_post_ra>
